<compile_context>
chip_gen: v7x
topology: tpu7x:2x2x1
jax: 0.10.0
libtpu: 0.0.40
codegen_flags: <defaults>
</compile_context>

<pallas_src>
import functools

import jax
import jax.numpy as jnp
import numpy as np
from jax.experimental import pallas as pl
from jax.experimental.pallas import tpu as pltpu


def _pad128(n):
    return ((int(n) + 127) // 128) * 128


def _const_map(ndim):
    if ndim == 2:
        return lambda n: (0, 0)
    if ndim == 3:
        return lambda n: (0, 0, 0)
    raise ValueError(ndim)


# ---------------------------------------------------------------------------
# Single fused kernel (grid over batch blocks of TB images).
# Activation layout inside the kernel: (TB, Hstage, Kstage) channels-last,
# column index = (w + 1) * C + c  (column group 0 and W+1 are the conv zero
# pad), lane-padded with zeros to a multiple of 128.
# ---------------------------------------------------------------------------
def _make_fused_kernel(enc_meta, bott_meta, dec_meta, fin_meta):
    h2, K2 = bott_meta

    def kernel(x_ref, *refs):
        o_ref = refs[-1]
        wrefs = refs[:-1]
        pos = 0

        def nxt():
            nonlocal pos
            r = wrefs[pos]
            pos += 1
            return r

        a = x_ref[...]                                    # (TB, H0, K0) f32
        TB = a.shape[0]

        def pad_rows(v, K):
            zr = jnp.zeros((TB, 1, K), jnp.float32)
            return jnp.concatenate([zr, v, zr], axis=1)

        # ---- encoder: Conv3x3(pad=1) + bias + ReLU + MaxPool2x2, fused ----
        for (H, Kin, Np) in enc_meta:
            m_ref = nxt()                                 # (3, Kin, 2*Np) bf16
            b_ref = nxt()                                 # (1, Np) f32
            ap = pad_rows(a, Kin)                         # (TB, H+2, Kin)
            acc = None
            for kh in range(3):
                slab = ap[:, kh:kh + H, :].reshape(TB * H, Kin).astype(jnp.bfloat16)
                part = jnp.dot(slab, m_ref[kh], preferred_element_type=jnp.float32)
                acc = part if acc is None else acc + part
            # column-parity max (maxpool along W, folded into weight columns)
            cm = jnp.maximum(acc[:, :Np], acc[:, Np:])    # (TB*H, Np)
            # row-pair max (maxpool along H)
            cm = cm.reshape(TB * (H // 2), 2, Np)
            pooled = jnp.maximum(cm[:, 0, :], cm[:, 1, :])
            act = jnp.maximum(pooled + b_ref[...], 0.0)   # bias + ReLU
            a = act.reshape(TB, H // 2, Np)

        # ---- bottleneck: Flatten -> Linear -> Linear -> Unflatten ----
        w1_ref = nxt(); b1_ref = nxt(); w2_ref = nxt(); b2_ref = nxt()
        flat = jnp.concatenate([a[:, h, :] for h in range(h2)], axis=-1)
        z = jnp.dot(flat.astype(jnp.bfloat16), w1_ref[...],
                    preferred_element_type=jnp.float32) + b1_ref[...]
        d = jnp.dot(z.astype(jnp.bfloat16), w2_ref[...],
                    preferred_element_type=jnp.float32) + b2_ref[...]
        a = jnp.concatenate(
            [d[:, h * K2:(h + 1) * K2].reshape(TB, 1, K2) for h in range(h2)],
            axis=1)                                       # (TB, h2, K2)

        # ---- decoder: ConvTranspose(3, s=2, p=1, op=1) + bias + ReLU ----
        for (H, Kin, Kout) in dec_meta:
            da_ref = nxt()                                # (Kin, 2*Kout) bf16
            db_ref = nxt()                                # (Kin, Kout)   bf16
            bias_ref = nxt()                              # (1, Kout)     f32
            ap = pad_rows(a, Kin)
            slab0 = ap[:, 1:1 + H, :].reshape(TB * H, Kin).astype(jnp.bfloat16)
            slab1 = ap[:, 2:2 + H, :].reshape(TB * H, Kin).astype(jnp.bfloat16)
            cat = jnp.dot(slab0, da_ref[...], preferred_element_type=jnp.float32)
            odd = cat[:, Kout:] + jnp.dot(slab1, db_ref[...],
                                          preferred_element_type=jnp.float32)
            b = bias_ref[...]
            even = jnp.maximum(cat[:, :Kout] + b, 0.0)    # output rows 2m
            odd = jnp.maximum(odd + b, 0.0)               # output rows 2m+1
            a = jnp.concatenate([even[:, None, :], odd[:, None, :]],
                                axis=1).reshape(TB, 2 * H, Kout)

        # ---- output head: Conv3x3 + bias + Sigmoid (exact) ----
        Hf, Kin, Kf = fin_meta
        f_ref = nxt()
        fb_ref = nxt()
        ap = pad_rows(a, Kin)
        acc = None
        for kh in range(3):
            slab = ap[:, kh:kh + Hf, :].reshape(TB * Hf, Kin).astype(jnp.bfloat16)
            part = jnp.dot(slab, f_ref[kh], preferred_element_type=jnp.float32)
            acc = part if acc is None else acc + part
        acc = acc + fb_ref[...]
        y = 1.0 / (1.0 + jnp.exp(-acc))                   # exact sigmoid in [0,1]
        o_ref[...] = y.reshape(TB, Hf, Kf).astype(o_ref.dtype)

    return kernel


# ---------------------------------------------------------------------------
# One-time host-side weight re-layout (Toeplitz expansion, bf16 cast).
# ---------------------------------------------------------------------------
def _enc_stage_operands(w_oihw, b, Win, Cin, Cout, Kin):
    Wout = Win // 2
    Np = _pad128((Wout + 2) * Cout)
    wt = np.asarray(w_oihw, np.float32)                   # (Cout, Cin, 3, 3)
    M = np.zeros((3, Kin, 2 * Np), np.float32)
    for kh in range(3):
        for q in range(2):
            for j2 in range(Wout):
                for kw in range(3):
                    g = 2 * j2 + q + kw                   # padded input col group
                    rs = g * Cin
                    cs = q * Np + (j2 + 1) * Cout
                    M[kh, rs:rs + Cin, cs:cs + Cout] += wt[:, :, kh, kw].T
    bias = np.zeros((1, Np), np.float32)
    for j2 in range(Wout):
        bias[0, (j2 + 1) * Cout:(j2 + 2) * Cout] = np.asarray(b, np.float32)
    return M, bias, Np


def _convt_stage_operands(w_iohw, b, Win, Cin, Cout, Kin):
    Wt = 2 * Win
    Kout = _pad128((Wt + 2) * Cout)
    wt = np.asarray(w_iohw, np.float32)                   # (Cin, Cout, 3, 3)

    def fill(M, kh):
        for oj in range(Wt):
            for kw in range(3):
                num = oj + 1 - kw
                if num % 2 != 0:
                    continue
                iw = num // 2
                if iw < 0 or iw >= Win:
                    continue
                rs = (iw + 1) * Cin
                cs = (oj + 1) * Cout
                M[rs:rs + Cin, cs:cs + Cout] += wt[:, :, kh, kw]

    M_even = np.zeros((Kin, Kout), np.float32)            # kh=1, input row m
    M_odd2 = np.zeros((Kin, Kout), np.float32)            # kh=2, input row m
    M_odd0 = np.zeros((Kin, Kout), np.float32)            # kh=0, input row m+1
    fill(M_even, 1)
    fill(M_odd2, 2)
    fill(M_odd0, 0)
    Da = np.concatenate([M_even, M_odd2], axis=1)         # (Kin, 2*Kout)
    bias = np.zeros((1, Kout), np.float32)
    for oj in range(Wt):
        bias[0, (oj + 1) * Cout:(oj + 2) * Cout] = np.asarray(b, np.float32)
    return Da, M_odd0, bias, Kout


def _final_conv_operands(w_oihw, b, Win, Cin, Cout, Kin):
    Kf = _pad128(Win * Cout)
    wt = np.asarray(w_oihw, np.float32)
    F = np.zeros((3, Kin, Kf), np.float32)
    for kh in range(3):
        for j in range(Win):
            for kw in range(3):
                g = j + kw
                rs = g * Cin
                cs = j * Cout
                F[kh, rs:rs + Cin, cs:cs + Cout] += wt[:, :, kh, kw].T
    bias = np.zeros((1, Kf), np.float32)
    bias[0, :Win * Cout] = np.tile(np.asarray(b, np.float32), Win)
    return F, bias, Kf


def _bottleneck_operands(enc_w, enc_b, dec_w, dec_b, H2, W2, C2, latent, K2):
    LP = _pad128(latent)
    KF = H2 * K2
    ew = np.asarray(enc_w, np.float32)                    # (latent, C2*H2*W2)
    dw = np.asarray(dec_w, np.float32)                    # (C2*H2*W2, latent)
    db = np.asarray(dec_b, np.float32)
    W1 = np.zeros((KF, LP), np.float32)
    W2m = np.zeros((LP, KF), np.float32)
    b2 = np.zeros((1, KF), np.float32)
    for h in range(H2):
        for w_ in range(W2):
            for c in range(C2):
                col = h * K2 + (w_ + 1) * C2 + c
                o = (c * H2 + h) * W2 + w_                # torch CHW flatten
                W1[col, :latent] = ew[:, o]
                W2m[:latent, col] = dw[o, :]
                b2[0, col] = db[o]
    b1 = np.zeros((1, LP), np.float32)
    b1[0, :latent] = np.asarray(enc_b, np.float32)
    return W1, b1, W2m, b2


# ---------------------------------------------------------------------------
# Parameters (torch layout), prepared operands, forward.
# ---------------------------------------------------------------------------
def init_params(key, config):
    H, W, C = config["input_shape"]
    enc_f = list(config["encoder_filters"])
    dec_f = list(config["decoder_filters"])
    latent = config["latent_dim"]
    s = H // (2 ** len(enc_f))
    conv_out = enc_f[-1] * s * s

    keys = iter(jax.random.split(key, 32))

    def nrm(shape, scale=0.1):
        return (scale * jax.random.normal(next(keys), shape)).astype(jnp.float32)

    params = {"enc_convs": [], "dec_deconvs": []}
    in_c = C
    for f in enc_f:                               # Conv2d(in_c, f, 3, padding=1)
        params["enc_convs"].append({"w": nrm((f, in_c, 3, 3)), "b": nrm((f,))})
        in_c = f
    params["enc_fc"] = {"w": nrm((latent, conv_out)), "b": nrm((latent,))}
    params["dec_fc"] = {"w": nrm((conv_out, latent)), "b": nrm((conv_out,))}
    in_c = enc_f[-1]
    for f in dec_f:                               # ConvTranspose2d(in_c, f, 3, 2, 1, 1)
        params["dec_deconvs"].append({"w": nrm((in_c, f, 3, 3)), "b": nrm((f,))})
        in_c = f
    params["dec_out"] = {"w": nrm((C, in_c, 3, 3)), "b": nrm((C,))}
    return params


def prepare_params(params, config):
    H, W, C = config["input_shape"]
    enc_f = list(config["encoder_filters"])
    dec_f = list(config["decoder_filters"])
    latent = config["latent_dim"]

    bf = lambda a: jnp.asarray(a, jnp.bfloat16)
    f32 = lambda a: jnp.asarray(a, jnp.float32)

    operands = []
    enc_meta = []
    h, w, cin = H, W, C
    K0 = _pad128((W + 2) * C)
    for layer, f in zip(params["enc_convs"], enc_f):
        Kin = _pad128((w + 2) * cin)
        M, bias, Np = _enc_stage_operands(layer["w"], layer["b"], w, cin, f, Kin)
        operands += [bf(M), f32(bias)]
        enc_meta.append((h, Kin, Np))
        h, w, cin = h // 2, w // 2, f

    K2 = _pad128((w + 2) * cin)
    W1, b1, W2m, b2 = _bottleneck_operands(
        params["enc_fc"]["w"], params["enc_fc"]["b"],
        params["dec_fc"]["w"], params["dec_fc"]["b"], h, w, cin, latent, K2)
    operands += [bf(W1), f32(b1), bf(W2m), f32(b2)]
    bott_meta = (h, K2)

    dec_meta = []
    for layer, f in zip(params["dec_deconvs"], dec_f):
        Kin = _pad128((w + 2) * cin)
        Da, Db, bias, Kout = _convt_stage_operands(layer["w"], layer["b"],
                                                   w, cin, f, Kin)
        operands += [bf(Da), bf(Db), f32(bias)]
        dec_meta.append((h, Kin, Kout))
        h, w, cin = 2 * h, 2 * w, f

    Kin = _pad128((w + 2) * cin)
    F, fbias, Kf = _final_conv_operands(params["dec_out"]["w"],
                                        params["dec_out"]["b"], w, cin, C, Kin)
    operands += [bf(F), f32(fbias)]
    fin_meta = (h, Kin, Kf)

    meta = dict(K0=K0, enc_meta=tuple(enc_meta), bott_meta=bott_meta,
                dec_meta=tuple(dec_meta), fin_meta=fin_meta,
                out_hw=(h, w), Kf=Kf)
    return operands, meta


def forward(operands, x_nchw, *, meta, config):
    """Forward pass; takes/returns NCHW like the PyTorch module."""
    H, W, C = config["input_shape"]
    K0 = meta["K0"]
    Kf = meta["Kf"]
    Hf, Wf = meta["out_hw"]
    N = x_nchw.shape[0]

    # NCHW -> channels-last slab with W-padding baked in: (N, H, K0)
    x = jnp.transpose(x_nchw, (0, 2, 3, 1)).astype(jnp.float32)
    x = jnp.pad(x, ((0, 0), (0, 0), (1, 1), (0, 0))).reshape(N, H, (W + 2) * C)
    if K0 > (W + 2) * C:
        x = jnp.pad(x, ((0, 0), (0, 0), (0, K0 - (W + 2) * C)))

    # Batch block size: aim for ~256 MXU rows at the largest stages.
    TB = max(1, min(N, 16))
    NB = ((N + TB - 1) // TB) * TB
    if NB != N:
        x = jnp.pad(x, ((0, NB - N), (0, 0), (0, 0)))

    kernel = _make_fused_kernel(meta["enc_meta"], meta["bott_meta"],
                                meta["dec_meta"], meta["fin_meta"])

    in_specs = [pl.BlockSpec((TB, H, K0), lambda n: (n, 0, 0))]
    for op in operands:
        in_specs.append(pl.BlockSpec(op.shape, _const_map(op.ndim)))

    out = pl.pallas_call(
        kernel,
        out_shape=jax.ShapeDtypeStruct((NB, Hf, Kf), jnp.float32),
        grid=(NB // TB,),
        in_specs=in_specs,
        out_specs=pl.BlockSpec((TB, Hf, Kf), lambda n: (n, 0, 0)),
        compiler_params=pltpu.CompilerParams(
            dimension_semantics=("parallel",)),
    )(x, *operands)

    out = out[:N, :, :Wf * C].reshape(N, Hf, Wf, C)
    return jnp.transpose(out, (0, 3, 1, 2))               # NHWC -> NCHW


# ---------------------------------------------------------------------------
# Plain numpy reference (follows the PyTorch layer definitions exactly).
# ---------------------------------------------------------------------------
def _reference_forward(params, x_nchw, config):
    def conv3x3(x, w, b):
        N, Cin, H, W = x.shape
        Cout = w.shape[0]
        xp = np.pad(x, ((0, 0), (0, 0), (1, 1), (1, 1)))
        out = np.zeros((N, Cout, H, W), np.float32)
        for kh in range(3):
            for kw in range(3):
                out += np.einsum('ncij,oc->noij',
                                 xp[:, :, kh:kh + H, kw:kw + W], w[:, :, kh, kw])
        return out + b.reshape(1, -1, 1, 1)

    def convT(x, w, b):
        N, Cin, H, W = x.shape
        Cout = w.shape[1]
        buf = np.zeros((N, Cout, 2 * H + 2, 2 * W + 2), np.float32)
        for kh in range(3):
            for kw in range(3):
                buf[:, :, kh:kh + 2 * H:2, kw:kw + 2 * W:2] += np.einsum(
                    'ncij,co->noij', x, w[:, :, kh, kw])
        return buf[:, :, 1:1 + 2 * H, 1:1 + 2 * W] + b.reshape(1, -1, 1, 1)

    a = np.asarray(x_nchw, np.float32)
    for layer in params["enc_convs"]:
        a = conv3x3(a, np.asarray(layer["w"]), np.asarray(layer["b"]))
        a = np.maximum(a, 0.0)
        N, C, H, W = a.shape
        a = a.reshape(N, C, H // 2, 2, W // 2, 2).max(axis=(3, 5))
    N, C2, H2, W2 = a.shape
    flat = a.reshape(N, -1)
    z = flat @ np.asarray(params["enc_fc"]["w"]).T + np.asarray(params["enc_fc"]["b"])
    d = z @ np.asarray(params["dec_fc"]["w"]).T + np.asarray(params["dec_fc"]["b"])
    a = d.reshape(N, C2, H2, W2)
    for layer in params["dec_deconvs"]:
        a = convT(a, np.asarray(layer["w"]), np.asarray(layer["b"]))
        a = np.maximum(a, 0.0)
    a = conv3x3(a, np.asarray(params["dec_out"]["w"]),
                np.asarray(params["dec_out"]["b"]))
    return 1.0 / (1.0 + np.exp(-a))


if __name__ == "__main__":
    config = {
        "input_shape": (16, 16, 4),        # (H, W, C) as in the torch config
        "encoder_filters": [8, 16],
        "decoder_filters": [16, 8],
        "latent_dim": 32,
    }
    key = jax.random.PRNGKey(0)
    pkey, xkey = jax.random.split(key)
    params = init_params(pkey, config)
    operands, meta = prepare_params(params, config)

    # forward() expects NCHW (like the PyTorch module after its permute).
    x = jax.random.uniform(xkey, (2, 4, 16, 16), dtype=jnp.float32)

    fwd = jax.jit(functools.partial(forward, meta=meta, config=config))
    out = jax.block_until_ready(fwd(operands, x))

    assert out.shape == (2, 4, 16, 16), out.shape
    assert out.dtype == jnp.float32
    assert bool(jnp.all(jnp.isfinite(out)))
    assert bool(jnp.all((out >= 0.0) & (out <= 1.0)))     # sigmoid output range

    ref = _reference_forward(params, np.asarray(x), config)
    err = float(np.max(np.abs(np.asarray(out) - ref)))
    assert err < 3e-2, f"max abs error vs reference: {err}"

    print("KERNEL_OK")
</pallas_src>

<mosaic_0001>
module attributes {stable_mosaic.version = 11 : i64} {
  func.func @kernel(%arg0: i32, %arg1: memref<2x16x128xf32, #tpu.memory_space<vmem>>, %arg2: memref<3x128x256xbf16, #tpu.memory_space<vmem>>, %arg3: memref<1x128xf32, #tpu.memory_space<vmem>>, %arg4: memref<3x128x256xbf16, #tpu.memory_space<vmem>>, %arg5: memref<1x128xf32, #tpu.memory_space<vmem>>, %arg6: memref<512x128xbf16, #tpu.memory_space<vmem>>, %arg7: memref<1x128xf32, #tpu.memory_space<vmem>>, %arg8: memref<128x512xbf16, #tpu.memory_space<vmem>>, %arg9: memref<1x512xf32, #tpu.memory_space<vmem>>, %arg10: memref<128x512xbf16, #tpu.memory_space<vmem>>, %arg11: memref<128x256xbf16, #tpu.memory_space<vmem>>, %arg12: memref<1x256xf32, #tpu.memory_space<vmem>>, %arg13: memref<256x512xbf16, #tpu.memory_space<vmem>>, %arg14: memref<256x256xbf16, #tpu.memory_space<vmem>>, %arg15: memref<1x256xf32, #tpu.memory_space<vmem>>, %arg16: memref<3x256x128xbf16, #tpu.memory_space<vmem>>, %arg17: memref<1x128xf32, #tpu.memory_space<vmem>>, %arg18: memref<2x16x128xf32, #tpu.memory_space<vmem>>) attributes {dimension_semantics = [#tpu.dimension_semantics<parallel>], iteration_bounds = array<i64: 1>, scalar_prefetch = 0 : i64, scratch_operands = 0 : i64, tpu.core_type = #tpu.core_type<tc>, window_params = [{transform_indices = @transform_0, window_bounds = array<i64: 2, 16, 128>}, {pipeline_mode = #tpu.pipeline_mode<synchronous>, transform_indices = @transform_1, window_bounds = array<i64: 3, 128, 256>}, {pipeline_mode = #tpu.pipeline_mode<synchronous>, transform_indices = @transform_2, window_bounds = array<i64: 1, 128>}, {pipeline_mode = #tpu.pipeline_mode<synchronous>, transform_indices = @transform_3, window_bounds = array<i64: 3, 128, 256>}, {pipeline_mode = #tpu.pipeline_mode<synchronous>, transform_indices = @transform_4, window_bounds = array<i64: 1, 128>}, {pipeline_mode = #tpu.pipeline_mode<synchronous>, transform_indices = @transform_5, window_bounds = array<i64: 512, 128>}, {pipeline_mode = #tpu.pipeline_mode<synchronous>, transform_indices = @transform_6, window_bounds = array<i64: 1, 128>}, {pipeline_mode = #tpu.pipeline_mode<synchronous>, transform_indices = @transform_7, window_bounds = array<i64: 128, 512>}, {pipeline_mode = #tpu.pipeline_mode<synchronous>, transform_indices = @transform_8, window_bounds = array<i64: 1, 512>}, {pipeline_mode = #tpu.pipeline_mode<synchronous>, transform_indices = @transform_9, window_bounds = array<i64: 128, 512>}, {pipeline_mode = #tpu.pipeline_mode<synchronous>, transform_indices = @transform_10, window_bounds = array<i64: 128, 256>}, {pipeline_mode = #tpu.pipeline_mode<synchronous>, transform_indices = @transform_11, window_bounds = array<i64: 1, 256>}, {pipeline_mode = #tpu.pipeline_mode<synchronous>, transform_indices = @transform_12, window_bounds = array<i64: 256, 512>}, {pipeline_mode = #tpu.pipeline_mode<synchronous>, transform_indices = @transform_13, window_bounds = array<i64: 256, 256>}, {pipeline_mode = #tpu.pipeline_mode<synchronous>, transform_indices = @transform_14, window_bounds = array<i64: 1, 256>}, {pipeline_mode = #tpu.pipeline_mode<synchronous>, transform_indices = @transform_15, window_bounds = array<i64: 3, 256, 128>}, {pipeline_mode = #tpu.pipeline_mode<synchronous>, transform_indices = @transform_16, window_bounds = array<i64: 1, 128>}, {transform_indices = @transform_17, window_bounds = array<i64: 2, 16, 128>}]} {
    %c0 = arith.constant 0 : index
    %c0_0 = arith.constant 0 : index
    %c0_1 = arith.constant 0 : index
    %0 = vector.load %arg1[%c0, %c0_0, %c0_1] : memref<2x16x128xf32, #tpu.memory_space<vmem>>, vector<2x16x128xf32>
    %cst = arith.constant 0.000000e+00 : f32
    %1 = vector.broadcast %cst : f32 to vector<2x1x128xf32>
    %2 = tpu.concatenate %1, %0, %1 in 1 : vector<2x1x128xf32>, vector<2x16x128xf32>, vector<2x1x128xf32> -> vector<2x18x128xf32>
    %3 = vector.extract_strided_slice %2 {offsets = [0, 0, 0], sizes = [2, 16, 128], strides = [1, 1, 1]} : vector<2x18x128xf32> to vector<2x16x128xf32>
    %4 = vector.shape_cast %3 : vector<2x16x128xf32> to vector<32x128xf32>
    %5 = arith.truncf %4 : vector<32x128xf32> to vector<32x128xbf16>
    %c0_2 = arith.constant 0 : index
    %c0_3 = arith.constant 0 : index
    %c0_4 = arith.constant 0 : index
    %6 = vector.load %arg2[%c0_2, %c0_3, %c0_4] : memref<3x128x256xbf16, #tpu.memory_space<vmem>>, vector<1x128x256xbf16>
    %7 = vector.shape_cast %6 : vector<1x128x256xbf16> to vector<128x256xbf16>
    %cst_5 = arith.constant dense<0.000000e+00> : vector<32x256xf32>
    %8 = tpu.matmul %5, %7, %cst_5 {dimension_numbers = #tpu.dot_dimension_numbers<[1], [0], [0], [1], [0, 0, 1, 1], [], []>} : vector<32x128xbf16>, vector<128x256xbf16>, vector<32x256xf32> -> vector<32x256xf32>
    %9 = vector.extract_strided_slice %2 {offsets = [0, 1, 0], sizes = [2, 16, 128], strides = [1, 1, 1]} : vector<2x18x128xf32> to vector<2x16x128xf32>
    %10 = vector.shape_cast %9 : vector<2x16x128xf32> to vector<32x128xf32>
    %11 = arith.truncf %10 : vector<32x128xf32> to vector<32x128xbf16>
    %c1 = arith.constant 1 : index
    %c0_6 = arith.constant 0 : index
    %c0_7 = arith.constant 0 : index
    %12 = vector.load %arg2[%c1, %c0_6, %c0_7] : memref<3x128x256xbf16, #tpu.memory_space<vmem>>, vector<1x128x256xbf16>
    %13 = vector.shape_cast %12 : vector<1x128x256xbf16> to vector<128x256xbf16>
    %cst_8 = arith.constant dense<0.000000e+00> : vector<32x256xf32>
    %14 = tpu.matmul %11, %13, %cst_8 {dimension_numbers = #tpu.dot_dimension_numbers<[1], [0], [0], [1], [0, 0, 1, 1], [], []>} : vector<32x128xbf16>, vector<128x256xbf16>, vector<32x256xf32> -> vector<32x256xf32>
    %15 = arith.addf %8, %14 : vector<32x256xf32>
    %16 = vector.extract_strided_slice %2 {offsets = [0, 2, 0], sizes = [2, 16, 128], strides = [1, 1, 1]} : vector<2x18x128xf32> to vector<2x16x128xf32>
    %17 = vector.shape_cast %16 : vector<2x16x128xf32> to vector<32x128xf32>
    %18 = arith.truncf %17 : vector<32x128xf32> to vector<32x128xbf16>
    %c2 = arith.constant 2 : index
    %c0_9 = arith.constant 0 : index
    %c0_10 = arith.constant 0 : index
    %19 = vector.load %arg2[%c2, %c0_9, %c0_10] : memref<3x128x256xbf16, #tpu.memory_space<vmem>>, vector<1x128x256xbf16>
    %20 = vector.shape_cast %19 : vector<1x128x256xbf16> to vector<128x256xbf16>
    %cst_11 = arith.constant dense<0.000000e+00> : vector<32x256xf32>
    %21 = tpu.matmul %18, %20, %cst_11 {dimension_numbers = #tpu.dot_dimension_numbers<[1], [0], [0], [1], [0, 0, 1, 1], [], []>} : vector<32x128xbf16>, vector<128x256xbf16>, vector<32x256xf32> -> vector<32x256xf32>
    %22 = arith.addf %15, %21 : vector<32x256xf32>
    %23 = vector.extract_strided_slice %22 {offsets = [0, 0], sizes = [32, 128], strides = [1, 1]} : vector<32x256xf32> to vector<32x128xf32>
    %24 = vector.extract_strided_slice %22 {offsets = [0, 128], sizes = [32, 128], strides = [1, 1]} : vector<32x256xf32> to vector<32x128xf32>
    %25 = arith.maximumf %23, %24 : vector<32x128xf32>
    %26 = vector.shape_cast %25 : vector<32x128xf32> to vector<16x2x128xf32>
    %27 = vector.extract_strided_slice %26 {offsets = [0, 0, 0], sizes = [16, 1, 128], strides = [1, 1, 1]} : vector<16x2x128xf32> to vector<16x1x128xf32>
    %28 = vector.shape_cast %27 : vector<16x1x128xf32> to vector<16x128xf32>
    %29 = vector.extract_strided_slice %26 {offsets = [0, 1, 0], sizes = [16, 1, 128], strides = [1, 1, 1]} : vector<16x2x128xf32> to vector<16x1x128xf32>
    %30 = vector.shape_cast %29 : vector<16x1x128xf32> to vector<16x128xf32>
    %31 = arith.maximumf %28, %30 : vector<16x128xf32>
    %c0_12 = arith.constant 0 : index
    %c0_13 = arith.constant 0 : index
    %32 = vector.load %arg3[%c0_12, %c0_13] : memref<1x128xf32, #tpu.memory_space<vmem>>, vector<1x128xf32>
    %33 = vector.broadcast %32 : vector<1x128xf32> to vector<16x128xf32>
    %34 = arith.addf %31, %33 : vector<16x128xf32>
    %cst_14 = arith.constant 0.000000e+00 : f32
    %35 = vector.broadcast %cst_14 : f32 to vector<16x128xf32>
    %36 = arith.maximumf %34, %35 : vector<16x128xf32>
    %37 = vector.shape_cast %36 : vector<16x128xf32> to vector<2x8x128xf32>
    %cst_15 = arith.constant 0.000000e+00 : f32
    %38 = vector.broadcast %cst_15 : f32 to vector<2x1x128xf32>
    %39 = tpu.concatenate %38, %37, %38 in 1 : vector<2x1x128xf32>, vector<2x8x128xf32>, vector<2x1x128xf32> -> vector<2x10x128xf32>
    %40 = vector.extract_strided_slice %39 {offsets = [0, 0, 0], sizes = [2, 8, 128], strides = [1, 1, 1]} : vector<2x10x128xf32> to vector<2x8x128xf32>
    %41 = vector.shape_cast %40 : vector<2x8x128xf32> to vector<16x128xf32>
    %42 = arith.truncf %41 : vector<16x128xf32> to vector<16x128xbf16>
    %c0_16 = arith.constant 0 : index
    %c0_17 = arith.constant 0 : index
    %c0_18 = arith.constant 0 : index
    %43 = vector.load %arg4[%c0_16, %c0_17, %c0_18] : memref<3x128x256xbf16, #tpu.memory_space<vmem>>, vector<1x128x256xbf16>
    %44 = vector.shape_cast %43 : vector<1x128x256xbf16> to vector<128x256xbf16>
    %cst_19 = arith.constant dense<0.000000e+00> : vector<16x256xf32>
    %45 = tpu.matmul %42, %44, %cst_19 {dimension_numbers = #tpu.dot_dimension_numbers<[1], [0], [0], [1], [0, 0, 1, 1], [], []>} : vector<16x128xbf16>, vector<128x256xbf16>, vector<16x256xf32> -> vector<16x256xf32>
    %46 = vector.extract_strided_slice %39 {offsets = [0, 1, 0], sizes = [2, 8, 128], strides = [1, 1, 1]} : vector<2x10x128xf32> to vector<2x8x128xf32>
    %47 = vector.shape_cast %46 : vector<2x8x128xf32> to vector<16x128xf32>
    %48 = arith.truncf %47 : vector<16x128xf32> to vector<16x128xbf16>
    %c1_20 = arith.constant 1 : index
    %c0_21 = arith.constant 0 : index
    %c0_22 = arith.constant 0 : index
    %49 = vector.load %arg4[%c1_20, %c0_21, %c0_22] : memref<3x128x256xbf16, #tpu.memory_space<vmem>>, vector<1x128x256xbf16>
    %50 = vector.shape_cast %49 : vector<1x128x256xbf16> to vector<128x256xbf16>
    %cst_23 = arith.constant dense<0.000000e+00> : vector<16x256xf32>
    %51 = tpu.matmul %48, %50, %cst_23 {dimension_numbers = #tpu.dot_dimension_numbers<[1], [0], [0], [1], [0, 0, 1, 1], [], []>} : vector<16x128xbf16>, vector<128x256xbf16>, vector<16x256xf32> -> vector<16x256xf32>
    %52 = arith.addf %45, %51 : vector<16x256xf32>
    %53 = vector.extract_strided_slice %39 {offsets = [0, 2, 0], sizes = [2, 8, 128], strides = [1, 1, 1]} : vector<2x10x128xf32> to vector<2x8x128xf32>
    %54 = vector.shape_cast %53 : vector<2x8x128xf32> to vector<16x128xf32>
    %55 = arith.truncf %54 : vector<16x128xf32> to vector<16x128xbf16>
    %c2_24 = arith.constant 2 : index
    %c0_25 = arith.constant 0 : index
    %c0_26 = arith.constant 0 : index
    %56 = vector.load %arg4[%c2_24, %c0_25, %c0_26] : memref<3x128x256xbf16, #tpu.memory_space<vmem>>, vector<1x128x256xbf16>
    %57 = vector.shape_cast %56 : vector<1x128x256xbf16> to vector<128x256xbf16>
    %cst_27 = arith.constant dense<0.000000e+00> : vector<16x256xf32>
    %58 = tpu.matmul %55, %57, %cst_27 {dimension_numbers = #tpu.dot_dimension_numbers<[1], [0], [0], [1], [0, 0, 1, 1], [], []>} : vector<16x128xbf16>, vector<128x256xbf16>, vector<16x256xf32> -> vector<16x256xf32>
    %59 = arith.addf %52, %58 : vector<16x256xf32>
    %60 = vector.extract_strided_slice %59 {offsets = [0, 0], sizes = [16, 128], strides = [1, 1]} : vector<16x256xf32> to vector<16x128xf32>
    %61 = vector.extract_strided_slice %59 {offsets = [0, 128], sizes = [16, 128], strides = [1, 1]} : vector<16x256xf32> to vector<16x128xf32>
    %62 = arith.maximumf %60, %61 : vector<16x128xf32>
    %63 = vector.shape_cast %62 : vector<16x128xf32> to vector<8x2x128xf32>
    %64 = vector.extract_strided_slice %63 {offsets = [0, 0, 0], sizes = [8, 1, 128], strides = [1, 1, 1]} : vector<8x2x128xf32> to vector<8x1x128xf32>
    %65 = vector.shape_cast %64 : vector<8x1x128xf32> to vector<8x128xf32>
    %66 = vector.extract_strided_slice %63 {offsets = [0, 1, 0], sizes = [8, 1, 128], strides = [1, 1, 1]} : vector<8x2x128xf32> to vector<8x1x128xf32>
    %67 = vector.shape_cast %66 : vector<8x1x128xf32> to vector<8x128xf32>
    %68 = arith.maximumf %65, %67 : vector<8x128xf32>
    %c0_28 = arith.constant 0 : index
    %c0_29 = arith.constant 0 : index
    %69 = vector.load %arg5[%c0_28, %c0_29] : memref<1x128xf32, #tpu.memory_space<vmem>>, vector<1x128xf32>
    %70 = vector.broadcast %69 : vector<1x128xf32> to vector<8x128xf32>
    %71 = arith.addf %68, %70 : vector<8x128xf32>
    %cst_30 = arith.constant 0.000000e+00 : f32
    %72 = vector.broadcast %cst_30 : f32 to vector<8x128xf32>
    %73 = arith.maximumf %71, %72 : vector<8x128xf32>
    %74 = vector.shape_cast %73 : vector<8x128xf32> to vector<2x4x128xf32>
    %75 = vector.extract_strided_slice %74 {offsets = [0, 0, 0], sizes = [2, 1, 128], strides = [1, 1, 1]} : vector<2x4x128xf32> to vector<2x1x128xf32>
    %76 = vector.shape_cast %75 : vector<2x1x128xf32> to vector<2x128xf32>
    %77 = vector.extract_strided_slice %74 {offsets = [0, 1, 0], sizes = [2, 1, 128], strides = [1, 1, 1]} : vector<2x4x128xf32> to vector<2x1x128xf32>
    %78 = vector.shape_cast %77 : vector<2x1x128xf32> to vector<2x128xf32>
    %79 = vector.extract_strided_slice %74 {offsets = [0, 2, 0], sizes = [2, 1, 128], strides = [1, 1, 1]} : vector<2x4x128xf32> to vector<2x1x128xf32>
    %80 = vector.shape_cast %79 : vector<2x1x128xf32> to vector<2x128xf32>
    %81 = vector.extract_strided_slice %74 {offsets = [0, 3, 0], sizes = [2, 1, 128], strides = [1, 1, 1]} : vector<2x4x128xf32> to vector<2x1x128xf32>
    %82 = vector.shape_cast %81 : vector<2x1x128xf32> to vector<2x128xf32>
    %83 = tpu.concatenate %76, %78, %80, %82 in 1 : vector<2x128xf32>, vector<2x128xf32>, vector<2x128xf32>, vector<2x128xf32> -> vector<2x512xf32>
    %84 = arith.truncf %83 : vector<2x512xf32> to vector<2x512xbf16>
    %c0_31 = arith.constant 0 : index
    %c0_32 = arith.constant 0 : index
    %85 = vector.load %arg6[%c0_31, %c0_32] : memref<512x128xbf16, #tpu.memory_space<vmem>>, vector<512x128xbf16>
    %cst_33 = arith.constant dense<0.000000e+00> : vector<2x128xf32>
    %86 = tpu.matmul %84, %85, %cst_33 {dimension_numbers = #tpu.dot_dimension_numbers<[1], [0], [0], [1], [0, 0, 1, 1], [], []>} : vector<2x512xbf16>, vector<512x128xbf16>, vector<2x128xf32> -> vector<2x128xf32>
    %c0_34 = arith.constant 0 : index
    %c0_35 = arith.constant 0 : index
    %87 = vector.load %arg7[%c0_34, %c0_35] : memref<1x128xf32, #tpu.memory_space<vmem>>, vector<1x128xf32>
    %88 = vector.broadcast %87 : vector<1x128xf32> to vector<2x128xf32>
    %89 = arith.addf %86, %88 : vector<2x128xf32>
    %90 = arith.truncf %89 : vector<2x128xf32> to vector<2x128xbf16>
    %c0_36 = arith.constant 0 : index
    %c0_37 = arith.constant 0 : index
    %91 = vector.load %arg8[%c0_36, %c0_37] : memref<128x512xbf16, #tpu.memory_space<vmem>>, vector<128x512xbf16>
    %cst_38 = arith.constant dense<0.000000e+00> : vector<2x512xf32>
    %92 = tpu.matmul %90, %91, %cst_38 {dimension_numbers = #tpu.dot_dimension_numbers<[1], [0], [0], [1], [0, 0, 1, 1], [], []>} : vector<2x128xbf16>, vector<128x512xbf16>, vector<2x512xf32> -> vector<2x512xf32>
    %c0_39 = arith.constant 0 : index
    %c0_40 = arith.constant 0 : index
    %93 = vector.load %arg9[%c0_39, %c0_40] : memref<1x512xf32, #tpu.memory_space<vmem>>, vector<1x512xf32>
    %94 = vector.broadcast %93 : vector<1x512xf32> to vector<2x512xf32>
    %95 = arith.addf %92, %94 : vector<2x512xf32>
    %96 = vector.extract_strided_slice %95 {offsets = [0, 0], sizes = [2, 128], strides = [1, 1]} : vector<2x512xf32> to vector<2x128xf32>
    %97 = vector.shape_cast %96 : vector<2x128xf32> to vector<2x1x128xf32>
    %98 = vector.extract_strided_slice %95 {offsets = [0, 128], sizes = [2, 128], strides = [1, 1]} : vector<2x512xf32> to vector<2x128xf32>
    %99 = vector.shape_cast %98 : vector<2x128xf32> to vector<2x1x128xf32>
    %100 = vector.extract_strided_slice %95 {offsets = [0, 256], sizes = [2, 128], strides = [1, 1]} : vector<2x512xf32> to vector<2x128xf32>
    %101 = vector.shape_cast %100 : vector<2x128xf32> to vector<2x1x128xf32>
    %102 = vector.extract_strided_slice %95 {offsets = [0, 384], sizes = [2, 128], strides = [1, 1]} : vector<2x512xf32> to vector<2x128xf32>
    %103 = vector.shape_cast %102 : vector<2x128xf32> to vector<2x1x128xf32>
    %104 = tpu.concatenate %97, %99, %101, %103 in 1 : vector<2x1x128xf32>, vector<2x1x128xf32>, vector<2x1x128xf32>, vector<2x1x128xf32> -> vector<2x4x128xf32>
    %cst_41 = arith.constant 0.000000e+00 : f32
    %105 = vector.broadcast %cst_41 : f32 to vector<2x1x128xf32>
    %106 = tpu.concatenate %105, %104, %105 in 1 : vector<2x1x128xf32>, vector<2x4x128xf32>, vector<2x1x128xf32> -> vector<2x6x128xf32>
    %107 = vector.extract_strided_slice %106 {offsets = [0, 1, 0], sizes = [2, 4, 128], strides = [1, 1, 1]} : vector<2x6x128xf32> to vector<2x4x128xf32>
    %108 = vector.shape_cast %107 : vector<2x4x128xf32> to vector<8x128xf32>
    %109 = arith.truncf %108 : vector<8x128xf32> to vector<8x128xbf16>
    %110 = vector.extract_strided_slice %106 {offsets = [0, 2, 0], sizes = [2, 4, 128], strides = [1, 1, 1]} : vector<2x6x128xf32> to vector<2x4x128xf32>
    %111 = vector.shape_cast %110 : vector<2x4x128xf32> to vector<8x128xf32>
    %112 = arith.truncf %111 : vector<8x128xf32> to vector<8x128xbf16>
    %c0_42 = arith.constant 0 : index
    %c0_43 = arith.constant 0 : index
    %113 = vector.load %arg10[%c0_42, %c0_43] : memref<128x512xbf16, #tpu.memory_space<vmem>>, vector<128x512xbf16>
    %cst_44 = arith.constant dense<0.000000e+00> : vector<8x512xf32>
    %114 = tpu.matmul %109, %113, %cst_44 {dimension_numbers = #tpu.dot_dimension_numbers<[1], [0], [0], [1], [0, 0, 1, 1], [], []>} : vector<8x128xbf16>, vector<128x512xbf16>, vector<8x512xf32> -> vector<8x512xf32>
    %115 = vector.extract_strided_slice %114 {offsets = [0, 256], sizes = [8, 256], strides = [1, 1]} : vector<8x512xf32> to vector<8x256xf32>
    %c0_45 = arith.constant 0 : index
    %c0_46 = arith.constant 0 : index
    %116 = vector.load %arg11[%c0_45, %c0_46] : memref<128x256xbf16, #tpu.memory_space<vmem>>, vector<128x256xbf16>
    %cst_47 = arith.constant dense<0.000000e+00> : vector<8x256xf32>
    %117 = tpu.matmul %112, %116, %cst_47 {dimension_numbers = #tpu.dot_dimension_numbers<[1], [0], [0], [1], [0, 0, 1, 1], [], []>} : vector<8x128xbf16>, vector<128x256xbf16>, vector<8x256xf32> -> vector<8x256xf32>
    %118 = arith.addf %115, %117 : vector<8x256xf32>
    %c0_48 = arith.constant 0 : index
    %c0_49 = arith.constant 0 : index
    %119 = vector.load %arg12[%c0_48, %c0_49] : memref<1x256xf32, #tpu.memory_space<vmem>>, vector<1x256xf32>
    %120 = vector.extract_strided_slice %114 {offsets = [0, 0], sizes = [8, 256], strides = [1, 1]} : vector<8x512xf32> to vector<8x256xf32>
    %121 = vector.broadcast %119 : vector<1x256xf32> to vector<8x256xf32>
    %122 = arith.addf %120, %121 : vector<8x256xf32>
    %cst_50 = arith.constant 0.000000e+00 : f32
    %123 = vector.broadcast %cst_50 : f32 to vector<8x256xf32>
    %124 = arith.maximumf %122, %123 : vector<8x256xf32>
    %125 = vector.broadcast %119 : vector<1x256xf32> to vector<8x256xf32>
    %126 = arith.addf %118, %125 : vector<8x256xf32>
    %cst_51 = arith.constant 0.000000e+00 : f32
    %127 = vector.broadcast %cst_51 : f32 to vector<8x256xf32>
    %128 = arith.maximumf %126, %127 : vector<8x256xf32>
    %129 = vector.shape_cast %124 : vector<8x256xf32> to vector<8x1x256xf32>
    %130 = vector.shape_cast %128 : vector<8x256xf32> to vector<8x1x256xf32>
    %131 = tpu.concatenate %129, %130 in 1 : vector<8x1x256xf32>, vector<8x1x256xf32> -> vector<8x2x256xf32>
    %132 = vector.shape_cast %131 : vector<8x2x256xf32> to vector<2x8x256xf32>
    %cst_52 = arith.constant 0.000000e+00 : f32
    %133 = vector.broadcast %cst_52 : f32 to vector<2x1x256xf32>
    %134 = tpu.concatenate %133, %132, %133 in 1 : vector<2x1x256xf32>, vector<2x8x256xf32>, vector<2x1x256xf32> -> vector<2x10x256xf32>
    %135 = vector.extract_strided_slice %134 {offsets = [0, 1, 0], sizes = [2, 8, 256], strides = [1, 1, 1]} : vector<2x10x256xf32> to vector<2x8x256xf32>
    %136 = vector.shape_cast %135 : vector<2x8x256xf32> to vector<16x256xf32>
    %137 = arith.truncf %136 : vector<16x256xf32> to vector<16x256xbf16>
    %138 = vector.extract_strided_slice %134 {offsets = [0, 2, 0], sizes = [2, 8, 256], strides = [1, 1, 1]} : vector<2x10x256xf32> to vector<2x8x256xf32>
    %139 = vector.shape_cast %138 : vector<2x8x256xf32> to vector<16x256xf32>
    %140 = arith.truncf %139 : vector<16x256xf32> to vector<16x256xbf16>
    %c0_53 = arith.constant 0 : index
    %c0_54 = arith.constant 0 : index
    %141 = vector.load %arg13[%c0_53, %c0_54] : memref<256x512xbf16, #tpu.memory_space<vmem>>, vector<256x512xbf16>
    %cst_55 = arith.constant dense<0.000000e+00> : vector<16x512xf32>
    %142 = tpu.matmul %137, %141, %cst_55 {dimension_numbers = #tpu.dot_dimension_numbers<[1], [0], [0], [1], [0, 0, 1, 1], [], []>} : vector<16x256xbf16>, vector<256x512xbf16>, vector<16x512xf32> -> vector<16x512xf32>
    %143 = vector.extract_strided_slice %142 {offsets = [0, 256], sizes = [16, 256], strides = [1, 1]} : vector<16x512xf32> to vector<16x256xf32>
    %c0_56 = arith.constant 0 : index
    %c0_57 = arith.constant 0 : index
    %144 = vector.load %arg14[%c0_56, %c0_57] : memref<256x256xbf16, #tpu.memory_space<vmem>>, vector<256x256xbf16>
    %cst_58 = arith.constant dense<0.000000e+00> : vector<16x256xf32>
    %145 = tpu.matmul %140, %144, %cst_58 {dimension_numbers = #tpu.dot_dimension_numbers<[1], [0], [0], [1], [0, 0, 1, 1], [], []>} : vector<16x256xbf16>, vector<256x256xbf16>, vector<16x256xf32> -> vector<16x256xf32>
    %146 = arith.addf %143, %145 : vector<16x256xf32>
    %c0_59 = arith.constant 0 : index
    %c0_60 = arith.constant 0 : index
    %147 = vector.load %arg15[%c0_59, %c0_60] : memref<1x256xf32, #tpu.memory_space<vmem>>, vector<1x256xf32>
    %148 = vector.extract_strided_slice %142 {offsets = [0, 0], sizes = [16, 256], strides = [1, 1]} : vector<16x512xf32> to vector<16x256xf32>
    %149 = vector.broadcast %147 : vector<1x256xf32> to vector<16x256xf32>
    %150 = arith.addf %148, %149 : vector<16x256xf32>
    %cst_61 = arith.constant 0.000000e+00 : f32
    %151 = vector.broadcast %cst_61 : f32 to vector<16x256xf32>
    %152 = arith.maximumf %150, %151 : vector<16x256xf32>
    %153 = vector.broadcast %147 : vector<1x256xf32> to vector<16x256xf32>
    %154 = arith.addf %146, %153 : vector<16x256xf32>
    %cst_62 = arith.constant 0.000000e+00 : f32
    %155 = vector.broadcast %cst_62 : f32 to vector<16x256xf32>
    %156 = arith.maximumf %154, %155 : vector<16x256xf32>
    %157 = vector.shape_cast %152 : vector<16x256xf32> to vector<16x1x256xf32>
    %158 = vector.shape_cast %156 : vector<16x256xf32> to vector<16x1x256xf32>
    %159 = tpu.concatenate %157, %158 in 1 : vector<16x1x256xf32>, vector<16x1x256xf32> -> vector<16x2x256xf32>
    %160 = vector.shape_cast %159 : vector<16x2x256xf32> to vector<2x16x256xf32>
    %cst_63 = arith.constant 0.000000e+00 : f32
    %161 = vector.broadcast %cst_63 : f32 to vector<2x1x256xf32>
    %162 = tpu.concatenate %161, %160, %161 in 1 : vector<2x1x256xf32>, vector<2x16x256xf32>, vector<2x1x256xf32> -> vector<2x18x256xf32>
    %163 = vector.extract_strided_slice %162 {offsets = [0, 0, 0], sizes = [2, 16, 256], strides = [1, 1, 1]} : vector<2x18x256xf32> to vector<2x16x256xf32>
    %164 = vector.shape_cast %163 : vector<2x16x256xf32> to vector<32x256xf32>
    %165 = arith.truncf %164 : vector<32x256xf32> to vector<32x256xbf16>
    %c0_64 = arith.constant 0 : index
    %c0_65 = arith.constant 0 : index
    %c0_66 = arith.constant 0 : index
    %166 = vector.load %arg16[%c0_64, %c0_65, %c0_66] : memref<3x256x128xbf16, #tpu.memory_space<vmem>>, vector<1x256x128xbf16>
    %167 = vector.shape_cast %166 : vector<1x256x128xbf16> to vector<256x128xbf16>
    %cst_67 = arith.constant dense<0.000000e+00> : vector<32x128xf32>
    %168 = tpu.matmul %165, %167, %cst_67 {dimension_numbers = #tpu.dot_dimension_numbers<[1], [0], [0], [1], [0, 0, 1, 1], [], []>} : vector<32x256xbf16>, vector<256x128xbf16>, vector<32x128xf32> -> vector<32x128xf32>
    %169 = vector.extract_strided_slice %162 {offsets = [0, 1, 0], sizes = [2, 16, 256], strides = [1, 1, 1]} : vector<2x18x256xf32> to vector<2x16x256xf32>
    %170 = vector.shape_cast %169 : vector<2x16x256xf32> to vector<32x256xf32>
    %171 = arith.truncf %170 : vector<32x256xf32> to vector<32x256xbf16>
    %c1_68 = arith.constant 1 : index
    %c0_69 = arith.constant 0 : index
    %c0_70 = arith.constant 0 : index
    %172 = vector.load %arg16[%c1_68, %c0_69, %c0_70] : memref<3x256x128xbf16, #tpu.memory_space<vmem>>, vector<1x256x128xbf16>
    %173 = vector.shape_cast %172 : vector<1x256x128xbf16> to vector<256x128xbf16>
    %cst_71 = arith.constant dense<0.000000e+00> : vector<32x128xf32>
    %174 = tpu.matmul %171, %173, %cst_71 {dimension_numbers = #tpu.dot_dimension_numbers<[1], [0], [0], [1], [0, 0, 1, 1], [], []>} : vector<32x256xbf16>, vector<256x128xbf16>, vector<32x128xf32> -> vector<32x128xf32>
    %175 = arith.addf %168, %174 : vector<32x128xf32>
    %176 = vector.extract_strided_slice %162 {offsets = [0, 2, 0], sizes = [2, 16, 256], strides = [1, 1, 1]} : vector<2x18x256xf32> to vector<2x16x256xf32>
    %177 = vector.shape_cast %176 : vector<2x16x256xf32> to vector<32x256xf32>
    %178 = arith.truncf %177 : vector<32x256xf32> to vector<32x256xbf16>
    %c2_72 = arith.constant 2 : index
    %c0_73 = arith.constant 0 : index
    %c0_74 = arith.constant 0 : index
    %179 = vector.load %arg16[%c2_72, %c0_73, %c0_74] : memref<3x256x128xbf16, #tpu.memory_space<vmem>>, vector<1x256x128xbf16>
    %180 = vector.shape_cast %179 : vector<1x256x128xbf16> to vector<256x128xbf16>
    %cst_75 = arith.constant dense<0.000000e+00> : vector<32x128xf32>
    %181 = tpu.matmul %178, %180, %cst_75 {dimension_numbers = #tpu.dot_dimension_numbers<[1], [0], [0], [1], [0, 0, 1, 1], [], []>} : vector<32x256xbf16>, vector<256x128xbf16>, vector<32x128xf32> -> vector<32x128xf32>
    %182 = arith.addf %175, %181 : vector<32x128xf32>
    %c0_76 = arith.constant 0 : index
    %c0_77 = arith.constant 0 : index
    %183 = vector.load %arg17[%c0_76, %c0_77] : memref<1x128xf32, #tpu.memory_space<vmem>>, vector<1x128xf32>
    %184 = vector.broadcast %183 : vector<1x128xf32> to vector<32x128xf32>
    %185 = arith.addf %182, %184 : vector<32x128xf32>
    %cst_78 = arith.constant 0.000000e+00 : f32
    %186 = vector.broadcast %cst_78 : f32 to vector<32x128xf32>
    %187 = arith.subf %186, %185 : vector<32x128xf32>
    %188 = math.exp %187 : vector<32x128xf32>
    %cst_79 = arith.constant 1.000000e+00 : f32
    %189 = vector.broadcast %cst_79 : f32 to vector<32x128xf32>
    %190 = arith.addf %189, %188 : vector<32x128xf32>
    %cst_80 = arith.constant 1.000000e+00 : f32
    %191 = vector.broadcast %cst_80 : f32 to vector<32x128xf32>
    %192 = arith.divf %191, %190 : vector<32x128xf32>
    %193 = vector.shape_cast %192 : vector<32x128xf32> to vector<2x16x128xf32>
    %c0_81 = arith.constant 0 : index
    %c0_82 = arith.constant 0 : index
    %c0_83 = arith.constant 0 : index
    %194 = vector.load %arg18[%c0_81, %c0_82, %c0_83] : memref<2x16x128xf32, #tpu.memory_space<vmem>>, vector<2x16x128xf32>
    tpu.vector_store %arg18[%c0_81, %c0_82, %c0_83], %193 {strides = array<i32>} : memref<2x16x128xf32, #tpu.memory_space<vmem>>, vector<2x16x128xf32>,
    return
  }
  func.func @transform_0(%arg0: i32) -> (i32, i32, i32) {
    %c0_i32 = arith.constant 0 : i32
    %c0_i32_0 = arith.constant 0 : i32
    %c0_i32_1 = arith.constant 0 : i32
    return %arg0, %c0_i32, %c0_i32_0 : i32, i32, i32
  }
  func.func @transform_1(%arg0: i32) -> (i32, i32, i32) {
    %c0_i32 = arith.constant 0 : i32
    %c0_i32_0 = arith.constant 0 : i32
    %c0_i32_1 = arith.constant 0 : i32
    %c0_i32_2 = arith.constant 0 : i32
    return %c0_i32, %c0_i32_0, %c0_i32_1 : i32, i32, i32
  }
  func.func @transform_2(%arg0: i32) -> (i32, i32) {
    %c0_i32 = arith.constant 0 : i32
    %c0_i32_0 = arith.constant 0 : i32
    %c0_i32_1 = arith.constant 0 : i32
    return %c0_i32, %c0_i32_0 : i32, i32
  }
  func.func @transform_3(%arg0: i32) -> (i32, i32, i32) {
    %c0_i32 = arith.constant 0 : i32
    %c0_i32_0 = arith.constant 0 : i32
    %c0_i32_1 = arith.constant 0 : i32
    %c0_i32_2 = arith.constant 0 : i32
    return %c0_i32, %c0_i32_0, %c0_i32_1 : i32, i32, i32
  }
  func.func @transform_4(%arg0: i32) -> (i32, i32) {
    %c0_i32 = arith.constant 0 : i32
    %c0_i32_0 = arith.constant 0 : i32
    %c0_i32_1 = arith.constant 0 : i32
    return %c0_i32, %c0_i32_0 : i32, i32
  }
  func.func @transform_5(%arg0: i32) -> (i32, i32) {
    %c0_i32 = arith.constant 0 : i32
    %c0_i32_0 = arith.constant 0 : i32
    %c0_i32_1 = arith.constant 0 : i32
    return %c0_i32, %c0_i32_0 : i32, i32
  }
  func.func @transform_6(%arg0: i32) -> (i32, i32) {
    %c0_i32 = arith.constant 0 : i32
    %c0_i32_0 = arith.constant 0 : i32
    %c0_i32_1 = arith.constant 0 : i32
    return %c0_i32, %c0_i32_0 : i32, i32
  }
  func.func @transform_7(%arg0: i32) -> (i32, i32) {
    %c0_i32 = arith.constant 0 : i32
    %c0_i32_0 = arith.constant 0 : i32
    %c0_i32_1 = arith.constant 0 : i32
    return %c0_i32, %c0_i32_0 : i32, i32
  }
  func.func @transform_8(%arg0: i32) -> (i32, i32) {
    %c0_i32 = arith.constant 0 : i32
    %c0_i32_0 = arith.constant 0 : i32
    %c0_i32_1 = arith.constant 0 : i32
    return %c0_i32, %c0_i32_0 : i32, i32
  }
  func.func @transform_9(%arg0: i32) -> (i32, i32) {
    %c0_i32 = arith.constant 0 : i32
    %c0_i32_0 = arith.constant 0 : i32
    %c0_i32_1 = arith.constant 0 : i32
    return %c0_i32, %c0_i32_0 : i32, i32
  }
  func.func @transform_10(%arg0: i32) -> (i32, i32) {
    %c0_i32 = arith.constant 0 : i32
    %c0_i32_0 = arith.constant 0 : i32
    %c0_i32_1 = arith.constant 0 : i32
    return %c0_i32, %c0_i32_0 : i32, i32
  }
  func.func @transform_11(%arg0: i32) -> (i32, i32) {
    %c0_i32 = arith.constant 0 : i32
    %c0_i32_0 = arith.constant 0 : i32
    %c0_i32_1 = arith.constant 0 : i32
    return %c0_i32, %c0_i32_0 : i32, i32
  }
  func.func @transform_12(%arg0: i32) -> (i32, i32) {
    %c0_i32 = arith.constant 0 : i32
    %c0_i32_0 = arith.constant 0 : i32
    %c0_i32_1 = arith.constant 0 : i32
    return %c0_i32, %c0_i32_0 : i32, i32
  }
  func.func @transform_13(%arg0: i32) -> (i32, i32) {
    %c0_i32 = arith.constant 0 : i32
    %c0_i32_0 = arith.constant 0 : i32
    %c0_i32_1 = arith.constant 0 : i32
    return %c0_i32, %c0_i32_0 : i32, i32
  }
  func.func @transform_14(%arg0: i32) -> (i32, i32) {
    %c0_i32 = arith.constant 0 : i32
    %c0_i32_0 = arith.constant 0 : i32
    %c0_i32_1 = arith.constant 0 : i32
    return %c0_i32, %c0_i32_0 : i32, i32
  }
  func.func @transform_15(%arg0: i32) -> (i32, i32, i32) {
    %c0_i32 = arith.constant 0 : i32
    %c0_i32_0 = arith.constant 0 : i32
    %c0_i32_1 = arith.constant 0 : i32
    %c0_i32_2 = arith.constant 0 : i32
    return %c0_i32, %c0_i32_0, %c0_i32_1 : i32, i32, i32
  }
  func.func @transform_16(%arg0: i32) -> (i32, i32) {
    %c0_i32 = arith.constant 0 : i32
    %c0_i32_0 = arith.constant 0 : i32
    %c0_i32_1 = arith.constant 0 : i32
    return %c0_i32, %c0_i32_0 : i32, i32
  }
  func.func @transform_17(%arg0: i32) -> (i32, i32, i32) {
    %c0_i32 = arith.constant 0 : i32
    %c0_i32_0 = arith.constant 0 : i32
    %c0_i32_1 = arith.constant 0 : i32
    return %arg0, %c0_i32, %c0_i32_0 : i32, i32, i32
  }
}

</mosaic_0001>

<bundles_post_ra>
// kernel: forward.1
= control target key start
LH: loop header
LB: loop body
LE: loop exit
PB: predicated region body
PF: predicated region fallthrough
CT: control target
= control target key end

     0   :  { %s8181_s0 = inlined_call_operand.vmem [shape: f32[2,16,128], index: 0, kind: input, shape index: {}]   ;;  %s8182_s1 = inlined_call_operand.hbm [shape: bf16[3,128,256], index: 1, kind: input, shape index: {}]   ;;  %s8183_s2 = inlined_call_operand.vmem [shape: f32[1,128], index: 2, kind: input, shape index: {}]   ;;  %s8184_s3 = inlined_call_operand.hbm [shape: bf16[3,128,256], index: 3, kind: input, shape index: {}]   ;;  %s8185_s4 = inlined_call_operand.vmem [shape: f32[1,128], index: 4, kind: input, shape index: {}]   ;;  %s8186_s5 = inlined_call_operand.vmem [shape: bf16[512,128], index: 5, kind: input, shape index: {}]   ;;  %s8187_s6 = inlined_call_operand.vmem [shape: f32[1,128], index: 6, kind: input, shape index: {}]   ;;  %s8188_s7 = inlined_call_operand.hbm [shape: bf16[128,512], index: 7, kind: input, shape index: {}]   ;;  %s8189_s8 = inlined_call_operand.vmem [shape: f32[1,512], index: 8, kind: input, shape index: {}]   ;;  %s8190_s9 = inlined_call_operand.hbm [shape: bf16[128,512], index: 9, kind: input, shape index: {}]   ;;  %s8191_s10 = inlined_call_operand.hbm [shape: bf16[128,256], index: 10, kind: input, shape index: {}]   ;;  %s8192_s11 = inlined_call_operand.vmem [shape: f32[1,256], index: 11, kind: input, shape index: {}]   ;;  %s8193_s12 = inlined_call_operand.vmem [shape: bf16[256,512], index: 12, kind: input, shape index: {}]   ;;  %s8194_s13 = inlined_call_operand.hbm [shape: bf16[256,256], index: 13, kind: input, shape index: {}]   ;;  %s8195_s14 = inlined_call_operand.vmem [shape: f32[1,256], index: 14, kind: input, shape index: {}]   ;;  %s8196_s15 = inlined_call_operand.hbm [shape: bf16[3,256,128], index: 15, kind: input, shape index: {}]   ;;  %s8197_s16 = inlined_call_operand.vmem [shape: f32[1,128], index: 16, kind: input, shape index: {}]   ;;  %s8198_s17 = inlined_call_operand.vmem [shape: f32[2,16,128], index: 17, kind: output, shape index: {}]  }
   0x1   :  { %8203 = sst [smem:[#allocation17_spill]] %s8181_s0 }
   0x2   :  { %8204 = sst [smem:[#allocation18_spill]] %s8182_s1 }
   0x3   :  { %8205 = sst [smem:[#allocation19_spill]] %s8198_s17 }
   0x4   :  { %22 = vsyncpa [#allocation3], 0 }
   0x5   :  { %23 = vsyncpa [#allocation5], 0 }
   0x6   :  { %24 = vsyncpa [#allocation8], 0 }
   0x7   :  { %25 = vsyncpa [#allocation11], 0  ;;  %s6806_s24 = smov [#allocation4]   ;;  %s6644_s28 = scalar_lea.hbm %s8184_s3, 6144 }
   0x8   :  { %s47_s25 = sshll.u32 %s6806_s24, 4  ;;  %p6645_p0 = scmp.ne.s32.totalorder %s8184_s3, %s6644_s28  ;;  %s48_s25 = int_to_ptr.vmem [resolvable:$true] %s47_s25 }
   0x9   :  { %p6648_p1 = scmp.lt.u32.totalorder %s6644_s28, %s8184_s3 }
   0xb   :  { %p6650_p2 = pnand %p6648_p1, %p6645_p0 }
   0xd   :  { %6653 = shalt.err (!%p6650_p2)
}
   0xe   :  { %s6654_s19 = scalar_lea.vmem %s48_s25, 6144  ;;  %p6659_p4 = scmp.lt.s32.totalorder %s48_s25, %s48_s25 }
   0xf   :  { %p6655_p3 = scmp.ne.s32.totalorder %s48_s25, %s6654_s19  ;;  %p6660_p5 = scmp.lt.s32.totalorder %s6654_s19, %s6654_s19 }
  0x11   :  { %p6661_p6 = por %p6660_p5, %p6659_p4 }
  0x13   :  { %p6662_p7 = pnand %p6661_p6, %p6655_p3 }
  0x15   :  { %6665 = shalt.err (!%p6662_p7)
}
  0x16   :  { %s6807_s1 = smov 128   ;;  %s6808_s20 = smov 8  }
  0x17   :  { %53 = dma.hbm_to_vmem [thread:$0]  %s8184_s3, 6144, %s48_s25, [#allocation5], %s6807_s1, %s6807_s1, %s6808_s20  }
  0x18   :  { %s6809_s23 = smov [#allocation7]   ;;  %s6810_s26 = smov [#allocation10]  }
  0x19   :  { %s79_s24 = sshll.u32 %s6809_s23, 4  ;;  %s107_s27 = sshll.u32 %s6810_s26, 4  ;;  %s80_s24 = int_to_ptr.vmem [resolvable:$true] %s79_s24  ;;  %s108_s27 = int_to_ptr.vmem [resolvable:$true] %s107_s27 }
  0x1a   :  { %s6666_s0 = scalar_lea.hbm %s8190_s9, 4096 }
  0x1b   :  { %p6667_p8 = scmp.ne.s32.totalorder %s8190_s9, %s6666_s0  ;;  %p6670_p9 = scmp.lt.u32.totalorder %s6666_s0, %s8190_s9 }
  0x1d   :  { %p6672_p10 = pnand %p6670_p9, %p6667_p8 }
  0x1f   :  { %6675 = shalt.err (!%p6672_p10)
}
  0x20   :  { %s6676_s3 = scalar_lea.vmem %s80_s24, 4096  ;;  %p6681_p12 = scmp.lt.s32.totalorder %s80_s24, %s80_s24 }
  0x21   :  { %p6677_p11 = scmp.ne.s32.totalorder %s80_s24, %s6676_s3  ;;  %p6682_p13 = scmp.lt.s32.totalorder %s6676_s3, %s6676_s3 }
  0x23   :  { %p6683_p0 = por %p6682_p13, %p6681_p12 }
  0x25   :  { %p6684_p1 = pnand %p6683_p0, %p6677_p11 }
  0x27   :  { %6687 = shalt.err (!%p6684_p1)
}
  0x28   :  { %s8202_s25 = smov 256   ;;  %s6812_s21 = smov 16  }
  0x29   :  { %85 = dma.hbm_to_vmem [thread:$0]  %s8190_s9, 4096, %s80_s24, [#allocation8], %s8202_s25, %s8202_s25, %s6812_s21  }
  0x2a   :  { %s6688_s28 = scalar_lea.hbm %s8194_s13, 4096 }
  0x2b   :  { %p6689_p2 = scmp.ne.s32.totalorder %s8194_s13, %s6688_s28  ;;  %p6692_p3 = scmp.lt.u32.totalorder %s6688_s28, %s8194_s13 }
  0x2d   :  { %p6694_p4 = pnand %p6692_p3, %p6689_p2 }
  0x2f   :  { %6697 = shalt.err (!%p6694_p4)
}
  0x30   :  { %s6698_s19 = scalar_lea.vmem %s108_s27, 4096  ;;  %p6703_p6 = scmp.lt.s32.totalorder %s108_s27, %s108_s27 }
  0x31   :  { %p6699_p5 = scmp.ne.s32.totalorder %s108_s27, %s6698_s19  ;;  %p6704_p7 = scmp.lt.s32.totalorder %s6698_s19, %s6698_s19 }
  0x33   :  { %p6705_p8 = por %p6704_p7, %p6703_p6 }
  0x35   :  { %p6706_p9 = pnand %p6705_p8, %p6699_p5 }
  0x37   :  { %6709 = shalt.err (!%p6706_p9)
}
  0x38   :  { %113 = dma.hbm_to_vmem [thread:$0]  %s8194_s13, 4096, %s108_s27, [#allocation11], %s6807_s1, %s6807_s1, %s6808_s20  }
  0x39   :  { %s6813_s3 = smov [#allocation2]   ;;  %s6814_s23 = smov [#allocation6]  }
  0x3a   :  { %s33_s22 = sshll.u32 %s6813_s3, 4  ;;  %s65_s17 = sshll.u32 %s6814_s23, 4  ;;  %s34_s22 = int_to_ptr.vmem [resolvable:$true] %s33_s22  ;;  %s66_s17 = int_to_ptr.vmem [resolvable:$true] %s65_s17 }
  0x3b   :  { %s8206_s29 = sld [smem:[#allocation18_spill]] }
  0x41   :  { %s6710_s0 = scalar_lea.hbm %s8206_s29, 6144 }
  0x42   :  { %p6711_p10 = scmp.ne.s32.totalorder %s8206_s29, %s6710_s0  ;;  %p6714_p11 = scmp.lt.u32.totalorder %s6710_s0, %s8206_s29 }
  0x44   :  { %p6716_p12 = pnand %p6714_p11, %p6711_p10 }
  0x46   :  { %6719 = shalt.err (!%p6716_p12)
}
  0x47   :  { %s6720_s13 = scalar_lea.vmem %s34_s22, 6144  ;;  %p6725_p0 = scmp.lt.s32.totalorder %s34_s22, %s34_s22 }
  0x48   :  { %p6721_p13 = scmp.ne.s32.totalorder %s34_s22, %s6720_s13  ;;  %p6726_p1 = scmp.lt.s32.totalorder %s6720_s13, %s6720_s13 }
  0x4a   :  { %p6727_p2 = por %p6726_p1, %p6725_p0 }
  0x4c   :  { %p6728_p3 = pnand %p6727_p2, %p6721_p13 }
  0x4e   :  { %6731 = shalt.err (!%p6728_p3)
}
  0x4f   :  { %39 = dma.hbm_to_vmem [thread:$0]  %s8206_s29, 6144, %s34_s22, [#allocation3], %s6807_s1, %s6807_s1, %s6808_s20  }
  0x50   :  { %s6732_s3 = scalar_lea.hbm %s8188_s7, 4096 }
  0x51   :  { %p6733_p4 = scmp.ne.s32.totalorder %s8188_s7, %s6732_s3  ;;  %p6736_p5 = scmp.lt.u32.totalorder %s6732_s3, %s8188_s7 }
  0x53   :  { %p6738_p6 = pnand %p6736_p5, %p6733_p4 }
  0x55   :  { %6741 = shalt.err (!%p6738_p6)
}
  0x56   :  { %s6742_s30 = scalar_lea.vmem %s66_s17, 4096  ;;  %p6747_p8 = scmp.lt.s32.totalorder %s66_s17, %s66_s17 }
  0x57   :  { %p6743_p7 = scmp.ne.s32.totalorder %s66_s17, %s6742_s30  ;;  %p6748_p9 = scmp.lt.s32.totalorder %s6742_s30, %s6742_s30 }
  0x59   :  { %p6749_p10 = por %p6748_p9, %p6747_p8 }
  0x5b   :  { %p6750_p11 = pnand %p6749_p10, %p6743_p7 }
  0x5d   :  { %6753 = shalt.err (!%p6750_p11)
}
  0x5e   :  { %s8207_s22 = smov 256   ;;  %s6815_s19 = smov [#allocation9]  }
  0x5f   :  { %71 = dma.hbm_to_vmem [thread:$0]  %s8188_s7, 4096, %s66_s17, [#allocation5], %s8207_s22, %s8207_s22, %s6812_s21  }
  0x60   :  { %s91_s13 = sshll.u32 %s6815_s19, 4  ;;  %s6816_s27 = smov [#allocation12]   ;;  %s92_s13 = int_to_ptr.vmem [resolvable:$true] %s91_s13 }
  0x61   :  { %s121_s9 = sshll.u32 %s6816_s27, 4  ;;  %s6754_s3 = scalar_lea.hbm %s8191_s10, 2048  ;;  %s122_s9 = int_to_ptr.vmem [resolvable:$true] %s121_s9 }
  0x62   :  { %p6755_p12 = scmp.ne.s32.totalorder %s8191_s10, %s6754_s3  ;;  %p6758_p13 = scmp.lt.u32.totalorder %s6754_s3, %s8191_s10 }
  0x64   :  { %p6760_p0 = pnand %p6758_p13, %p6755_p12 }
  0x66   :  { %6763 = shalt.err (!%p6760_p0)
}
  0x67   :  { %s6764_s7 = scalar_lea.vmem %s92_s13, 2048  ;;  %p6769_p2 = scmp.lt.s32.totalorder %s92_s13, %s92_s13 }
  0x68   :  { %p6765_p1 = scmp.ne.s32.totalorder %s92_s13, %s6764_s7  ;;  %p6770_p3 = scmp.lt.s32.totalorder %s6764_s7, %s6764_s7 }
  0x6a   :  { %p6771_p4 = por %p6770_p3, %p6769_p2 }
  0x6c   :  { %p6772_p5 = pnand %p6771_p4, %p6765_p1 }
  0x6e   :  { %6775 = shalt.err (!%p6772_p5)
}
  0x6f   :  { %97 = dma.hbm_to_vmem [thread:$0]  %s8191_s10, 2048, %s92_s13, [#allocation8], %s6807_s1, %s6807_s1, %s6808_s20  }
  0x70   :  { %s6776_s29 = scalar_lea.hbm %s8196_s15, 6144 }
  0x71   :  { %p6777_p6 = scmp.ne.s32.totalorder %s8196_s15, %s6776_s29  ;;  %p6780_p7 = scmp.lt.u32.totalorder %s6776_s29, %s8196_s15 }
  0x73   :  { %p6782_p8 = pnand %p6780_p7, %p6777_p6 }
  0x75   :  { %6785 = shalt.err (!%p6782_p8)
}
  0x76   :  { %s6786_s25 = scalar_lea.vmem %s122_s9, 6144  ;;  %p6791_p10 = scmp.lt.s32.totalorder %s122_s9, %s122_s9 }
  0x77   :  { %p6787_p9 = scmp.ne.s32.totalorder %s122_s9, %s6786_s25  ;;  %p6792_p11 = scmp.lt.s32.totalorder %s6786_s25, %s6786_s25 }
  0x79   :  { %p6793_p12 = por %p6792_p11, %p6791_p10 }
  0x7b   :  { %p6794_p13 = pnand %p6793_p12, %p6787_p9 }
  0x7d   :  { %6797 = shalt.err (!%p6794_p13)
}
  0x7e   :  { %s6817_s10 = smov 64   ;;  %s6818_s1 = smov 4  }
  0x7f   :  { %127 = dma.hbm_to_vmem [thread:$0]  %s8196_s15, 6144, %s122_s9, [#allocation11], %s6817_s10, %s6817_s10, %s6818_s1  }
  0x80   :  { %6798 = dma.done.wait [#allocation3], 6144  }
  0x81   :  { %6799 = vsyncadd [#allocation3], 4294961152 }
  0x82   :  { %6800 = dma.done.wait [#allocation5], 10240  }
  0x83   :  { %6801 = vsyncadd [#allocation5], 4294957056 }
  0x84   :  { %6802 = dma.done.wait [#allocation8], 6144  }
  0x85   :  { %6803 = vsyncadd [#allocation8], 4294961152 }
  0x86   :  { %6804 = dma.done.wait [#allocation11], 10240  }
  0x87   :  { %6805 = vsyncadd [#allocation11], 4294957056  ;;  %v6819_v0 = vmov 0   ;;  %v6140_v1 = vld [vmem:[#allocation2 + $0x84] ss:$8 sps:$4 sm:$0xff]   ;;  %s8208_s3 = sld [smem:[#allocation17_spill]] }
  0x88   :  { %345 = vmatprep.mubr.bf16.mxu0 %v6819_v0  ;;  %1162 = vmatprep.mubr.bf16.mxu1 %v6819_v0  ;;  %v6142_v2 = vld [vmem:[#allocation2 + $0x80] ss:$8 sps:$4 sm:$0xff]   ;;  %v6143_v3 = vld [vmem:[#allocation2 + $0x94] ss:$8 sps:$4 sm:$0xff]   ;;  %v6145_v4 = vld [vmem:[#allocation2 + $0x90] ss:$8 sps:$4 sm:$0xff]  }
  0x89   :  { %313 = vmatprep.subr.bf16.mxu0 %v6140_v1  ;;  %v6146_v5 = vld [vmem:[#allocation2 + $0xa4] ss:$8 sps:$4 sm:$0xff]   ;;  %v6148_v6 = vld [vmem:[#allocation2 + $0xa0] ss:$8 sps:$4 sm:$0xff]   ;;  %v6149_v7 = vld [vmem:[#allocation2 + $0xb4] ss:$8 sps:$4 sm:$0xff]  }
  0x8a   :  { %314 = vmatpush1.bf16.msra.mxu0 %v6142_v2  ;;  %v6151_v8 = vld [vmem:[#allocation2 + $0xb0] ss:$8 sps:$4 sm:$0xff]   ;;  %v6152_v9 = vld [vmem:[#allocation2 + $0xc4] ss:$8 sps:$4 sm:$0xff]   ;;  %vm160_vm0 = vcmask 1040384   ;;  %vm499_vm1 = vcmask 1045504  }
  0x8b   :  { %315 = vmatprep.subr.bf16.mxu0 %v6143_v3  ;;  %v6154_v14 = vld [vmem:[#allocation2 + $0xc0] ss:$8 sps:$4 sm:$0xff]   ;;  %v6155_v15 = vld [vmem:[#allocation2 + $0xd4] ss:$8 sps:$4 sm:$0xff]   ;;  %v6157_v22 = vld [vmem:[#allocation2 + $0xd0] ss:$8 sps:$4 sm:$0xff]  }
  0x8c   :  { %v6158_v25 = vld [vmem:[#allocation2 + $0xe4] ss:$8 sps:$4 sm:$0xff]   ;;  %v6160_v29 = vld [vmem:[#allocation2 + $0xe0] ss:$8 sps:$4 sm:$0xff]   ;;  %v6161_v35 = vld [vmem:[#allocation2 + $0xf4] ss:$8 sps:$4 sm:$0xff]  }
  0x8d   :  { %v152_v10 = vld [vmem:[%s8208_s3] sm:$0xff]  ;;  %v153_v11 = vld [vmem:[%s8208_s3 + $0x8] sm:$0xff]  ;;  %v154_v27 = vld [vmem:[%s8208_s3 + $0x10] sm:$0xff]  ;;  %vm199_vm2 = vcmask 1046528   ;;  %vm6820_vm4 = vmmov 1   ;;  %vm977_vm6 = vcmask 1042434  }
  0x8e   :  { %316 = vmatpush1.bf16.msra.mxu0 %v6145_v4  ;;  %v7023_v12 = vrot.slane %v152_v10, 7  ;;  %v162_v13 = vrot.slane %v153_v11, 7  ;;  %v155_v28 = vld [vmem:[%s8208_s3 + $0x18] sm:$0xff]  ;;  %v7047_v30 = vrot.slane %v154_v27, 7  ;;  %v6166_v44 = vld [vmem:[#allocation2 + $0x4] ss:$8 sps:$4 sm:$0xff]   ;;  %vm7074_vm3 = vmneg %vm160_vm0 }
  0x8f   :  { %317 = vmatprep.subr.bf16.mxu0 %v6146_v5  ;;  %v165_v31 = vrot.slane %v155_v28, 7  ;;  %v6163_v39 = vld [vmem:[#allocation2 + $0xf0] ss:$8 sps:$4 sm:$0xff]   ;;  %v6164_v49 = vld [vmem:[#allocation2] ss:$8 sps:$4 sm:$0xff]   ;;  %vm7080_vm5 = vmpackc.low %vm6820_vm4, %vm7074_vm3  ;;  %vm979_vm7 = vcmask 1043459  }
  0x90   :  { %v7027_v16 = vsel %vm160_vm0, %v7023_v12, %v162_v13  ;;  %v173_v17 = vsel %vm160_vm0, 0.0, %v7023_v12  ;;  %v175_v18 = vsel %vm160_vm0, %v162_v13, 0.0  ;;  %v174_v36 = vsel %vm160_vm0, 0.0, %v7047_v30  ;;  %v6169_v54 = vld [vmem:[#allocation2 + $0x14] ss:$8 sps:$4 sm:$0xff]   ;;  %vm5661_vm12 = vmpackc.low %vm7074_vm3, %vm7074_vm3 }
  0x91   :  { %v500_v19 = vrot.slane %v173_v17, 2  ;;  %v501_v20 = vrot.slane %v7027_v16, 2  ;;  %v503_v21 = vrot.slane %v175_v18, 2  ;;  %v200_v32 = vrot.slane %v173_v17, 1  ;;  %v6167_v55 = vld [vmem:[#allocation2 + $0x10] ss:$8 sps:$4 sm:$0xff]  }
  0x92   :  { %318 = vmatpush1.bf16.msra.mxu0 %v6148_v6  ;;  %v201_v33 = vrot.slane %v7027_v16, 1  ;;  %v203_v34 = vrot.slane %v175_v18, 1  ;;  %v7054_v37 = vsel %vm160_vm0, %v7047_v30, %v165_v31  ;;  %v505_v38 = vrot.slane %v174_v36, 2  ;;  %v6172_v56 = vld [vmem:[#allocation2 + $0x24] ss:$8 sps:$4 sm:$0xff]  }
  0x93   :  { %319 = vmatprep.subr.bf16.mxu0 %v6149_v7  ;;  %v7034_v23 = vsel %vm499_vm1, %v500_v19, %v501_v20  ;;  %v7037_v24 = vsel %vm499_vm1, %v501_v20, %v503_v21  ;;  %v176_v42 = vsel %vm160_vm0, %v165_v31, 0.0  ;;  %v506_v43 = vrot.slane %v7054_v37, 2  ;;  %v6170_v59 = vld [vmem:[#allocation2 + $0x20] ss:$8 sps:$4 sm:$0xff]   ;;  %v6175_v60 = vld [vmem:[#allocation2 + $0x34] ss:$8 sps:$4 sm:$0xff]  }
  0x94   :  { %v514_v26 = vpack.c.bf16 %v7037_v24, %v7034_v23  ;;  %v202_v40 = vsel %vm199_vm2, %v200_v32, %v201_v33  ;;  %v204_v41 = vsel %vm199_vm2, %v201_v33, %v203_v34  ;;  %v508_v45 = vrot.slane %v176_v42, 2  ;;  %v6173_v62 = vld [vmem:[#allocation2 + $0x30] ss:$8 sps:$4 sm:$0xff]   ;;  %v6178_v63 = vld [vmem:[#allocation2 + $0x44] ss:$8 sps:$4 sm:$0xff]  }
  0x95   :  { %v7061_v46 = vsel %vm499_vm1, %v505_v38, %v506_v43  ;;  %v214_v47 = vpack.c.bf16 %v204_v41, %v202_v40  ;;  %v205_v50 = vrot.slane %v174_v36, 1  ;;  %v206_v51 = vrot.slane %v7054_v37, 1  ;;  %v6176_v2 = vld [vmem:[#allocation2 + $0x40] ss:$8 sps:$4 sm:$0xff]   ;;  %v6181_v3 = vld [vmem:[#allocation2 + $0x54] ss:$8 sps:$4 sm:$0xff]  }
  0x96   :  { %320 = vmatpush1.bf16.msra.mxu0 %v6151_v8  ;;  %v7064_v48 = vsel %vm499_vm1, %v506_v43, %v508_v45  ;;  %v208_v52 = vrot.slane %v176_v42, 1  ;;  %v6179_v4 = vld [vmem:[#allocation2 + $0x50] ss:$8 sps:$4 sm:$0xff]   ;;  %v6184_v5 = vld [vmem:[#allocation2 + $0x64] ss:$8 sps:$4 sm:$0xff]   ;;  %v5588_v13 = vpack.c.bf16 %v7027_v16, %v7023_v12  ;;  %v5592_v20 = vpack.c.bf16 %v7054_v37, %v7047_v30 }
  0x97   :  { %321 = vmatprep.subr.bf16.mxu0 %v6152_v9  ;;  %v515_v53 = vpack.c.bf16 %v7064_v48, %v7061_v46  ;;  %v207_v57 = vsel %vm199_vm2, %v205_v50, %v206_v51  ;;  %v6182_v6 = vld [vmem:[#allocation2 + $0x60] ss:$8 sps:$4 sm:$0xff]   ;;  %v6187_v7 = vld [vmem:[#allocation2 + $0x74] ss:$8 sps:$4 sm:$0xff]   ;;  %v6185_v9 = vld [vmem:[#allocation2 + $0x70] ss:$8 sps:$4 sm:$0xff]  }
  0x98   :  { %v209_v58 = vsel %vm199_vm2, %v206_v51, %v208_v52  ;;  %v6190_v10 = vld [vmem:[#allocation2 + $0x104] ss:$8 sps:$4 sm:$0xff]   ;;  %v6188_v11 = vld [vmem:[#allocation2 + $0x100] ss:$8 sps:$4 sm:$0xff]   ;;  %v6199_v19 = vld [vmem:[#allocation2 + $0x134] ss:$8 sps:$4 sm:$0xff]   ;;  %v686_v51 = vlaneseq }
  0x99   :  { %v215_v61 = vpack.c.bf16 %v209_v58, %v207_v57  ;;  %v6196_v17 = vld [vmem:[#allocation2 + $0x124] ss:$8 sps:$4 sm:$0xff]   ;;  %v6194_v18 = vld [vmem:[#allocation2 + $0x120] ss:$8 sps:$4 sm:$0xff]   ;;  %v6197_v12 = vld [vmem:[#allocation2 + $0x130] ss:$8 sps:$4 sm:$0xff]  }
  0x9a   :  { %322 = vmatpush1.bf16.msra.mxu0 %v6154_v14  ;;  %v6193_v14 = vld [vmem:[#allocation2 + $0x114] ss:$8 sps:$4 sm:$0xff]   ;;  %v6202_v16 = vld [vmem:[#allocation2 + $0x144] ss:$8 sps:$4 sm:$0xff]   ;;  %v6200_v21 = vld [vmem:[#allocation2 + $0x140] ss:$8 sps:$4 sm:$0xff]  }
  0x9b   :  { %323 = vmatprep.subr.bf16.mxu0 %v6155_v15  ;;  %v6191_v15 = vld [vmem:[#allocation2 + $0x110] ss:$8 sps:$4 sm:$0xff]   ;;  %v6208_v27 = vld [vmem:[#allocation2 + $0x164] ss:$8 sps:$4 sm:$0xff]   ;;  %v6206_v28 = vld [vmem:[#allocation2 + $0x160] ss:$8 sps:$4 sm:$0xff]  }
  0x9c   :  { %v6209_v30 = vld [vmem:[#allocation2 + $0x170] ss:$8 sps:$4 sm:$0xff]   ;;  %v6212_v31 = vld [vmem:[#allocation4 + $0x84] ss:$8 sps:$4 sm:$0xff]   ;;  %v6214_v32 = vld [vmem:[#allocation4 + $0x80] ss:$8 sps:$4 sm:$0xff]  }
  0x9d   :  { %1130 = vmatprep.subr.bf16.mxu1 %v6212_v31  ;;  %v6215_v33 = vld [vmem:[#allocation4 + $0x94] ss:$8 sps:$4 sm:$0xff]   ;;  %v6217_v34 = vld [vmem:[#allocation4 + $0x90] ss:$8 sps:$4 sm:$0xff]   ;;  %v6220_v36 = vld [vmem:[#allocation4 + $0xa0] ss:$8 sps:$4 sm:$0xff]  }
  0x9e   :  { %324 = vmatpush1.bf16.msra.mxu0 %v6157_v22  ;;  %v6205_v22 = vld [vmem:[#allocation2 + $0x154] ss:$8 sps:$4 sm:$0xff]   ;;  %1131 = vmatpush1.bf16.msra.mxu1 %v6214_v32  ;;  %v6223_v24 = vld [vmem:[#allocation4 + $0xb0] ss:$8 sps:$4 sm:$0xff]   ;;  %v6226_v37 = vld [vmem:[#allocation4 + $0xc0] ss:$8 sps:$4 sm:$0xff]  }
  0x9f   :  { %325 = vmatprep.subr.bf16.mxu0 %v6158_v25  ;;  %v6203_v25 = vld [vmem:[#allocation2 + $0x150] ss:$8 sps:$4 sm:$0xff]   ;;  %1132 = vmatprep.subr.bf16.mxu1 %v6215_v33  ;;  %v6221_v23 = vld [vmem:[#allocation4 + $0xb4] ss:$8 sps:$4 sm:$0xff]   ;;  %v6230_v40 = vld [vmem:[#allocation4 + $0xe4] ss:$8 sps:$4 sm:$0xff]  }
  0xa0   :  { %v6227_v38 = vld [vmem:[#allocation4 + $0xd4] ss:$8 sps:$4 sm:$0xff]   ;;  %v6232_v41 = vld [vmem:[#allocation4 + $0xe0] ss:$8 sps:$4 sm:$0xff]   ;;  %v6235_v43 = vld [vmem:[#allocation4 + $0xf0] ss:$8 sps:$4 sm:$0xff]  }
  0xa1   :  { %v6233_v42 = vld [vmem:[#allocation4 + $0xf4] ss:$8 sps:$4 sm:$0xff]   ;;  %v6284_v45 = vld [vmem:[%s8186_s5 + $0x40] sm:$0xff]   ;;  %v6289_v48 = vld [vmem:[%s8186_s5 + $0x8] sm:$0xff]   ;;  %vm981_vm8 = vcmask 1044484   ;;  %vm983_vm9 = vcmask 1045509  }
  0xa2   :  { %326 = vmatpush1.bf16.msra.mxu0 %v6160_v29  ;;  %v6211_v29 = vld [vmem:[#allocation2 + $0x174] ss:$8 sps:$4 sm:$0xff]   ;;  %1133 = vmatpush1.bf16.msra.mxu1 %v6217_v34  ;;  %v6285_v46 = vld [vmem:[%s8186_s5] sm:$0xff]   ;;  %vm985_vm10 = vcmask 1046534   ;;  %vm987_vm11 = vcmask 1047559   ;;  %vm1588_vm13 = vcmask 1041409  }
  0xa3   :  { %327 = vmatprep.subr.bf16.mxu0 %v6161_v35  ;;  %v6218_v35 = vld [vmem:[#allocation4 + $0xa4] ss:$8 sps:$4 sm:$0xff]   ;;  %vm2397_vm14 = vcmask 1041408   ;;  %vm2400_vm15 = vcmask 1042432   ;;  %vm2411_vm3 = vcmask 1044480   ;;  %vm2418_vm4 = vcmask 1046532  }
  0xa4   :  { %1134 = vmatprep.subr.bf16.mxu1 %v6218_v35  ;;  %v6274_v1 = vld [vmem:[#allocation4 + $0x144] ss:$8 sps:$4 sm:$0xff]   ;;  %v6627_v8 = vld [vmem:[#allocation12 + $0x138] sm:$0xff]  }
  0xa6   :  { %328 = vmatpush1.bf16.msra.mxu0 %v6163_v39  ;;  %1135 = vmatpush1.bf16.msra.mxu1 %v6220_v36  ;;  %v6229_v39 = vld [vmem:[#allocation4 + $0xd0] ss:$8 sps:$4 sm:$0xff]  }
  0xa7   :  { %446 = vmatprep.subr.bf16.mxu0 %v6166_v44  ;;  %1136 = vmatprep.subr.bf16.mxu1 %v6221_v23  ;;  %v6238_v44 = vld [vmem:[#allocation4 + $0x4] ss:$8 sps:$4 sm:$0xff]  }
  0xa9   :  { %346 = vmatmul.mubr.bf16.vlgmr.msra.gmra.mrb[0].mxu0 %v214_v47  ;;  %v6288_v47 = vld [vmem:[%s8186_s5 + $0x48] sm:$0xff]  }
  0xaa   :  { %447 = vmatpush1.bf16.msra.mxu0 %v6164_v49  ;;  %355 = vmatprep.mubr.bf16.mxu0 %v6819_v0  ;;  %v6821_v49 = vmov 1983009808  }
  0xab   :  { %448 = vmatprep.subr.bf16.mxu0 %v6169_v54  ;;  %1137 = vmatpush1.bf16.msra.mxu1 %v6223_v24  ;;  %v684_v50 = vunpack.c.l.s4 %v6821_v49  ;;  %v5626_v54 = vld [vmem:[%s8183_s2] ss:$0 sm:$0xff] }
  0xad   :  { %v685_v52 = vunpack.c.0.s8 %v684_v50 }
  0xae   :  { %449 = vmatpush1.bf16.msra.mxu0 %v6167_v55 }
  0xaf   :  { %450 = vmatprep.subr.bf16.mxu0 %v6172_v56  ;;  %v836_v56 = vcombine.high %v5626_v54, %v5626_v54 }
  0xb1   :  { %356 = vmatmul.mubr.bf16.gmra.mrb[4].mxu0 %v215_v61 }
  0xb2   :  { %451 = vmatpush1.bf16.msra.mxu0 %v6170_v59  ;;  %478 = vmatprep.mubr.bf16.mxu0 %v6819_v0 }
  0xb3   :  { %452 = vmatprep.subr.bf16.mxu0 %v6175_v60 }
  0xb6   :  { %453 = vmatpush1.bf16.msra.mxu0 %v6173_v62 }
  0xb7   :  { %454 = vmatprep.subr.bf16.mxu0 %v6178_v63 }
  0xba   :  { %455 = vmatpush1.bf16.msra.mxu0 %v6176_v2 }
  0xbb   :  { %456 = vmatprep.subr.bf16.mxu0 %v6181_v3 }
  0xbe   :  { %457 = vmatpush1.bf16.msra.mxu0 %v6179_v4 }
  0xbf   :  { %458 = vmatprep.subr.bf16.mxu0 %v6184_v5 }
  0xc2   :  { %459 = vmatpush1.bf16.msra.mxu0 %v6182_v6 }
  0xc3   :  { %460 = vmatprep.subr.bf16.mxu0 %v6187_v7 }
  0xc6   :  { %461 = vmatpush1.bf16.msra.mxu0 %v6185_v9 }
  0xc7   :  { %613 = vmatprep.subr.bf16.mxu0 %v6190_v10 }
  0xc9   :  { %5589 = vmatmul.mubr.msk.bf16.vlgmr.msra.gmra.mrb[0].mxu0 %vm7080_vm5, %v5588_v13 }
  0xca   :  { %614 = vmatpush1.bf16.msra.mxu0 %v6188_v11  ;;  %488 = vmatprep.mubr.bf16.mxu0 %v6819_v0 }
  0xcb   :  { %615 = vmatprep.subr.bf16.mxu0 %v6193_v14 }
  0xce   :  { %616 = vmatpush1.bf16.msra.mxu0 %v6191_v15 }
  0xcf   :  { %617 = vmatprep.subr.bf16.mxu0 %v6196_v17 }
  0xd1   :  { %5593 = vmatmul.mubr.msk.bf16.gmra.mrb[4].mxu0 %vm7080_vm5, %v5592_v20 }
  0xd2   :  { %618 = vmatpush1.bf16.msra.mxu0 %v6194_v18  ;;  %645 = vmatprep.mubr.bf16.mxu0 %v6819_v0 }
  0xd3   :  { %619 = vmatprep.subr.bf16.mxu0 %v6199_v19 }
  0xd6   :  { %620 = vmatpush1.bf16.msra.mxu0 %v6197_v12 }
  0xd7   :  { %621 = vmatprep.subr.bf16.mxu0 %v6202_v16 }
  0xda   :  { %622 = vmatpush1.bf16.msra.mxu0 %v6200_v21 }
  0xdb   :  { %623 = vmatprep.subr.bf16.mxu0 %v6205_v22 }
  0xde   :  { %624 = vmatpush1.bf16.msra.mxu0 %v6203_v25 }
  0xdf   :  { %625 = vmatprep.subr.bf16.mxu0 %v6208_v27 }
  0xe2   :  { %626 = vmatpush1.bf16.msra.mxu0 %v6206_v28 }
  0xe3   :  { %627 = vmatprep.subr.bf16.mxu0 %v6211_v29 }
  0xe6   :  { %628 = vmatpush1.bf16.msra.mxu0 %v6209_v30 }
  0xe7   :  { %5967 = vmatprep.subr.bf16.mxu0 %v6284_v45 }
  0xe9   :  { %646 = vmatmul.mubr.bf16.vlgmr.msra.gmra.mrb[0].mxu0 %v514_v26  ;;  %v6224_v26 = vld [vmem:[#allocation4 + $0xc4] ss:$8 sps:$4 sm:$0xff]  }
  0xea   :  { %655 = vmatprep.mubr.bf16.mxu0 %v6819_v0  ;;  %1138 = vmatprep.subr.bf16.mxu1 %v6224_v26 }
  0xeb   :  { %1139 = vmatpush1.bf16.msra.mxu1 %v6226_v37  ;;  %5968 = vmatpush3.bf16.msra.mxu0 %v6285_v46 }
  0xec   :  { %1140 = vmatprep.subr.bf16.mxu1 %v6227_v38  ;;  %5969 = vmatprep.subr.bf16.mxu0 %v6288_v47 }
  0xef   :  { %1141 = vmatpush1.bf16.msra.mxu1 %v6229_v39  ;;  %5970 = vmatpush3.bf16.msra.mxu0 %v6289_v48 }
  0xf0   :  { %1142 = vmatprep.subr.bf16.mxu1 %v6230_v40 }
  0xf1   :  { %656 = vmatmul.mubr.bf16.gmra.mrb[4].mxu0 %v515_v53  ;;  %v7113_v53 = vshrl.u32 %v686_v51, 7 }
  0xf3   :  { %1143 = vmatpush1.bf16.msra.mxu1 %v6232_v41  ;;  %v7119_v55 = vsub.s32 %v685_v52, %v7113_v53  ;;  %v7139_v10 = vsub.s32 0, %v7113_v53 }
  0xf4   :  { %1144 = vmatprep.subr.bf16.mxu1 %v6233_v42 }
  0xf5   :  { %v7122_v57 = vrot.slane %v5626_v54, %v7119_v55  ;;  %v7125_v58 = vrot.slane %v836_v56, %v7119_v55 }
  0xf7   :  { %1145 = vmatpush1.bf16.msra.mxu1 %v6235_v43  ;;  %v7129_v61 = vcombine.high %v7122_v57, %v7122_v57  ;;  %v7133_v3 = vcombine.high %v7125_v58, %v7125_v58  ;;  %v853_v7 = vrot.slane %v7122_v57, 1  ;;  %v855_v18 = vrot.slane %v7125_v58, 1 }
  0xf8   :  { %1253 = vmatprep.subr.bf16.mxu1 %v6238_v44 }
  0xf9   :  { %v854_v9 = vrot.slane %v7129_v61, 1  ;;  %v856_v19 = vrot.slane %v7133_v3, 1 }
 0x1bc   :  { %v647_v59 = vpop.f32.mrb[0].mxu0 }
 0x1bd   :  { %v649_v60 = vpop.f32.mrb[1].mxu0 }
 0x1be   :  { %v674_v62 = vmax.f32 %v647_v59, %v649_v60  ;;  %v651_v63 = vpop.f32.mrb[2].mxu0 }
 0x1bf   :  { %v653_v2 = vpop.f32.mrb[3].mxu0 }
 0x1c0   :  { %v682_v4 = vcombine.high %v674_v62, %v674_v62  ;;  %v689_v5 = vrot.slane %v674_v62, %v7119_v55  ;;  %v675_v6 = vmax.f32 %v651_v63, %v653_v2 }
 0x1c2   :  { %v696_v11 = vrot.slane %v682_v4, %v7119_v55  ;;  %v697_v13 = vcombine.high %v689_v5, %v689_v5  ;;  %v5610_v14 = vrot.slane %v689_v5, 9  ;;  %v699_v15 = vcombine.high %v675_v6, %v675_v6 }
 0x1c3   :  { %v706_v17 = vrot.slane %v675_v6, %v7119_v55 }
 0x1c4   :  { %v698_v20 = vcombine.high %v696_v11, %v696_v11  ;;  %v5611_v12 = vrot.slane %v697_v13, 9  ;;  %v5612_v16 = vrot.slane %v696_v11, 9  ;;  %v814_v21 = vmax.f32 %v689_v5, %v5610_v14  ;;  %v657_v22 = vpop.f32.mrb[4].mxu0 }
 0x1c5   :  { %v713_v25 = vrot.slane %v699_v15, %v7119_v55  ;;  %v714_v27 = vcombine.high %v706_v17, %v706_v17  ;;  %v5614_v28 = vrot.slane %v706_v17, 9  ;;  %v659_v29 = vpop.f32.mrb[5].mxu0 }
 0x1c6   :  { %v5613_v30 = vrot.slane %v698_v20, 9  ;;  %v815_v31 = vmax.f32 %v697_v13, %v5611_v12  ;;  %v816_v32 = vmax.f32 %v696_v11, %v5612_v16  ;;  %v865_v33 = vadd.f32 %v7122_v57, %v814_v21  ;;  %v661_v34 = vpop.f32.mrb[6].mxu0 }
 0x1c7   :  { %v715_v35 = vcombine.high %v713_v25, %v713_v25  ;;  %v5615_v36 = vrot.slane %v714_v27, 9  ;;  %v5616_v23 = vrot.slane %v713_v25, 9  ;;  %v818_v24 = vmax.f32 %v706_v17, %v5614_v28  ;;  %v663_v26 = vpop.f32.mrb[7].mxu0 }
 0x1c8   :  { %v817_v37 = vmax.f32 %v698_v20, %v5613_v30  ;;  %v866_v38 = vadd.f32 %v853_v7, %v815_v31  ;;  %v867_v39 = vadd.f32 %v7129_v61, %v816_v32  ;;  %v881_v40 = vmax.f32 %v865_v33, 0.0 }
 0x1c9   :  { %v5617_v41 = vrot.slane %v715_v35, 9  ;;  %v819_v42 = vmax.f32 %v714_v27, %v5615_v36  ;;  %v820_v43 = vmax.f32 %v713_v25, %v5616_v23  ;;  %v869_v44 = vadd.f32 %v7125_v58, %v818_v24 }
 0x1ca   :  { %v868_v45 = vadd.f32 %v854_v9, %v817_v37  ;;  %v882_v46 = vmax.f32 %v866_v38, 0.0  ;;  %v883_v47 = vmax.f32 %v867_v39, 0.0  ;;  %v916_v48 = vrot.slane %v881_v40, %v7139_v10 }
 0x1cb   :  { %v821_v49 = vmax.f32 %v715_v35, %v5617_v41  ;;  %v870_v50 = vadd.f32 %v855_v18, %v819_v42  ;;  %v871_v51 = vadd.f32 %v7133_v3, %v820_v43  ;;  %v885_v52 = vmax.f32 %v869_v44, 0.0 }
 0x1cc   :  { %v884_v54 = vmax.f32 %v868_v45, 0.0  ;;  %v920_v56 = vrot.slane %v882_v46, %v7139_v10  ;;  %v924_v59 = vrot.slane %v883_v47, %v7139_v10  ;;  %v676_v60 = vmax.f32 %v657_v22, %v659_v29 }
 0x1cd   :  { %v872_v62 = vadd.f32 %v856_v19, %v821_v49  ;;  %v886_v63 = vmax.f32 %v870_v50, 0.0  ;;  %v887_v2 = vmax.f32 %v871_v51, 0.0  ;;  %v932_v15 = vrot.slane %v885_v52, %v7139_v10 }
 0x1ce   :  { %v928_v4 = vrot.slane %v884_v54, %v7139_v10  ;;  %v978_v5 = vsel %vm977_vm6, %v920_v56, %v916_v48  ;;  %v716_v6 = vcombine.high %v676_v60, %v676_v60  ;;  %v723_v11 = vrot.slane %v676_v60, %v7119_v55 }
 0x1cf   :  { %v980_v13 = vsel %vm979_vm7, %v924_v59, %v978_v5  ;;  %v888_v14 = vmax.f32 %v872_v62, 0.0  ;;  %v677_v16 = vmax.f32 %v661_v34, %v663_v26  ;;  %v936_v21 = vrot.slane %v886_v63, %v7139_v10 }
 0x1d0   :  { %v730_v17 = vrot.slane %v716_v6, %v7119_v55  ;;  %v731_v20 = vcombine.high %v723_v11, %v723_v11  ;;  %v5618_v12 = vrot.slane %v723_v11, 9  ;;  %v940_v22 = vrot.slane %v887_v2, %v7139_v10 }
 0x1d1   :  { %v944_v25 = vrot.slane %v888_v14, %v7139_v10  ;;  %v982_v27 = vsel %vm981_vm8, %v928_v4, %v980_v13  ;;  %v733_v32 = vcombine.high %v677_v16, %v677_v16  ;;  %v740_v33 = vrot.slane %v677_v16, %v7119_v55 }
 0x1d2   :  { %v732_v28 = vcombine.high %v730_v17, %v730_v17  ;;  %v5619_v29 = vrot.slane %v731_v20, 9  ;;  %v5620_v30 = vrot.slane %v730_v17, 9  ;;  %v822_v31 = vmax.f32 %v723_v11, %v5618_v12 }
 0x1d3   :  { %v984_v35 = vsel %vm983_vm9, %v932_v15, %v982_v27  ;;  %v1001_v36 = vsel %vm160_vm0, %v944_v25, 0.0  ;;  %v747_v37 = vrot.slane %v733_v32, %v7119_v55  ;;  %v748_v38 = vcombine.high %v740_v33, %v740_v33 }
 0x1d4   :  { %v5621_v34 = vrot.slane %v732_v28, 9  ;;  %v823_v23 = vmax.f32 %v731_v20, %v5619_v29  ;;  %v824_v24 = vmax.f32 %v730_v17, %v5620_v30  ;;  %v873_v26 = vadd.f32 %v7122_v57, %v822_v31 }
 0x1d5   :  { %v5622_v39 = vrot.slane %v740_v33, 9  ;;  %v986_v40 = vsel %vm985_vm10, %v936_v21, %v984_v35  ;;  %v749_v45 = vcombine.high %v747_v37, %v747_v37  ;;  %v5623_v46 = vrot.slane %v748_v38, 9 }
 0x1d6   :  { %v825_v41 = vmax.f32 %v732_v28, %v5621_v34  ;;  %v874_v42 = vadd.f32 %v853_v7, %v823_v23  ;;  %v875_v43 = vadd.f32 %v7129_v61, %v824_v24  ;;  %v889_v44 = vmax.f32 %v873_v26, 0.0  ;;  %v6236_v26 = vld [vmem:[#allocation4] ss:$8 sps:$4 sm:$0xff]  }
 0x1d7   :  { %v5624_v47 = vrot.slane %v747_v37, 9  ;;  %v826_v48 = vmax.f32 %v740_v33, %v5622_v39  ;;  %v5625_v54 = vrot.slane %v749_v45, 9  ;;  %v827_v56 = vmax.f32 %v748_v38, %v5623_v46  ;;  %v6245_v46 = vld [vmem:[#allocation4 + $0x30] ss:$8 sps:$4 sm:$0xff]  }
 0x1d8   :  { %v876_v49 = vadd.f32 %v854_v9, %v825_v41  ;;  %v890_v50 = vmax.f32 %v874_v42, 0.0  ;;  %v891_v51 = vmax.f32 %v875_v43, 0.0  ;;  %v948_v52 = vrot.slane %v889_v44, %v7139_v10  ;;  %v6239_v42 = vld [vmem:[#allocation4 + $0x10] ss:$8 sps:$4 sm:$0xff]   ;;  %v6244_v43 = vld [vmem:[#allocation4 + $0x24] ss:$8 sps:$4 sm:$0xff]  }
 0x1d9   :  { %v828_v59 = vmax.f32 %v747_v37, %v5624_v47  ;;  %v877_v57 = vadd.f32 %v7125_v58, %v826_v48  ;;  %v7187_v63 = vsel %vm987_vm11, %v940_v22, %v986_v40  ;;  %v829_v2 = vmax.f32 %v749_v45, %v5625_v54  ;;  %v6241_v40 = vld [vmem:[#allocation4 + $0x14] ss:$8 sps:$4 sm:$0xff]   ;;  %v6242_v44 = vld [vmem:[#allocation4 + $0x20] ss:$8 sps:$4 sm:$0xff]   ;;  %v6250_v47 = vld [vmem:[#allocation4 + $0x44] ss:$8 sps:$4 sm:$0xff]  }
 0x1da   :  { %v892_v7 = vmax.f32 %v876_v49, 0.0  ;;  %v952_v60 = vrot.slane %v890_v50, %v7139_v10  ;;  %v956_v62 = vrot.slane %v891_v51, %v7139_v10  ;;  %v878_v61 = vadd.f32 %v855_v18, %v827_v56  ;;  %v6247_v45 = vld [vmem:[#allocation4 + $0x34] ss:$8 sps:$4 sm:$0xff]   ;;  %v6248_v48 = vld [vmem:[#allocation4 + $0x40] ss:$8 sps:$4 sm:$0xff]  }
 0x1db   :  { %v879_v9 = vadd.f32 %v7133_v3, %v828_v59  ;;  %v893_v4 = vmax.f32 %v877_v57, 0.0  ;;  %v999_v11 = vsel %vm160_vm0, 0.0, %v7187_v63  ;;  %v1025_v13 = vrot.slane %v1001_v36, 1  ;;  %v6253_v49 = vld [vmem:[#allocation4 + $0x54] ss:$8 sps:$4 sm:$0xff]  }
 0x1dc   :  { %v960_v5 = vrot.slane %v892_v7, %v7139_v10  ;;  %v989_v6 = vsel %vm977_vm6, %v952_v60, %v948_v52  ;;  %v880_v15 = vadd.f32 %v856_v19, %v829_v2  ;;  %v894_v17 = vmax.f32 %v878_v61, 0.0  ;;  %v6251_v50 = vld [vmem:[#allocation4 + $0x50] ss:$8 sps:$4 sm:$0xff]   ;;  %v6256_v51 = vld [vmem:[#allocation4 + $0x64] ss:$8 sps:$4 sm:$0xff]  }
 0x1dd   :  { %v990_v14 = vsel %vm979_vm7, %v956_v62, %v989_v6  ;;  %v895_v20 = vmax.f32 %v879_v9, 0.0  ;;  %v964_v58 = vrot.slane %v893_v4, %v7139_v10  ;;  %v1024_v12 = vrot.slane %v999_v11, 1  ;;  %v6254_v52 = vld [vmem:[#allocation4 + $0x60] ss:$8 sps:$4 sm:$0xff]   ;;  %v6259_v54 = vld [vmem:[#allocation4 + $0x74] ss:$8 sps:$4 sm:$0xff]   ;;  %vm2419_vm7 = vmor %vm2400_vm15, %vm2418_vm4 }
 0x1de   :  { %v991_v18 = vsel %vm981_vm8, %v960_v5, %v990_v14  ;;  %v1296_v16 = vrot.slane %v999_v11, 2  ;;  %v896_v21 = vmax.f32 %v880_v15, 0.0  ;;  %v968_v22 = vrot.slane %v894_v17, %v7139_v10  ;;  %v6257_v56 = vld [vmem:[#allocation4 + $0x70] ss:$8 sps:$4 sm:$0xff]   ;;  %v6262_v59 = vld [vmem:[#allocation4 + $0x104] ss:$8 sps:$4 sm:$0xff]  }
 0x1df   :  { %v1297_v25 = vrot.slane %v1001_v36, 2  ;;  %v972_v27 = vrot.slane %v895_v20, %v7139_v10  ;;  %v992_v28 = vsel %vm983_vm9, %v964_v58, %v991_v18  ;;  %v1026_v29 = vsel %vm199_vm2, %v1024_v12, %v1025_v13  ;;  %v6260_v57 = vld [vmem:[#allocation4 + $0x100] ss:$8 sps:$4 sm:$0xff]   ;;  %v6265_v7 = vld [vmem:[#allocation4 + $0x114] ss:$8 sps:$4 sm:$0xff]  }
 0x1e0   :  { %v976_v3 = vrot.slane %v896_v21, %v7139_v10  ;;  %v993_v19 = vsel %vm985_vm10, %v968_v22, %v992_v28  ;;  %v6263_v60 = vld [vmem:[#allocation4 + $0x110] ss:$8 sps:$4 sm:$0xff]   ;;  %v6268_v62 = vld [vmem:[#allocation4 + $0x124] ss:$8 sps:$4 sm:$0xff]   ;;  %v6271_v2 = vld [vmem:[#allocation4 + $0x134] ss:$8 sps:$4 sm:$0xff]  }
 0x1e1   :  { %v7208_v30 = vsel %vm499_vm1, %v1296_v16, %v1297_v25  ;;  %v994_v31 = vsel %vm987_vm11, %v972_v27, %v993_v19  ;;  %v6269_v61 = vld [vmem:[#allocation4 + $0x130] ss:$8 sps:$4 sm:$0xff]   ;;  %v6272_v9 = vld [vmem:[#allocation4 + $0x140] ss:$8 sps:$4 sm:$0xff]   ;;  %v6277_v4 = vld [vmem:[#allocation4 + $0x154] ss:$8 sps:$4 sm:$0xff]  }
 0x1e2   :  { %v1000_v32 = vsel %vm160_vm0, 0.0, %v994_v31  ;;  %v1002_v33 = vsel %vm160_vm0, %v976_v3, 0.0  ;;  %v5662_v35 = vpack.c.bf16 %v994_v31, %v7187_v63  ;;  %v6266_v63 = vld [vmem:[#allocation4 + $0x120] ss:$8 sps:$4 sm:$0xff]   ;;  %v6275_v5 = vld [vmem:[#allocation4 + $0x150] ss:$8 sps:$4 sm:$0xff]  }
 0x1e3   :  { %v1027_v36 = vrot.slane %v1000_v32, 1  ;;  %v1028_v34 = vrot.slane %v1002_v33, 1  ;;  %v1299_v23 = vrot.slane %v1000_v32, 2  ;;  %v1300_v24 = vrot.slane %v1002_v33, 2  ;;  %v6280_v6 = vld [vmem:[#allocation4 + $0x164] ss:$8 sps:$4 sm:$0xff]  }
 0x1e4   :  { %v6278_v11 = vld [vmem:[#allocation4 + $0x160] ss:$8 sps:$4 sm:$0xff]   ;;  %v6283_v13 = vld [vmem:[#allocation4 + $0x174] ss:$8 sps:$4 sm:$0xff]   ;;  %v6281_v14 = vld [vmem:[#allocation4 + $0x170] ss:$8 sps:$4 sm:$0xff]  }
 0x1e5   :  { %v1029_v37 = vsel %vm199_vm2, %v1027_v36, %v1028_v34  ;;  %v7216_v38 = vsel %vm499_vm1, %v1299_v23, %v1300_v24  ;;  %v6286_v15 = vld [vmem:[%s8186_s5 + $0xc0] sm:$0xff]   ;;  %v6290_v20 = vld [vmem:[%s8186_s5 + $0xc8] sm:$0xff]   ;;  %v6292_v18 = vld [vmem:[%s8186_s5 + $0x50] sm:$0xff]   ;;  %vm2431_vm6 = vcmask 1045508  }
 0x1e6   :  { %v1032_v39 = vpack.c.bf16 %v1029_v37, %v1026_v29  ;;  %v1304_v41 = vpack.c.bf16 %v7216_v38, %v7208_v30  ;;  %v6287_v17 = vld [vmem:[%s8186_s5 + $0x80] sm:$0xff]   ;;  %v6291_v58 = vld [vmem:[%s8186_s5 + $0x88] sm:$0xff]   ;;  %5971 = vmatprep.subr.bf16.mxu0 %v6292_v18  ;;  %v6293_v12 = vld [vmem:[%s8186_s5 + $0x10] sm:$0xff]  }
 0x1e7   :  { %v6294_v16 = vld [vmem:[%s8186_s5 + $0xd0] sm:$0xff]   ;;  %5972 = vmatpush3.bf16.msra.mxu0 %v6293_v12  ;;  %v6296_v22 = vld [vmem:[%s8186_s5 + $0x58] sm:$0xff]   ;;  %v6300_v29 = vld [vmem:[%s8186_s5 + $0x60] sm:$0xff]  }
 0x1e8   :  { %1163 = vmatmul.mubr.bf16.vlgmr.msra.gmra.mrb[0].mxu1 %v1032_v39  ;;  %v6295_v21 = vld [vmem:[%s8186_s5 + $0x90] sm:$0xff]   ;;  %v6297_v25 = vld [vmem:[%s8186_s5 + $0x18] sm:$0xff]   ;;  %5973 = vmatprep.subr.bf16.mxu0 %v6296_v22  ;;  %v6301_v3 = vld [vmem:[%s8186_s5 + $0x20] sm:$0xff]  }
 0x1e9   :  { %1254 = vmatpush1.bf16.msra.mxu1 %v6236_v26  ;;  %1285 = vmatprep.mubr.bf16.mxu1 %v6819_v0  ;;  %v6298_v27 = vld [vmem:[%s8186_s5 + $0xd8] sm:$0xff]   ;;  %v6302_v19 = vld [vmem:[%s8186_s5 + $0xe0] sm:$0xff]   ;;  %v6304_v31 = vld [vmem:[%s8186_s5 + $0x68] sm:$0xff]  }
 0x1ea   :  { %1255 = vmatprep.subr.bf16.mxu1 %v6241_v40  ;;  %v6299_v28 = vld [vmem:[%s8186_s5 + $0x98] sm:$0xff]   ;;  %v6303_v30 = vld [vmem:[%s8186_s5 + $0xa0] sm:$0xff]   ;;  %v6305_v32 = vld [vmem:[%s8186_s5 + $0x28] sm:$0xff]  }
 0x1eb   :  { %5974 = vmatpush3.bf16.msra.mxu0 %v6297_v25  ;;  %v6306_v33 = vld [vmem:[%s8186_s5 + $0xe8] sm:$0xff]   ;;  %v6308_v36 = vld [vmem:[%s8186_s5 + $0x70] sm:$0xff]   ;;  %v6312_v24 = vld [vmem:[%s8186_s5 + $0x78] sm:$0xff]  }
 0x1ec   :  { %5975 = vmatprep.subr.bf16.mxu0 %v6300_v29  ;;  %v6309_v34 = vld [vmem:[%s8186_s5 + $0x30] sm:$0xff]   ;;  %v6314_v37 = vld [vmem:[%s8186_s5 + $0xf8] sm:$0xff]   ;;  %vm2432_vm8 = vmor %vm2397_vm14, %vm2431_vm6 }
 0x1ed   :  { %1256 = vmatpush1.bf16.msra.mxu1 %v6239_v42  ;;  %v6310_v23 = vld [vmem:[%s8186_s5 + $0xf0] sm:$0xff]   ;;  %v6313_v38 = vld [vmem:[%s8186_s5 + $0x38] sm:$0xff]   ;;  %v5688_v42 = vld [vmem:[%s8185_s4] ss:$0 sm:$0xff] }
 0x1ee   :  { %1257 = vmatprep.subr.bf16.mxu1 %v6244_v43  ;;  %v6311_v26 = vld [vmem:[%s8186_s5 + $0xb0] sm:$0xff]   ;;  %v6315_v39 = vld [vmem:[%s8186_s5 + $0xb8] sm:$0xff]   ;;  %v1533_v43 = vcombine.high %v5688_v42, %v5688_v42 }
 0x1ef   :  { %5976 = vmatpush3.bf16.msra.mxu0 %v6301_v3  ;;  %v6318_v40 = vld [vmem:[#allocation6 + $0x4] ss:$16 sps:$4 sm:$0xff]  }
 0x1f0   :  { %5977 = vmatprep.subr.bf16.mxu0 %v6304_v31 }
 0x1f1   :  { %1258 = vmatpush1.bf16.msra.mxu1 %v6242_v44  ;;  %v1540_v44 = vrot.slane %v5688_v42, %v7119_v55 }
 0x1f2   :  { %1259 = vmatprep.subr.bf16.mxu1 %v6247_v45 }
 0x1f3   :  { %5978 = vmatpush3.bf16.msra.mxu0 %v6305_v32 }
 0x1f4   :  { %5979 = vmatprep.subr.bf16.mxu0 %v6308_v36 }
 0x1f5   :  { %1260 = vmatpush1.bf16.msra.mxu1 %v6245_v46 }
 0x1f6   :  { %1261 = vmatprep.subr.bf16.mxu1 %v6250_v47  ;;  %v1547_v47 = vrot.slane %v1533_v43, %v7119_v55 }
 0x1f7   :  { %5980 = vmatpush3.bf16.msra.mxu0 %v6309_v34 }
 0x1f8   :  { %5981 = vmatprep.subr.bf16.mxu0 %v6312_v24 }
 0x1f9   :  { %1262 = vmatpush1.bf16.msra.mxu1 %v6248_v48 }
 0x1fa   :  { %1263 = vmatprep.subr.bf16.mxu1 %v6253_v49 }
 0x1fb   :  { %5982 = vmatpush3.bf16.msra.mxu0 %v6313_v38 }
 0x1fc   :  { %2189 = vmatprep.subr.bf16.mxu0 %v6318_v40 }
 0x1fd   :  { %1264 = vmatpush1.bf16.msra.mxu1 %v6251_v50  ;;  %v1548_v50 = vcombine.high %v1540_v44, %v1540_v44 }
 0x1fe   :  { %1265 = vmatprep.subr.bf16.mxu1 %v6256_v51 }
 0x201   :  { %1266 = vmatpush1.bf16.msra.mxu1 %v6254_v52 }
 0x202   :  { %1267 = vmatprep.subr.bf16.mxu1 %v6259_v54 }
 0x205   :  { %1268 = vmatpush1.bf16.msra.mxu1 %v6257_v56 }
 0x206   :  { %1402 = vmatprep.subr.bf16.mxu1 %v6262_v59  ;;  %v1549_v59 = vcombine.high %v1547_v47, %v1547_v47 }
 0x208   :  { %5663 = vmatmul.mubr.msk.bf16.vlgmr.msra.gmra.mrb[0].mxu1 %vm5661_vm12, %v5662_v35  ;;  %v6307_v35 = vld [vmem:[%s8186_s5 + $0xa8] sm:$0xff]   ;;  %s8225_s5 = sld [smem:[#allocation19_spill]] }
 0x209   :  { %1403 = vmatpush1.bf16.msra.mxu1 %v6260_v57  ;;  %1434 = vmatprep.mubr.bf16.mxu1 %v6819_v0 }
 0x20a   :  { %1404 = vmatprep.subr.bf16.mxu1 %v6265_v7 }
 0x20d   :  { %1405 = vmatpush1.bf16.msra.mxu1 %v6263_v60 }
 0x20e   :  { %1406 = vmatprep.subr.bf16.mxu1 %v6268_v62 }
 0x211   :  { %1407 = vmatpush1.bf16.msra.mxu1 %v6266_v63  ;;  %v1550_v63 = vrot.slane %v1540_v44, 1 }
 0x212   :  { %1408 = vmatprep.subr.bf16.mxu1 %v6271_v2 }
 0x215   :  { %1409 = vmatpush1.bf16.msra.mxu1 %v6269_v61  ;;  %v1552_v61 = vrot.slane %v1547_v47, 1 }
 0x216   :  { %1410 = vmatprep.subr.bf16.mxu1 %v6274_v1  ;;  %v1551_v1 = vrot.slane %v1548_v50, 1 }
 0x219   :  { %1411 = vmatpush1.bf16.msra.mxu1 %v6272_v9 }
 0x21a   :  { %1412 = vmatprep.subr.bf16.mxu1 %v6277_v4 }
 0x21d   :  { %1413 = vmatpush1.bf16.msra.mxu1 %v6275_v5 }
 0x21e   :  { %1414 = vmatprep.subr.bf16.mxu1 %v6280_v6 }
 0x221   :  { %1415 = vmatpush1.bf16.msra.mxu1 %v6278_v11 }
 0x222   :  { %1416 = vmatprep.subr.bf16.mxu1 %v6283_v13 }
 0x225   :  { %1417 = vmatpush1.bf16.msra.mxu1 %v6281_v14 }
 0x226   :  { %5989 = vmatprep.subr.bf16.mxu1 %v6286_v15  ;;  %v1553_v15 = vrot.slane %v1549_v59, 1 }
 0x228   :  { %1435 = vmatmul.mubr.bf16.vlgmr.msra.gmra.mrb[0].mxu1 %v1304_v41  ;;  %v6321_v41 = vld [vmem:[#allocation6 + $0xc] ss:$16 sps:$4 sm:$0xff]  }
 0x229   :  { %5990 = vmatpush3.bf16.msra.mxu1 %v6287_v17 }
 0x22a   :  { %5991 = vmatprep.subr.bf16.mxu1 %v6290_v20 }
 0x22d   :  { %5992 = vmatpush3.bf16.msra.mxu1 %v6291_v58 }
 0x22e   :  { %5993 = vmatprep.subr.bf16.mxu1 %v6294_v16 }
 0x231   :  { %5994 = vmatpush3.bf16.msra.mxu1 %v6295_v21 }
 0x232   :  { %5995 = vmatprep.subr.bf16.mxu1 %v6298_v27 }
 0x235   :  { %5996 = vmatpush3.bf16.msra.mxu1 %v6299_v28 }
 0x236   :  { %5997 = vmatprep.subr.bf16.mxu1 %v6302_v19 }
 0x239   :  { %5998 = vmatpush3.bf16.msra.mxu1 %v6303_v30 }
 0x23a   :  { %5999 = vmatprep.subr.bf16.mxu1 %v6306_v33 }
 0x23d   :  { %6000 = vmatpush3.bf16.msra.mxu1 %v6307_v35 }
 0x23e   :  { %6001 = vmatprep.subr.bf16.mxu1 %v6310_v23 }
 0x241   :  { %6002 = vmatpush3.bf16.msra.mxu1 %v6311_v26 }
 0x242   :  { %6003 = vmatprep.subr.bf16.mxu1 %v6314_v37 }
 0x245   :  { %6004 = vmatpush3.bf16.msra.mxu1 %v6315_v39 }
 0x246   :  { %2230 = vmatprep.subr.bf16.mxu1 %v6321_v41 }
 0x2fb   :  { %v1436_v45 = vpop.f32.mrb[0].mxu1 }
 0x2fc   :  { %v1438_v46 = vpop.f32.mrb[1].mxu1 }
 0x2fd   :  { %v1449_v48 = vmax.f32 %v1436_v45, %v1438_v46  ;;  %v1440_v49 = vpop.f32.mrb[2].mxu1 }
 0x2fe   :  { %v1442_v51 = vpop.f32.mrb[3].mxu1 }
 0x2ff   :  { %v1453_v52 = vcombine.high %v1449_v48, %v1449_v48  ;;  %v1460_v54 = vrot.slane %v1449_v48, %v7119_v55  ;;  %v1450_v56 = vmax.f32 %v1440_v49, %v1442_v51 }
 0x301   :  { %v1467_v57 = vrot.slane %v1453_v52, %v7119_v55  ;;  %v1468_v7 = vcombine.high %v1460_v54, %v1460_v54  ;;  %v5680_v60 = vrot.slane %v1460_v54, 9  ;;  %v1470_v62 = vcombine.high %v1450_v56, %v1450_v56 }
 0x302   :  { %v1477_v2 = vrot.slane %v1450_v56, %v7119_v55 }
 0x303   :  { %v1469_v9 = vcombine.high %v1467_v57, %v1467_v57  ;;  %v5681_v4 = vrot.slane %v1468_v7, 9  ;;  %v5682_v5 = vrot.slane %v1467_v57, 9  ;;  %v1519_v6 = vmax.f32 %v1460_v54, %v5680_v60  ;;  %v6316_v54 = vld [vmem:[#allocation6] ss:$16 sps:$4 sm:$0xff]   ;;  %v6319_v60 = vld [vmem:[#allocation6 + $0x8] ss:$16 sps:$4 sm:$0xff]  }
 0x304   :  { %v1484_v11 = vrot.slane %v1470_v62, %v7119_v55  ;;  %v1485_v13 = vcombine.high %v1477_v2, %v1477_v2  ;;  %v5684_v14 = vrot.slane %v1477_v2, 9 }
 0x305   :  { %v5683_v17 = vrot.slane %v1469_v9, 9  ;;  %v1520_v20 = vmax.f32 %v1468_v7, %v5681_v4  ;;  %v1521_v58 = vmax.f32 %v1467_v57, %v5682_v5  ;;  %v1562_v18 = vadd.f32 %v1540_v44, %v1519_v6  ;;  %v6324_v57 = vld [vmem:[#allocation6 + $0x24] ss:$16 sps:$4 sm:$0xff]   ;;  %v6328_v4 = vld [vmem:[#allocation6 + $0x40] ss:$16 sps:$4 sm:$0xff]  }
 0x306   :  { %v1486_v12 = vcombine.high %v1484_v11, %v1484_v11  ;;  %v5685_v16 = vrot.slane %v1485_v13, 9  ;;  %v5686_v21 = vrot.slane %v1484_v11, 9  ;;  %v1523_v22 = vmax.f32 %v1477_v2, %v5684_v14  ;;  %v6322_v2 = vld [vmem:[#allocation6 + $0x20] ss:$16 sps:$4 sm:$0xff]   ;;  %v6336_v5 = vld [vmem:[#allocation6 + $0x64] ss:$16 sps:$4 sm:$0xff]  }
 0x307   :  { %v1522_v25 = vmax.f32 %v1469_v9, %v5683_v17  ;;  %v1563_v27 = vadd.f32 %v1550_v63, %v1520_v20  ;;  %v1564_v28 = vadd.f32 %v1548_v50, %v1521_v58  ;;  %v1570_v29 = vmax.f32 %v1562_v18, 0.0  ;;  %v6327_v63 = vld [vmem:[#allocation6 + $0x2c] ss:$16 sps:$4 sm:$0xff]   ;;  %v6331_v6 = vld [vmem:[#allocation6 + $0x48] ss:$16 sps:$4 sm:$0xff]  }
 0x308   :  { %v5687_v3 = vrot.slane %v1486_v12, 9  ;;  %v1524_v19 = vmax.f32 %v1485_v13, %v5685_v16  ;;  %v1525_v30 = vmax.f32 %v1484_v11, %v5686_v21  ;;  %v1566_v31 = vadd.f32 %v1547_v47, %v1523_v22  ;;  %v6333_v9 = vld [vmem:[#allocation6 + $0x4c] ss:$16 sps:$4 sm:$0xff]   ;;  %v6334_v13 = vld [vmem:[#allocation6 + $0x60] ss:$16 sps:$4 sm:$0xff]  }
 0x309   :  { %v1572_v32 = vmax.f32 %v1564_v28, 0.0  ;;  %v1571_v33 = vmax.f32 %v1563_v27, 0.0  ;;  %v1565_v35 = vadd.f32 %v1551_v1, %v1522_v25  ;;  %v1583_v26 = vrot.slane %v1570_v29, %v7139_v10  ;;  %v6325_v1 = vld [vmem:[#allocation6 + $0x28] ss:$16 sps:$4 sm:$0xff]   ;;  %v6339_v11 = vld [vmem:[#allocation6 + $0x6c] ss:$16 sps:$4 sm:$0xff]  }
 0x30a   :  { %v1526_v36 = vmax.f32 %v1486_v12, %v5687_v3  ;;  %v1567_v34 = vadd.f32 %v1552_v61, %v1524_v19  ;;  %v1568_v23 = vadd.f32 %v1549_v59, %v1525_v30  ;;  %v1574_v24 = vmax.f32 %v1566_v31, 0.0  ;;  %v6330_v61 = vld [vmem:[#allocation6 + $0x44] ss:$16 sps:$4 sm:$0xff]   ;;  %v6345_v17 = vld [vmem:[#allocation6 + $0x8c] ss:$16 sps:$4 sm:$0xff]  }
 0x30b   :  { %v1573_v37 = vmax.f32 %v1565_v35, 0.0  ;;  %v1596_v42 = vrot.slane %v1571_v33, %v7139_v10  ;;  %v1608_v43 = vrot.slane %v1572_v32, %v7139_v10  ;;  %v6342_v14 = vld [vmem:[#allocation6 + $0x84] ss:$16 sps:$4 sm:$0xff]   ;;  %v6340_v20 = vld [vmem:[#allocation6 + $0x80] ss:$16 sps:$4 sm:$0xff]  }
 0x30c   :  { %v1576_v38 = vmax.f32 %v1568_v23, 0.0  ;;  %v1587_v39 = vrot.slane %v1574_v24, %v7139_v10  ;;  %v1575_v40 = vmax.f32 %v1567_v34, 0.0  ;;  %v1569_v41 = vadd.f32 %v1553_v15, %v1526_v36  ;;  %v6337_v15 = vld [vmem:[#allocation6 + $0x68] ss:$16 sps:$4 sm:$0xff]   ;;  %v6348_v58 = vld [vmem:[#allocation6 + $0xa4] ss:$16 sps:$4 sm:$0xff]  }
 0x30d   :  { %v1620_v49 = vrot.slane %v1573_v37, %v7139_v10  ;;  %v6343_v18 = vld [vmem:[#allocation6 + $0x88] ss:$16 sps:$4 sm:$0xff]   ;;  %v6351_v12 = vld [vmem:[#allocation6 + $0xac] ss:$16 sps:$4 sm:$0xff]   ;;  %v6346_v16 = vld [vmem:[#allocation6 + $0xa0] ss:$16 sps:$4 sm:$0xff]  }
 0x30e   :  { %v1600_v44 = vrot.slane %v1575_v40, %v7139_v10  ;;  %v1589_v45 = vsel %vm1588_vm13, %v1587_v39, %v1583_v26  ;;  %v1577_v46 = vmax.f32 %v1569_v41, 0.0  ;;  %v1612_v47 = vrot.slane %v1576_v38, %v7139_v10  ;;  %v6349_v21 = vld [vmem:[#allocation6 + $0xa8] ss:$16 sps:$4 sm:$0xff]   ;;  %v6354_v22 = vld [vmem:[#allocation6 + $0xc4] ss:$16 sps:$4 sm:$0xff]  }
 0x30f   :  { %v1627_v56 = vpack.c.bf16 %v1589_v45, %v1589_v45  ;;  %v6357_v25 = vld [vmem:[#allocation6 + $0xcc] ss:$16 sps:$4 sm:$0xff]   ;;  %v6352_v27 = vld [vmem:[#allocation6 + $0xc0] ss:$16 sps:$4 sm:$0xff]   ;;  %v6355_v28 = vld [vmem:[#allocation6 + $0xc8] ss:$16 sps:$4 sm:$0xff]  }
 0x310   :  { %v1601_v48 = vsel %vm1588_vm13, %v1600_v44, %v1596_v42  ;;  %v1624_v50 = vrot.slane %v1577_v46, %v7139_v10  ;;  %v1613_v51 = vsel %vm1588_vm13, %v1612_v47, %v1608_v43  ;;  %v6360_v29 = vld [vmem:[#allocation6 + $0xe4] ss:$16 sps:$4 sm:$0xff]   ;;  %v6363_v3 = vld [vmem:[#allocation6 + $0xec] ss:$16 sps:$4 sm:$0xff]   ;;  %v6358_v19 = vld [vmem:[#allocation6 + $0xe0] ss:$16 sps:$4 sm:$0xff]  }
 0x311   :  { %v1628_v52 = vpack.c.bf16 %v1601_v48, %v1601_v48  ;;  %v1629_v62 = vpack.c.bf16 %v1613_v51, %v1613_v51  ;;  %v6361_v30 = vld [vmem:[#allocation6 + $0xe8] ss:$16 sps:$4 sm:$0xff]   ;;  %v6366_v31 = vld [vmem:[#allocation7 + $0x4] ss:$16 sps:$4 sm:$0xff]   ;;  %v6369_v32 = vld [vmem:[#allocation7 + $0xc] ss:$16 sps:$4 sm:$0xff]  }
 0x312   :  { %v1625_v59 = vsel %vm1588_vm13, %v1624_v50, %v1620_v49  ;;  %v5689_v35 = vld [vmem:[%s8187_s6] ss:$0 sm:$0xff]  ;;  %v6367_v44 = vld [vmem:[#allocation7 + $0x8] ss:$16 sps:$4 sm:$0xff]   ;;  %v6372_v46 = vld [vmem:[#allocation7 + $0x24] ss:$16 sps:$4 sm:$0xff]  }
 0x313   :  { %1926 = vmatprep.mubr.bf16.mxu0 %v1628_v52  ;;  %v1630_v7 = vpack.c.bf16 %v1625_v59, %v1625_v59  ;;  %v6364_v43 = vld [vmem:[#allocation7] ss:$16 sps:$4 sm:$0xff]   ;;  %v6375_v48 = vld [vmem:[#allocation7 + $0x2c] ss:$16 sps:$4 sm:$0xff]   ;;  %v6373_v49 = vld [vmem:[#allocation7 + $0x28] ss:$16 sps:$4 sm:$0xff]  }
 0x314   :  { %1927 = vmatmul.mubr.bf16.vlgmr.msra.gmra.mrb[8].mxu0 %v1627_v56  ;;  %v6370_v47 = vld [vmem:[#allocation7 + $0x20] ss:$16 sps:$4 sm:$0xff]   ;;  %v6378_v50 = vld [vmem:[#allocation7 + $0x44] ss:$16 sps:$4 sm:$0xff]   ;;  %v6381_v52 = vld [vmem:[#allocation7 + $0x4c] ss:$16 sps:$4 sm:$0xff]  }
 0x315   :  { %1966 = vmatprep.mubr.bf16.mxu1 %v1630_v7  ;;  %2190 = vmatpush1.bf16.msra.mxu0 %v6316_v54  ;;  %v6376_v51 = vld [vmem:[#allocation7 + $0x40] ss:$16 sps:$4 sm:$0xff]   ;;  %v6379_v54 = vld [vmem:[#allocation7 + $0x48] ss:$16 sps:$4 sm:$0xff]   ;;  %v6384_v56 = vld [vmem:[#allocation7 + $0x64] ss:$16 sps:$4 sm:$0xff]  }
 0x316   :  { %1967 = vmatmul.mubr.bf16.vlgmr.msra.gmra.mrb[4].mxu1 %v1629_v62  ;;  %2191 = vmatprep.subr.bf16.mxu0 %v6324_v57  ;;  %v6382_v59 = vld [vmem:[#allocation7 + $0x60] ss:$16 sps:$4 sm:$0xff]   ;;  %v6387_v57 = vld [vmem:[#allocation7 + $0x6c] ss:$16 sps:$4 sm:$0xff]   ;;  %v6385_v7 = vld [vmem:[#allocation7 + $0x68] ss:$16 sps:$4 sm:$0xff]  }
 0x317   :  { %2231 = vmatpush1.bf16.msra.mxu1 %v6319_v60  ;;  %2221 = vmatprep.mubr.bf16.mxu0 %v6819_v0  ;;  %v6390_v60 = vld [vmem:[#allocation7 + $0x84] ss:$16 sps:$4 sm:$0xff]   ;;  %v6388_v62 = vld [vmem:[#allocation7 + $0x80] ss:$16 sps:$4 sm:$0xff]  }
 0x318   :  { %2232 = vmatprep.subr.bf16.mxu1 %v6327_v63  ;;  %2262 = vmatprep.mubr.bf16.mxu1 %v6819_v0  ;;  %v6393_v63 = vld [vmem:[#allocation7 + $0x8c] ss:$16 sps:$4 sm:$0xff]  }
 0x319   :  { %2192 = vmatpush1.bf16.msra.mxu0 %v6322_v2  ;;  %v6391_v2 = vld [vmem:[#allocation7 + $0x88] ss:$16 sps:$4 sm:$0xff]  }
 0x31a   :  { %2193 = vmatprep.subr.bf16.mxu0 %v6330_v61  ;;  %v6396_v61 = vld [vmem:[#allocation7 + $0xa4] ss:$16 sps:$4 sm:$0xff]  }
 0x31b   :  { %2233 = vmatpush1.bf16.msra.mxu1 %v6325_v1  ;;  %v6394_v1 = vld [vmem:[#allocation7 + $0xa0] ss:$16 sps:$4 sm:$0xff]  }
 0x31c   :  { %2234 = vmatprep.subr.bf16.mxu1 %v6333_v9  ;;  %v6397_v9 = vld [vmem:[#allocation7 + $0xa8] ss:$16 sps:$4 sm:$0xff]  }
 0x31d   :  { %2194 = vmatpush1.bf16.msra.mxu0 %v6328_v4  ;;  %v6399_v4 = vld [vmem:[#allocation7 + $0xac] ss:$16 sps:$4 sm:$0xff]  }
 0x31e   :  { %2195 = vmatprep.subr.bf16.mxu0 %v6336_v5  ;;  %v6402_v5 = vld [vmem:[#allocation7 + $0xc4] ss:$16 sps:$4 sm:$0xff]  }
 0x31f   :  { %2235 = vmatpush1.bf16.msra.mxu1 %v6331_v6  ;;  %v6400_v6 = vld [vmem:[#allocation7 + $0xc0] ss:$16 sps:$4 sm:$0xff]  }
 0x320   :  { %2236 = vmatprep.subr.bf16.mxu1 %v6339_v11  ;;  %v6405_v11 = vld [vmem:[#allocation7 + $0xcc] ss:$16 sps:$4 sm:$0xff]  }
 0x321   :  { %2196 = vmatpush1.bf16.msra.mxu0 %v6334_v13  ;;  %v6408_v13 = vld [vmem:[#allocation7 + $0xe4] ss:$16 sps:$4 sm:$0xff]  }
 0x322   :  { %2197 = vmatprep.subr.bf16.mxu0 %v6342_v14  ;;  %v6403_v14 = vld [vmem:[#allocation7 + $0xc8] ss:$16 sps:$4 sm:$0xff]  }
 0x323   :  { %2237 = vmatpush1.bf16.msra.mxu1 %v6337_v15  ;;  %v6411_v15 = vld [vmem:[#allocation7 + $0xec] ss:$16 sps:$4 sm:$0xff]  }
 0x324   :  { %2238 = vmatprep.subr.bf16.mxu1 %v6345_v17  ;;  %v6406_v17 = vld [vmem:[#allocation7 + $0xe0] ss:$16 sps:$4 sm:$0xff]  }
 0x325   :  { %2198 = vmatpush1.bf16.msra.mxu0 %v6340_v20  ;;  %v6414_v20 = vld [vmem:[#allocation9 + $0x4] ss:$8 sps:$4 sm:$0xff]  }
 0x326   :  { %2199 = vmatprep.subr.bf16.mxu0 %v6348_v58  ;;  %v6409_v58 = vld [vmem:[#allocation7 + $0xe8] ss:$16 sps:$4 sm:$0xff]  }
 0x327   :  { %2239 = vmatpush1.bf16.msra.mxu1 %v6343_v18  ;;  %v6822_v18 = vmov 1966171168  }
 0x328   :  { %2240 = vmatprep.subr.bf16.mxu1 %v6351_v12  ;;  %v2273_v12 = vunpack.c.l.s4 %v6822_v18 }
 0x329   :  { %2200 = vmatpush1.bf16.msra.mxu0 %v6346_v16  ;;  %v2019_v16 = vsub.s32 2, %v7113_v53 }
 0x32a   :  { %2201 = vmatprep.subr.bf16.mxu0 %v6354_v22  ;;  %v7345_v22 = vsub.s32 1, %v7113_v53 }
 0x32b   :  { %2241 = vmatpush1.bf16.msra.mxu1 %v6349_v21  ;;  %v2007_v21 = vld [vmem:[%s8189_s8] sm:$0xf] }
 0x32c   :  { %2242 = vmatprep.subr.bf16.mxu1 %v6357_v25  ;;  %v2023_v25 = vsub.s32 3, %v7113_v53 }
 0x32d   :  { %2202 = vmatpush1.bf16.msra.mxu0 %v6352_v27  ;;  %v2274_v27 = vunpack.c.0.s8 %v2273_v12 }
 0x32e   :  { %2203 = vmatprep.subr.bf16.mxu0 %v6360_v29  ;;  %v2020_v29 = vrot.slane %v2007_v21, %v2019_v16 }
 0x32f   :  { %2243 = vmatpush1.bf16.msra.mxu1 %v6355_v28  ;;  %v2012_v28 = vrot.slane %v2007_v21, %v7139_v10 }
 0x330   :  { %2244 = vmatprep.subr.bf16.mxu1 %v6363_v3  ;;  %v2016_v3 = vrot.slane %v2007_v21, %v7345_v22 }
 0x331   :  { %2204 = vmatpush1.bf16.msra.mxu0 %v6358_v19  ;;  %v2024_v19 = vrot.slane %v2007_v21, %v2023_v25 }
 0x332   :  { %2636 = vmatprep.subr.bf16.mxu0 %v6366_v31 }
 0x333   :  { %2245 = vmatpush1.bf16.msra.mxu1 %v6361_v30  ;;  %v7351_v30 = vsub.s32 %v2274_v27, %v7113_v53 }
 0x334   :  { %2677 = vmatprep.subr.bf16.mxu1 %v6369_v32 }
 0x3e7   :  { %v5983_v33 = vpop.f32.mrb[8].mxu0 }
 0x3e8   :  { %v5984_v36 = vpop.f32.mrb[9].mxu0 }
 0x3e9   :  { %v5985_v34 = vadd.f32 %v5984_v36, %v5983_v33  ;;  %v5986_v23 = vpop.f32.mrb[10].mxu0  ;;  %v6005_v24 = vpop.f32.mrb[4].mxu1 }
 0x3ea   :  { %v5987_v26 = vpop.f32.mrb[11].mxu0  ;;  %v6006_v37 = vpop.f32.mrb[5].mxu1 }
 0x3eb   :  { %v1929_v38 = vadd.f32 %v5985_v34, %v5689_v35  ;;  %v6007_v39 = vadd.f32 %v6006_v37, %v6005_v24  ;;  %v6008_v40 = vpop.f32.mrb[6].mxu1 }
 0x3ec   :  { %v6009_v41 = vpop.f32.mrb[7].mxu1 }
 0x3ed   :  { %v1969_v42 = vadd.f32 %v6007_v39, %v1929_v38 }
 0x3ef   :  { %v1974_v45 = vpack.c.bf16 %v1969_v42, %v1969_v42 }
 0x3f1   :  { %2222 = vmatmul.mubr.bf16.vlgmr.msra.gmra.mrb[12].mxu0 %v1974_v45  ;;  %2263 = vmatmul.mubr.bf16.vlgmr.msra.gmra.mrb[8].mxu1 %v1974_v45 }
 0x3f2   :  { %2637 = vmatpush1.bf16.msra.mxu0 %v6364_v43  ;;  %2678 = vmatpush1.bf16.msra.mxu1 %v6367_v44 }
 0x3f3   :  { %2638 = vmatprep.subr.bf16.mxu0 %v6372_v46  ;;  %2668 = vmatprep.mubr.bf16.mxu0 %v6819_v0 }
 0x3f4   :  { %2709 = vmatprep.mubr.bf16.mxu1 %v6819_v0  ;;  %2679 = vmatprep.subr.bf16.mxu1 %v6375_v48 }
 0x3f6   :  { %2639 = vmatpush1.bf16.msra.mxu0 %v6370_v47  ;;  %2680 = vmatpush1.bf16.msra.mxu1 %v6373_v49 }
 0x3f7   :  { %2640 = vmatprep.subr.bf16.mxu0 %v6378_v50  ;;  %2681 = vmatprep.subr.bf16.mxu1 %v6381_v52 }
 0x3fa   :  { %2641 = vmatpush1.bf16.msra.mxu0 %v6376_v51  ;;  %2682 = vmatpush1.bf16.msra.mxu1 %v6379_v54 }
 0x3fb   :  { %2642 = vmatprep.subr.bf16.mxu0 %v6384_v56  ;;  %2683 = vmatprep.subr.bf16.mxu1 %v6387_v57 }
 0x3fe   :  { %2643 = vmatpush1.bf16.msra.mxu0 %v6382_v59  ;;  %2684 = vmatpush1.bf16.msra.mxu1 %v6385_v7 }
 0x3ff   :  { %2644 = vmatprep.subr.bf16.mxu0 %v6390_v60  ;;  %2685 = vmatprep.subr.bf16.mxu1 %v6393_v63 }
 0x402   :  { %2645 = vmatpush1.bf16.msra.mxu0 %v6388_v62  ;;  %2686 = vmatpush1.bf16.msra.mxu1 %v6391_v2 }
 0x403   :  { %2646 = vmatprep.subr.bf16.mxu0 %v6396_v61  ;;  %2687 = vmatprep.subr.bf16.mxu1 %v6399_v4 }
 0x406   :  { %2647 = vmatpush1.bf16.msra.mxu0 %v6394_v1  ;;  %2688 = vmatpush1.bf16.msra.mxu1 %v6397_v9 }
 0x407   :  { %2648 = vmatprep.subr.bf16.mxu0 %v6402_v5  ;;  %2689 = vmatprep.subr.bf16.mxu1 %v6405_v11 }
 0x40a   :  { %2649 = vmatpush1.bf16.msra.mxu0 %v6400_v6  ;;  %2690 = vmatpush1.bf16.msra.mxu1 %v6403_v14 }
 0x40b   :  { %2650 = vmatprep.subr.bf16.mxu0 %v6408_v13  ;;  %2691 = vmatprep.subr.bf16.mxu1 %v6411_v15 }
 0x40e   :  { %2651 = vmatpush1.bf16.msra.mxu0 %v6406_v17  ;;  %2692 = vmatpush1.bf16.msra.mxu1 %v6409_v58 }
 0x40f   :  { %2814 = vmatprep.subr.bf16.mxu0 %v6414_v20 }
 0x4c4   :  { %v2223_v31 = vpop.f32.mrb[12].mxu0  ;;  %v2264_v32 = vpop.f32.mrb[8].mxu1 }
 0x4c5   :  { %v2224_v33 = vadd.f32 %v2223_v31, %v2012_v28  ;;  %v2265_v35 = vadd.f32 %v2264_v32, %v2020_v29  ;;  %v2225_v36 = vpop.f32.mrb[13].mxu0  ;;  %v2266_v34 = vpop.f32.mrb[9].mxu1 }
 0x4c6   :  { %v2226_v23 = vadd.f32 %v2225_v36, %v2016_v3  ;;  %v2267_v24 = vadd.f32 %v2266_v34, %v2024_v19  ;;  %v2227_v26 = vpop.f32.mrb[14].mxu0  ;;  %v2268_v37 = vpop.f32.mrb[10].mxu1  ;;  %v6412_v36 = vld [vmem:[#allocation9] ss:$8 sps:$4 sm:$0xff]  }
 0x4c7   :  { %v2278_v38 = vrot.slane %v2224_v33, %v7351_v30  ;;  %v2326_v39 = vrot.slane %v2265_v35, %v7351_v30  ;;  %v2228_v40 = vpop.f32.mrb[15].mxu0  ;;  %v2269_v41 = vpop.f32.mrb[11].mxu1  ;;  %v6420_v26 = vld [vmem:[#allocation9 + $0x24] ss:$8 sps:$4 sm:$0xff]   ;;  %v6418_v37 = vld [vmem:[#allocation9 + $0x20] ss:$8 sps:$4 sm:$0xff]  }
 0x4c8   :  { %v2303_v42 = vrot.slane %v2226_v23, %v7351_v30  ;;  %v2349_v53 = vrot.slane %v2267_v24, %v7351_v30  ;;  %v6417_v23 = vld [vmem:[#allocation9 + $0x14] ss:$8 sps:$4 sm:$0xff]   ;;  %v6415_v24 = vld [vmem:[#allocation9 + $0x10] ss:$8 sps:$4 sm:$0xff]   ;;  %v6426_v40 = vld [vmem:[#allocation9 + $0x44] ss:$8 sps:$4 sm:$0xff]  }
 0x4c9   :  { %v2279_v43 = vcombine.high %v2278_v38, %v2278_v38  ;;  %v2327_v44 = vcombine.high %v2326_v39, %v2326_v39  ;;  %v2334_v45 = vrot.slane %v2326_v39, %v7351_v30  ;;  %v2286_v51 = vrot.slane %v2278_v38, %v7351_v30  ;;  %v6423_v38 = vld [vmem:[#allocation9 + $0x34] ss:$8 sps:$4 sm:$0xff]   ;;  %v6421_v39 = vld [vmem:[#allocation9 + $0x30] ss:$8 sps:$4 sm:$0xff]   ;;  %v6424_v41 = vld [vmem:[#allocation9 + $0x40] ss:$8 sps:$4 sm:$0xff]  }
 0x4ca   :  { %v2304_v46 = vcombine.high %v2303_v42, %v2303_v42  ;;  %v2311_v47 = vrot.slane %v2303_v42, %v7351_v30  ;;  %v2350_v48 = vcombine.high %v2349_v53, %v2349_v53  ;;  %v2357_v49 = vrot.slane %v2349_v53, %v7351_v30  ;;  %v6429_v42 = vld [vmem:[#allocation9 + $0x54] ss:$8 sps:$4 sm:$0xff]   ;;  %v6427_v53 = vld [vmem:[#allocation9 + $0x50] ss:$8 sps:$4 sm:$0xff]  }
 0x4cb   :  { %v2341_v50 = vrot.slane %v2327_v44, %v7351_v30  ;;  %v2378_v59 = vrot.slane %v2334_v45, %v7139_v10  ;;  %v2293_v57 = vrot.slane %v2279_v43, %v7351_v30  ;;  %v6432_v43 = vld [vmem:[#allocation9 + $0x64] ss:$8 sps:$4 sm:$0xff]   ;;  %v6435_v44 = vld [vmem:[#allocation9 + $0x74] ss:$8 sps:$4 sm:$0xff]   ;;  %v6433_v45 = vld [vmem:[#allocation9 + $0x70] ss:$8 sps:$4 sm:$0xff]  }
 0x4cc   :  { %v2318_v52 = vrot.slane %v2304_v46, %v7351_v30  ;;  %v2368_v54 = vrot.slane %v2311_v47, %v7139_v10  ;;  %v2364_v56 = vrot.slane %v2350_v48, %v7351_v30  ;;  %v2388_v62 = vrot.slane %v2357_v49, %v7139_v10  ;;  %v6438_v47 = vld [vmem:[%s8193_s12 + $0xc] ss:$16 sps:$4 sm:$0xff]   ;;  %v6436_v48 = vld [vmem:[%s8193_s12 + $0x8] ss:$16 sps:$4 sm:$0xff]   ;;  %v6441_v49 = vld [vmem:[%s8193_s12 + $0x4] ss:$16 sps:$4 sm:$0xff]  }
 0x4cd   :  { %v2382_v63 = vrot.slane %v2341_v50, %v7139_v10  ;;  %v6439_v50 = vld [vmem:[%s8193_s12] ss:$16 sps:$4 sm:$0xff]   ;;  %3717 = vmatprep.subr.bf16.mxu1 %v6441_v49  ;;  %v6531_v49 = vld [vmem:[%s8193_s12 + $0x1e4] ss:$16 sps:$4 sm:$0xff]  }
 0x4ce   :  { %v2372_v7 = vrot.slane %v2318_v52, %v7139_v10  ;;  %v2395_v60 = vsel %vm160_vm0, %v2286_v51, %v2368_v54  ;;  %v2392_v1 = vrot.slane %v2364_v56, %v7139_v10  ;;  %v6444_v51 = vld [vmem:[%s8193_s12 + $0x2c] ss:$16 sps:$4 sm:$0xff]   ;;  %v6442_v52 = vld [vmem:[%s8193_s12 + $0x28] ss:$16 sps:$4 sm:$0xff]   ;;  %v6447_v54 = vld [vmem:[%s8193_s12 + $0x24] ss:$16 sps:$4 sm:$0xff]  }
 0x4cf   :  { %v2398_v2 = vsel %vm2397_vm14, %v2395_v60, %v2378_v59  ;;  %v6445_v56 = vld [vmem:[%s8193_s12 + $0x20] ss:$16 sps:$4 sm:$0xff]   ;;  %v6450_v59 = vld [vmem:[%s8193_s12 + $0x4c] ss:$16 sps:$4 sm:$0xff]  }
 0x4d0   :  { %v2396_v61 = vsel %vm160_vm0, %v2293_v57, %v2372_v7  ;;  %v2401_v9 = vsel %vm2400_vm15, %v2398_v2, %v2388_v62  ;;  %v6448_v57 = vld [vmem:[%s8193_s12 + $0x48] ss:$16 sps:$4 sm:$0xff]   ;;  %v6453_v7 = vld [vmem:[%s8193_s12 + $0x44] ss:$16 sps:$4 sm:$0xff]   ;;  %v6451_v60 = vld [vmem:[%s8193_s12 + $0x40] ss:$16 sps:$4 sm:$0xff]  }
 0x4d1   :  { %v2399_v4 = vsel %vm2397_vm14, %v2396_v61, %v2382_v63  ;;  %v2405_v5 = vrot.slane %v2401_v9, 7  ;;  %v6456_v62 = vld [vmem:[%s8193_s12 + $0x6c] ss:$16 sps:$4 sm:$0xff]   ;;  %v6454_v63 = vld [vmem:[%s8193_s12 + $0x68] ss:$16 sps:$4 sm:$0xff]  }
 0x4d2   :  { %v2402_v6 = vsel %vm2400_vm15, %v2399_v4, %v2392_v1  ;;  %v6459_v2 = vld [vmem:[%s8193_s12 + $0x64] ss:$16 sps:$4 sm:$0xff]   ;;  %v6457_v61 = vld [vmem:[%s8193_s12 + $0x60] ss:$16 sps:$4 sm:$0xff]   ;;  %v6462_v1 = vld [vmem:[%s8193_s12 + $0x8c] ss:$16 sps:$4 sm:$0xff]  }
 0x4d3   :  { %v2406_v11 = vrot.slane %v2402_v6, 7  ;;  %v2409_v13 = vsel %vm160_vm0, 0.0, %v2405_v5  ;;  %v6465_v9 = vld [vmem:[%s8193_s12 + $0x84] ss:$16 sps:$4 sm:$0xff]   ;;  %v6460_v4 = vld [vmem:[%s8193_s12 + $0x88] ss:$16 sps:$4 sm:$0xff]  }
 0x4d4   :  { %v2412_v14 = vsel %vm2411_vm3, %v2409_v13, 0.0  ;;  %v6463_v5 = vld [vmem:[%s8193_s12 + $0x80] ss:$16 sps:$4 sm:$0xff]   ;;  %v6468_v6 = vld [vmem:[%s8193_s12 + $0xac] ss:$16 sps:$4 sm:$0xff]  }
 0x4d5   :  { %v2410_v15 = vsel %vm160_vm0, 0.0, %v2406_v11  ;;  %v2416_v17 = vcombine.high %v2412_v14, %v2412_v14  ;;  %v5754_v16 = vrot.slane %v2412_v14, 9  ;;  %v5756_v21 = vrot.slane %v2412_v14, 10  ;;  %v6471_v11 = vld [vmem:[%s8193_s12 + $0xa4] ss:$16 sps:$4 sm:$0xff]  }
 0x4d6   :  { %v2413_v20 = vsel %vm2411_vm3, %v2410_v15, 0.0  ;;  %v6466_v13 = vld [vmem:[%s8193_s12 + $0xa8] ss:$16 sps:$4 sm:$0xff]   ;;  %v6469_v14 = vld [vmem:[%s8193_s12 + $0xa0] ss:$16 sps:$4 sm:$0xff]  }
 0x4d7   :  { %v2417_v58 = vcombine.high %v2413_v20, %v2413_v20  ;;  %v2422_v18 = vrot.slane %v2416_v17, 5  ;;  %v2435_v12 = vrot.slane %v2416_v17, 6  ;;  %v5755_v25 = vrot.slane %v2413_v20, 9  ;;  %v6474_v15 = vld [vmem:[%s8193_s12 + $0xcc] ss:$16 sps:$4 sm:$0xff]  }
 0x4d8   :  { %v5757_v28 = vrot.slane %v2413_v20, 10  ;;  %v6472_v17 = vld [vmem:[%s8193_s12 + $0xc8] ss:$16 sps:$4 sm:$0xff]   ;;  %v6477_v20 = vld [vmem:[%s8193_s12 + $0xc4] ss:$16 sps:$4 sm:$0xff]  }
 0x4d9   :  { %v2426_v27 = vrot.slane %v2417_v58, 5  ;;  %v2439_v29 = vrot.slane %v2417_v58, 6  ;;  %v2423_v3 = vsel %vm2419_vm7, %v5754_v16, %v2422_v18  ;;  %v2436_v31 = vsel %vm2432_vm8, %v5756_v21, %v2435_v12  ;;  %v6475_v58 = vld [vmem:[%s8193_s12 + $0xc0] ss:$16 sps:$4 sm:$0xff]   ;;  %v6480_v18 = vld [vmem:[%s8193_s12 + $0xec] ss:$16 sps:$4 sm:$0xff]  }
 0x4da   :  { %v6478_v12 = vld [vmem:[%s8193_s12 + $0xe8] ss:$16 sps:$4 sm:$0xff]   ;;  %v6483_v16 = vld [vmem:[%s8193_s12 + $0xe4] ss:$16 sps:$4 sm:$0xff]   ;;  %v6481_v21 = vld [vmem:[%s8193_s12 + $0xe0] ss:$16 sps:$4 sm:$0xff]  }
 0x4db   :  { %v2427_v19 = vsel %vm2419_vm7, %v5755_v25, %v2426_v27  ;;  %v2440_v32 = vsel %vm2432_vm8, %v5757_v28, %v2439_v29  ;;  %v6486_v25 = vld [vmem:[%s8193_s12 + $0x10c] ss:$16 sps:$4 sm:$0xff]   ;;  %v6484_v27 = vld [vmem:[%s8193_s12 + $0x108] ss:$16 sps:$4 sm:$0xff]   ;;  %v6489_v28 = vld [vmem:[%s8193_s12 + $0x104] ss:$16 sps:$4 sm:$0xff]  }
 0x4dc   :  { %v2428_v33 = vcombine.low %v2423_v3, %v2427_v19  ;;  %v2441_v35 = vcombine.low %v2436_v31, %v2440_v32  ;;  %v6487_v29 = vld [vmem:[%s8193_s12 + $0x100] ss:$16 sps:$4 sm:$0xff]   ;;  %v6492_v3 = vld [vmem:[%s8193_s12 + $0x12c] ss:$16 sps:$4 sm:$0xff]   ;;  %v6490_v19 = vld [vmem:[%s8193_s12 + $0x128] ss:$16 sps:$4 sm:$0xff]  }
 0x4dd   :  { %v6495_v31 = vld [vmem:[%s8193_s12 + $0x124] ss:$16 sps:$4 sm:$0xff]   ;;  %v6493_v32 = vld [vmem:[%s8193_s12 + $0x120] ss:$16 sps:$4 sm:$0xff]  }
 0x4de   :  { %v2430_v34 = vpack.c.bf16 %v2428_v33, %v2428_v33  ;;  %v2443_v46 = vpack.c.bf16 %v2441_v35, %v2441_v35  ;;  %v6498_v33 = vld [vmem:[%s8193_s12 + $0x14c] ss:$16 sps:$4 sm:$0xff]   ;;  %v6496_v35 = vld [vmem:[%s8193_s12 + $0x148] ss:$16 sps:$4 sm:$0xff]  }
 0x4e0   :  { %2669 = vmatmul.mubr.bf16.vlgmr.msra.gmra.mrb[16].mxu0 %v2430_v34  ;;  %2710 = vmatmul.mubr.bf16.vlgmr.msra.gmra.mrb[12].mxu1 %v2430_v34  ;;  %v6499_v34 = vld [vmem:[%s8193_s12 + $0x140] ss:$16 sps:$4 sm:$0xff]  }
 0x4e1   :  { %2815 = vmatpush1.bf16.msra.mxu0 %v6412_v36  ;;  %2846 = vmatprep.mubr.bf16.mxu0 %v6819_v0  ;;  %v6430_v0 = vld [vmem:[#allocation9 + $0x60] ss:$8 sps:$4 sm:$0xff]   ;;  %v6501_v36 = vld [vmem:[%s8193_s12 + $0x144] ss:$16 sps:$4 sm:$0xff]  }
 0x4e2   :  { %2816 = vmatprep.subr.bf16.mxu0 %v6417_v23  ;;  %3718 = vmatpush1.bf16.msra.mxu1 %v6439_v50  ;;  %v6502_v23 = vld [vmem:[%s8193_s12 + $0x168] ss:$16 sps:$4 sm:$0xff]  }
 0x4e3   :  { %3719 = vmatprep.subr.bf16.mxu1 %v6447_v54  ;;  %v6526_v50 = vld [vmem:[%s8193_s12 + $0x1e8] ss:$16 sps:$4 sm:$0xff]   ;;  %v2857_v54 = vld [vmem:[%s8192_s11] sm:$0x3] }
 0x4e5   :  { %2817 = vmatpush1.bf16.msra.mxu0 %v6415_v24  ;;  %v6504_v24 = vld [vmem:[%s8193_s12 + $0x16c] ss:$16 sps:$4 sm:$0xff]  }
 0x4e6   :  { %2818 = vmatprep.subr.bf16.mxu0 %v6420_v26  ;;  %3720 = vmatpush1.bf16.msra.mxu1 %v6445_v56  ;;  %v6505_v26 = vld [vmem:[%s8193_s12 + $0x160] ss:$16 sps:$4 sm:$0xff]   ;;  %v2862_v56 = vrot.slane %v2857_v54, %v7139_v10 }
 0x4e7   :  { %3721 = vmatprep.subr.bf16.mxu1 %v6453_v7 }
 0x4e9   :  { %2819 = vmatpush1.bf16.msra.mxu0 %v6418_v37  ;;  %v6507_v37 = vld [vmem:[%s8193_s12 + $0x164] ss:$16 sps:$4 sm:$0xff]  }
 0x4ea   :  { %2820 = vmatprep.subr.bf16.mxu0 %v6423_v38  ;;  %3722 = vmatpush1.bf16.msra.mxu1 %v6451_v60  ;;  %v6510_v38 = vld [vmem:[%s8193_s12 + $0x18c] ss:$16 sps:$4 sm:$0xff]  }
 0x4eb   :  { %3723 = vmatprep.subr.bf16.mxu1 %v6459_v2 }
 0x4ed   :  { %2821 = vmatpush1.bf16.msra.mxu0 %v6421_v39  ;;  %v6513_v39 = vld [vmem:[%s8193_s12 + $0x184] ss:$16 sps:$4 sm:$0xff]  }
 0x4ee   :  { %2822 = vmatprep.subr.bf16.mxu0 %v6426_v40  ;;  %3724 = vmatpush1.bf16.msra.mxu1 %v6457_v61  ;;  %v6508_v40 = vld [vmem:[%s8193_s12 + $0x188] ss:$16 sps:$4 sm:$0xff]  }
 0x4ef   :  { %3725 = vmatprep.subr.bf16.mxu1 %v6465_v9 }
 0x4f1   :  { %2823 = vmatpush1.bf16.msra.mxu0 %v6424_v41  ;;  %v6511_v41 = vld [vmem:[%s8193_s12 + $0x180] ss:$16 sps:$4 sm:$0xff]  }
 0x4f2   :  { %2824 = vmatprep.subr.bf16.mxu0 %v6429_v42  ;;  %3726 = vmatpush1.bf16.msra.mxu1 %v6463_v5  ;;  %v6516_v42 = vld [vmem:[%s8193_s12 + $0x1ac] ss:$16 sps:$4 sm:$0xff]  }
 0x4f3   :  { %3727 = vmatprep.subr.bf16.mxu1 %v6471_v11 }
 0x4f5   :  { %2825 = vmatpush1.bf16.msra.mxu0 %v6427_v53  ;;  %v6519_v53 = vld [vmem:[%s8193_s12 + $0x1a4] ss:$16 sps:$4 sm:$0xff]  }
 0x4f6   :  { %2826 = vmatprep.subr.bf16.mxu0 %v6432_v43  ;;  %3728 = vmatpush1.bf16.msra.mxu1 %v6469_v14  ;;  %v6514_v43 = vld [vmem:[%s8193_s12 + $0x1a8] ss:$16 sps:$4 sm:$0xff]  }
 0x4f7   :  { %3729 = vmatprep.subr.bf16.mxu1 %v6477_v20 }
 0x4f9   :  { %2827 = vmatpush1.bf16.msra.mxu0 %v6430_v0  ;;  %v6517_v0 = vld [vmem:[%s8193_s12 + $0x1a0] ss:$16 sps:$4 sm:$0xff]  }
 0x4fa   :  { %2828 = vmatprep.subr.bf16.mxu0 %v6435_v44  ;;  %3730 = vmatpush1.bf16.msra.mxu1 %v6475_v58  ;;  %v6522_v44 = vld [vmem:[%s8193_s12 + $0x1cc] ss:$16 sps:$4 sm:$0xff]  }
 0x4fb   :  { %3731 = vmatprep.subr.bf16.mxu1 %v6483_v16 }
 0x4fd   :  { %2829 = vmatpush1.bf16.msra.mxu0 %v6433_v45  ;;  %v6525_v45 = vld [vmem:[%s8193_s12 + $0x1c4] ss:$16 sps:$4 sm:$0xff]  }
 0x4fe   :  { %3760 = vmatprep.subr.bf16.mxu0 %v6438_v47  ;;  %3732 = vmatpush1.bf16.msra.mxu1 %v6481_v21  ;;  %v6523_v47 = vld [vmem:[%s8193_s12 + $0x1c0] ss:$16 sps:$4 sm:$0xff]  }
 0x4ff   :  { %3733 = vmatprep.subr.bf16.mxu1 %v6489_v28 }
 0x500   :  { %2847 = vmatmul.mubr.bf16.vlgmr.msra.gmra.mrb[20].mxu0 %v2443_v46  ;;  %v6520_v46 = vld [vmem:[%s8193_s12 + $0x1c8] ss:$16 sps:$4 sm:$0xff]  }
 0x501   :  { %3761 = vmatpush1.bf16.msra.mxu0 %v6436_v48  ;;  %v6528_v48 = vld [vmem:[%s8193_s12 + $0x1ec] ss:$16 sps:$4 sm:$0xff]  }
 0x502   :  { %3762 = vmatprep.subr.bf16.mxu0 %v6444_v51  ;;  %3734 = vmatpush1.bf16.msra.mxu1 %v6487_v29  ;;  %v6529_v51 = vld [vmem:[%s8193_s12 + $0x1e0] ss:$16 sps:$4 sm:$0xff]  }
 0x503   :  { %3735 = vmatprep.subr.bf16.mxu1 %v6495_v31 }
 0x505   :  { %3763 = vmatpush1.bf16.msra.mxu0 %v6442_v52  ;;  %v6534_v52 = vld [vmem:[#allocation10 + $0x4] ss:$8 sps:$4 sm:$0xff]  }
 0x506   :  { %3764 = vmatprep.subr.bf16.mxu0 %v6450_v59  ;;  %3736 = vmatpush1.bf16.msra.mxu1 %v6493_v32  ;;  %v2866_v59 = vrot.slane %v2857_v54, %v7345_v22 }
 0x507   :  { %3737 = vmatprep.subr.bf16.mxu1 %v6501_v36 }
 0x509   :  { %3765 = vmatpush1.bf16.msra.mxu0 %v6448_v57 }
 0x50a   :  { %3766 = vmatprep.subr.bf16.mxu0 %v6456_v62  ;;  %3738 = vmatpush1.bf16.msra.mxu1 %v6499_v34 }
 0x50b   :  { %3739 = vmatprep.subr.bf16.mxu1 %v6507_v37 }
 0x50d   :  { %3767 = vmatpush1.bf16.msra.mxu0 %v6454_v63 }
 0x50e   :  { %3768 = vmatprep.subr.bf16.mxu0 %v6462_v1  ;;  %3740 = vmatpush1.bf16.msra.mxu1 %v6505_v26 }
 0x50f   :  { %3741 = vmatprep.subr.bf16.mxu1 %v6513_v39 }
 0x511   :  { %3769 = vmatpush1.bf16.msra.mxu0 %v6460_v4 }
 0x512   :  { %3770 = vmatprep.subr.bf16.mxu0 %v6468_v6  ;;  %3742 = vmatpush1.bf16.msra.mxu1 %v6511_v41 }
 0x513   :  { %3743 = vmatprep.subr.bf16.mxu1 %v6519_v53 }
 0x515   :  { %3771 = vmatpush1.bf16.msra.mxu0 %v6466_v13 }
 0x516   :  { %3772 = vmatprep.subr.bf16.mxu0 %v6474_v15  ;;  %3744 = vmatpush1.bf16.msra.mxu1 %v6517_v0 }
 0x517   :  { %3745 = vmatprep.subr.bf16.mxu1 %v6525_v45 }
 0x519   :  { %3773 = vmatpush1.bf16.msra.mxu0 %v6472_v17 }
 0x51a   :  { %3774 = vmatprep.subr.bf16.mxu0 %v6480_v18  ;;  %3746 = vmatpush1.bf16.msra.mxu1 %v6523_v47 }
 0x51b   :  { %3747 = vmatprep.subr.bf16.mxu1 %v6531_v49 }
 0x51d   :  { %3775 = vmatpush1.bf16.msra.mxu0 %v6478_v12 }
 0x51e   :  { %3776 = vmatprep.subr.bf16.mxu0 %v6486_v25  ;;  %3748 = vmatpush1.bf16.msra.mxu1 %v6529_v51 }
 0x521   :  { %3777 = vmatpush1.bf16.msra.mxu0 %v6484_v27 }
 0x522   :  { %3778 = vmatprep.subr.bf16.mxu0 %v6492_v3 }
 0x525   :  { %3779 = vmatpush1.bf16.msra.mxu0 %v6490_v19 }
 0x526   :  { %3780 = vmatprep.subr.bf16.mxu0 %v6498_v33 }
 0x529   :  { %3781 = vmatpush1.bf16.msra.mxu0 %v6496_v35 }
 0x52a   :  { %3782 = vmatprep.subr.bf16.mxu0 %v6504_v24 }
 0x52d   :  { %3783 = vmatpush1.bf16.msra.mxu0 %v6502_v23 }
 0x52e   :  { %3784 = vmatprep.subr.bf16.mxu0 %v6510_v38 }
 0x531   :  { %3785 = vmatpush1.bf16.msra.mxu0 %v6508_v40 }
 0x532   :  { %3786 = vmatprep.subr.bf16.mxu0 %v6516_v42 }
 0x535   :  { %3787 = vmatpush1.bf16.msra.mxu0 %v6514_v43 }
 0x536   :  { %3788 = vmatprep.subr.bf16.mxu0 %v6522_v44 }
 0x539   :  { %3789 = vmatpush1.bf16.msra.mxu0 %v6520_v46 }
 0x53a   :  { %3790 = vmatprep.subr.bf16.mxu0 %v6528_v48 }
 0x53d   :  { %3791 = vmatpush1.bf16.msra.mxu0 %v6526_v50 }
 0x53e   :  { %3995 = vmatprep.subr.bf16.mxu0 %v6534_v52 }
 0x5b3   :  { %v2670_v57 = vpop.f32.mrb[16].mxu0  ;;  %v2711_v7 = vpop.f32.mrb[12].mxu1 }
 0x5b4   :  { %v2869_v60 = vadd.f32 %v2862_v56, %v2670_v57  ;;  %v2672_v62 = vpop.f32.mrb[17].mxu0  ;;  %v2713_v63 = vpop.f32.mrb[13].mxu1 }
 0x5b5   :  { %v2870_v2 = vadd.f32 %v2866_v59, %v2672_v62  ;;  %v2674_v61 = vpop.f32.mrb[18].mxu0  ;;  %v2715_v1 = vpop.f32.mrb[14].mxu1 }
 0x5b6   :  { %v2871_v9 = vmax.f32 %v2869_v60, 0.0  ;;  %v2675_v4 = vpop.f32.mrb[19].mxu0  ;;  %v2716_v5 = vpop.f32.mrb[15].mxu1 }
 0x5b7   :  { %v2872_v6 = vmax.f32 %v2870_v2, 0.0 }
 0x5b9   :  { %v2879_v11 = vcombine.low %v2871_v9, %v2872_v6  ;;  %v2880_v13 = vcombine.high %v2871_v9, %v2872_v6 }
 0x5bb   :  { %v2887_v14 = vrot.slane %v2879_v11, %v7351_v30  ;;  %v2894_v15 = vrot.slane %v2880_v13, %v7351_v30 }
 0x5bd   :  { %v2895_v17 = vcombine.high %v2887_v14, %v2887_v14  ;;  %v2896_v58 = vcombine.high %v2894_v15, %v2894_v15  ;;  %v7582_v16 = vrot.slane %v2887_v14, %v7351_v30  ;;  %v7585_v27 = vrot.slane %v2894_v15, %v7351_v30 }
 0x5bf   :  { %v2917_v28 = vrot.slane %v2895_v17, %v7351_v30  ;;  %v7589_v31 = vrot.slane %v2896_v58, %v7351_v30  ;;  %v2925_v33 = vcombine.high %v7582_v16, %v7582_v16  ;;  %v2926_v36 = vcombine.high %v7585_v27, %v7585_v27 }
 0x5c0   :  { %v2984_v23 = vrot.slane %v7582_v16, %v7139_v10  ;;  %v2988_v24 = vrot.slane %v7582_v16, %v7345_v22  ;;  %v3016_v26 = vrot.slane %v7585_v27, %v7139_v10  ;;  %v3020_v42 = vrot.slane %v7585_v27, %v7345_v22 }
 0x5c1   :  { %v7595_v34 = vcombine.high %v2917_v28, %v2917_v28  ;;  %v2928_v39 = vcombine.high %v7589_v31, %v7589_v31  ;;  %v2992_v40 = vrot.slane %v2917_v28, %v7139_v10  ;;  %v2996_v41 = vrot.slane %v2917_v28, %v7345_v22 }
 0x5c2   :  { %v3000_v53 = vrot.slane %v2925_v33, %v7139_v10  ;;  %v3004_v43 = vrot.slane %v2925_v33, %v7345_v22  ;;  %v3024_v47 = vrot.slane %v7589_v31, %v7139_v10  ;;  %v3028_v48 = vrot.slane %v7589_v31, %v7345_v22 }
 0x5c3   :  { %v3008_v45 = vrot.slane %v7595_v34, %v7139_v10  ;;  %v3012_v46 = vrot.slane %v7595_v34, %v7345_v22  ;;  %v3032_v54 = vrot.slane %v2926_v36, %v7139_v10  ;;  %v3044_v57 = vrot.slane %v2928_v39, %v7345_v22 }
 0x5d3   :  { %v2848_v20 = vpop.f32.mrb[20].mxu0 }
 0x5d4   :  { %v2855_v18 = vadd.f32 %v2848_v20, %v2711_v7  ;;  %v2850_v12 = vpop.f32.mrb[21].mxu0 }
 0x5d5   :  { %v2856_v21 = vadd.f32 %v2850_v12, %v2713_v63  ;;  %v2852_v25 = vpop.f32.mrb[22].mxu0 }
 0x5d6   :  { %v2873_v29 = vadd.f32 %v2862_v56, %v2855_v18  ;;  %v2853_v3 = vpop.f32.mrb[23].mxu0  ;;  %v3036_v56 = vrot.slane %v2926_v36, %v7345_v22 }
 0x5d7   :  { %v2874_v19 = vadd.f32 %v2866_v59, %v2856_v21  ;;  %v3040_v59 = vrot.slane %v2928_v39, %v7139_v10 }
 0x5d8   :  { %v2875_v32 = vmax.f32 %v2873_v29, 0.0 }
 0x5d9   :  { %v2876_v35 = vmax.f32 %v2874_v19, 0.0 }
 0x5db   :  { %v2931_v37 = vcombine.low %v2875_v32, %v2876_v35  ;;  %v2932_v38 = vcombine.high %v2875_v32, %v2876_v35 }
 0x5dd   :  { %v2939_v0 = vrot.slane %v2931_v37, %v7351_v30  ;;  %v2946_v44 = vrot.slane %v2932_v38, %v7351_v30 }
 0x5df   :  { %v2947_v49 = vcombine.high %v2939_v0, %v2939_v0  ;;  %v2948_v50 = vcombine.high %v2946_v44, %v2946_v44  ;;  %v2955_v51 = vrot.slane %v2939_v0, %v7351_v30  ;;  %v2962_v52 = vrot.slane %v2946_v44, %v7351_v30 }
 0x5e1   :  { %v2969_v7 = vrot.slane %v2947_v49, %v7351_v30  ;;  %v2976_v60 = vrot.slane %v2948_v50, %v7351_v30  ;;  %v2977_v62 = vcombine.high %v2955_v51, %v2955_v51  ;;  %v2978_v63 = vcombine.high %v2962_v52, %v2962_v52 }
 0x5e2   :  { %v3064_v2 = vrot.slane %v2955_v51, %v7139_v10  ;;  %v3068_v61 = vrot.slane %v2955_v51, %v7345_v22  ;;  %v3096_v1 = vrot.slane %v2962_v52, %v7139_v10  ;;  %v3100_v9 = vrot.slane %v2962_v52, %v7345_v22 }
 0x5e3   :  { %v2979_v4 = vcombine.high %v2969_v7, %v2969_v7  ;;  %v2980_v5 = vcombine.high %v2976_v60, %v2976_v60  ;;  %v3072_v6 = vrot.slane %v2969_v7, %v7139_v10  ;;  %v3076_v11 = vrot.slane %v2969_v7, %v7345_v22 }
 0x5e4   :  { %v3080_v13 = vrot.slane %v2977_v62, %v7139_v10  ;;  %v3084_v14 = vrot.slane %v2977_v62, %v7345_v22  ;;  %v3104_v15 = vrot.slane %v2976_v60, %v7139_v10  ;;  %v3108_v17 = vrot.slane %v2976_v60, %v7345_v22 }
 0x5e5   :  { %v3088_v20 = vrot.slane %v2979_v4, %v7139_v10  ;;  %v3092_v58 = vrot.slane %v2979_v4, %v7345_v22  ;;  %v3112_v18 = vrot.slane %v2978_v63, %v7139_v10  ;;  %v3116_v12 = vrot.slane %v2978_v63, %v7345_v22 }
 0x5e6   :  { %v3120_v16 = vrot.slane %v2980_v5, %v7139_v10  ;;  %v3124_v21 = vrot.slane %v2980_v5, %v7345_v22  ;;  %v3141_v25 = vsel %vm160_vm0, %v2984_v23, %v3064_v2  ;;  %v3142_v27 = vsel %vm160_vm0, %v2988_v24, %v3068_v61 }
 0x5e7   :  { %v3143_v28 = vsel %vm160_vm0, %v2992_v40, %v3072_v6  ;;  %v3144_v29 = vsel %vm160_vm0, %v2996_v41, %v3076_v11  ;;  %v3145_v3 = vsel %vm160_vm0, %v3000_v53, %v3080_v13  ;;  %v3146_v19 = vsel %vm160_vm0, %v3004_v43, %v3084_v14 }
 0x5e8   :  { %v3149_v31 = vsel %vm160_vm0, %v3016_v26, %v3096_v1  ;;  %v3150_v32 = vsel %vm160_vm0, %v3020_v42, %v3100_v9  ;;  %v3151_v33 = vsel %vm160_vm0, %v3024_v47, %v3104_v15  ;;  %v3152_v35 = vsel %vm160_vm0, %v3028_v48, %v3108_v17 }
 0x5e9   :  { %v3153_v36 = vsel %vm160_vm0, %v3032_v54, %v3112_v18  ;;  %v3154_v34 = vsel %vm160_vm0, %v3036_v56, %v3116_v12  ;;  %v3173_v23 = vcombine.low %v3141_v25, %v3142_v27  ;;  %v3205_v24 = vcombine.low %v3149_v31, %v3150_v32 }
 0x5ea   :  { %v3147_v37 = vsel %vm160_vm0, %v3008_v45, %v3088_v20  ;;  %v3148_v38 = vsel %vm160_vm0, %v3012_v46, %v3092_v58  ;;  %v3155_v39 = vsel %vm160_vm0, %v3040_v59, %v3120_v16  ;;  %v3156_v26 = vsel %vm160_vm0, %v3044_v57, %v3124_v21 }
 0x5eb   :  { %v3181_v40 = vcombine.low %v3143_v28, %v3144_v29  ;;  %v3189_v41 = vcombine.low %v3145_v3, %v3146_v19  ;;  %v3197_v42 = vcombine.low %v3147_v37, %v3148_v38  ;;  %v3213_v53 = vcombine.low %v3151_v33, %v3152_v35 }
 0x5ec   :  { %v3221_v43 = vcombine.low %v3153_v36, %v3154_v34  ;;  %v3229_v0 = vcombine.low %v3155_v39, %v3156_v26  ;;  %v3180_v44 = vrot.slane %v3173_v23, %v7119_v55  ;;  %v3212_v46 = vrot.slane %v3205_v24, %v7119_v55  ;;  %v6532_v24 = vld [vmem:[#allocation10] ss:$8 sps:$4 sm:$0xff]  }
 0x5ed   :  { %v3188_v47 = vrot.slane %v3181_v40, %v7119_v55  ;;  %v3196_v48 = vrot.slane %v3189_v41, %v7119_v55  ;;  %v3204_v45 = vrot.slane %v3197_v42, %v7119_v55  ;;  %v3220_v49 = vrot.slane %v3213_v53, %v7119_v55  ;;  %v6537_v42 = vld [vmem:[#allocation10 + $0x14] ss:$8 sps:$4 sm:$0xff]  }
 0x5ee   :  { %v3228_v50 = vrot.slane %v3221_v43, %v7119_v55  ;;  %v3236_v51 = vrot.slane %v3229_v0, %v7119_v55 }
 0x5ef   :  { %v3237_v52 = vcombine.low %v3180_v44, %v3188_v47  ;;  %v3238_v54 = vcombine.low %v3196_v48, %v3204_v45  ;;  %v3255_v56 = vcombine.low %v3212_v46, %v3220_v49  ;;  %v6535_v48 = vld [vmem:[#allocation10 + $0x10] ss:$8 sps:$4 sm:$0xff]   ;;  %v6540_v46 = vld [vmem:[#allocation10 + $0x24] ss:$8 sps:$4 sm:$0xff]   ;;  %v6538_v49 = vld [vmem:[#allocation10 + $0x20] ss:$8 sps:$4 sm:$0xff]  }
 0x5f0   :  { %v3256_v59 = vcombine.low %v3228_v50, %v3236_v51  ;;  %v6543_v50 = vld [vmem:[#allocation10 + $0x34] ss:$8 sps:$4 sm:$0xff]   ;;  %v6541_v51 = vld [vmem:[#allocation10 + $0x30] ss:$8 sps:$4 sm:$0xff]  }
 0x5f1   :  { %v3245_v57 = vrot.slane %v3237_v52, %v7119_v55  ;;  %v3252_v7 = vrot.slane %v3238_v54, %v7119_v55  ;;  %v3263_v60 = vrot.slane %v3255_v56, %v7119_v55  ;;  %v6546_v52 = vld [vmem:[#allocation10 + $0x44] ss:$8 sps:$4 sm:$0xff]   ;;  %v6544_v54 = vld [vmem:[#allocation10 + $0x40] ss:$8 sps:$4 sm:$0xff]   ;;  %v6549_v56 = vld [vmem:[#allocation10 + $0x54] ss:$8 sps:$4 sm:$0xff]  }
 0x5f2   :  { %v3270_v62 = vrot.slane %v3256_v59, %v7119_v55  ;;  %v6547_v59 = vld [vmem:[#allocation10 + $0x50] ss:$8 sps:$4 sm:$0xff]  }
 0x5f3   :  { %v3254_v63 = vcombine.high %v3245_v57, %v3252_v7  ;;  %v3253_v2 = vcombine.low %v3245_v57, %v3252_v7  ;;  %v6552_v57 = vld [vmem:[#allocation10 + $0x64] ss:$8 sps:$4 sm:$0xff]   ;;  %v6550_v7 = vld [vmem:[#allocation10 + $0x60] ss:$8 sps:$4 sm:$0xff]  }
 0x5f4   :  { %v3272_v61 = vcombine.high %v3263_v60, %v3270_v62  ;;  %v3271_v1 = vcombine.low %v3263_v60, %v3270_v62  ;;  %v6555_v60 = vld [vmem:[#allocation10 + $0x74] ss:$8 sps:$4 sm:$0xff]   ;;  %v6553_v62 = vld [vmem:[#allocation10 + $0x70] ss:$8 sps:$4 sm:$0xff]  }
 0x5f5   :  { %v3274_v9 = vrot.slane %v3254_v63, 7  ;;  %v3273_v4 = vrot.slane %v3253_v2, 7  ;;  %v6558_v63 = vld [vmem:[#allocation10 + $0x84] ss:$8 sps:$4 sm:$0xff]   ;;  %v6556_v2 = vld [vmem:[#allocation10 + $0x80] ss:$8 sps:$4 sm:$0xff]  }
 0x5f6   :  { %v3276_v5 = vrot.slane %v3272_v61, 7  ;;  %v3275_v6 = vrot.slane %v3271_v1, 7  ;;  %v6561_v61 = vld [vmem:[#allocation10 + $0x94] ss:$8 sps:$4 sm:$0xff]   ;;  %v6559_v1 = vld [vmem:[#allocation10 + $0x90] ss:$8 sps:$4 sm:$0xff]  }
 0x5f7   :  { %v3282_v11 = vsel %vm160_vm0, 0.0, %v3274_v9  ;;  %v3286_v13 = vsel %vm160_vm0, %v3274_v9, 0.0  ;;  %v3281_v14 = vsel %vm160_vm0, 0.0, %v3273_v4  ;;  %v3285_v15 = vsel %vm160_vm0, %v3273_v4, 0.0  ;;  %v6564_v9 = vld [vmem:[#allocation10 + $0xa4] ss:$8 sps:$4 sm:$0xff]  }
 0x5f8   :  { %v3284_v17 = vsel %vm160_vm0, 0.0, %v3276_v5  ;;  %v3288_v20 = vsel %vm160_vm0, %v3276_v5, 0.0  ;;  %v3300_v58 = vrot.slane %v3282_v11, 1  ;;  %v3301_v18 = vrot.slane %v3286_v13, 1  ;;  %v6562_v4 = vld [vmem:[#allocation10 + $0xa0] ss:$8 sps:$4 sm:$0xff]  }
 0x5f9   :  { %v3306_v12 = vrot.slane %v3284_v17, 1  ;;  %v3307_v16 = vrot.slane %v3288_v20, 1  ;;  %v3283_v21 = vsel %vm160_vm0, 0.0, %v3275_v6  ;;  %v3287_v25 = vsel %vm160_vm0, %v3275_v6, 0.0  ;;  %v6567_v5 = vld [vmem:[#allocation10 + $0xb4] ss:$8 sps:$4 sm:$0xff]  }
 0x5fa   :  { %v3302_v27 = vsel %vm199_vm2, %v3300_v58, %v3301_v18  ;;  %v3297_v28 = vrot.slane %v3281_v14, 1  ;;  %v3298_v29 = vrot.slane %v3285_v15, 1  ;;  %v3303_v3 = vrot.slane %v3283_v21, 1  ;;  %v6565_v6 = vld [vmem:[#allocation10 + $0xb0] ss:$8 sps:$4 sm:$0xff]  }
 0x5fb   :  { %v3308_v19 = vsel %vm199_vm2, %v3306_v12, %v3307_v16  ;;  %v3304_v31 = vrot.slane %v3287_v25, 1  ;;  %v3318_v32 = vrot.slane %v3282_v11, 2  ;;  %v3319_v33 = vrot.slane %v3286_v13, 2  ;;  %v6570_v11 = vld [vmem:[#allocation10 + $0xc4] ss:$8 sps:$4 sm:$0xff]  }
 0x5fc   :  { %v3314_v35 = vpack.c.bf16 %v3308_v19, %v3302_v27  ;;  %v3299_v36 = vsel %vm199_vm2, %v3297_v28, %v3298_v29  ;;  %v3324_v34 = vrot.slane %v3284_v17, 2  ;;  %v3325_v23 = vrot.slane %v3288_v20, 2  ;;  %v6568_v13 = vld [vmem:[#allocation10 + $0xc0] ss:$8 sps:$4 sm:$0xff]   ;;  %v6576_v17 = vld [vmem:[#allocation10 + $0xe4] ss:$8 sps:$4 sm:$0xff]  }
 0x5fd   :  { %v3305_v37 = vsel %vm199_vm2, %v3303_v3, %v3304_v31  ;;  %v3320_v38 = vsel %vm499_vm1, %v3318_v32, %v3319_v33  ;;  %v3315_v39 = vrot.slane %v3281_v14, 2  ;;  %v3316_v26 = vrot.slane %v3285_v15, 2  ;;  %v6573_v14 = vld [vmem:[#allocation10 + $0xd4] ss:$8 sps:$4 sm:$0xff]   ;;  %v6571_v15 = vld [vmem:[#allocation10 + $0xd0] ss:$8 sps:$4 sm:$0xff]  }
 0x5fe   :  { %3749 = vmatprep.mubr.bf16.mxu1 %v3314_v35  ;;  %3792 = vmatprep.mubr.bf16.mxu0 %v3314_v35  ;;  %v3313_v40 = vpack.c.bf16 %v3305_v37, %v3299_v36  ;;  %v3326_v41 = vsel %vm499_vm1, %v3324_v34, %v3325_v23  ;;  %v3321_v53 = vrot.slane %v3283_v21, 2  ;;  %v3322_v43 = vrot.slane %v3287_v25, 2  ;;  %v6574_v20 = vld [vmem:[#allocation10 + $0xe0] ss:$8 sps:$4 sm:$0xff]   ;;  %v6579_v58 = vld [vmem:[#allocation10 + $0xf4] ss:$8 sps:$4 sm:$0xff]  }
 0x5ff   :  { %v3332_v0 = vpack.c.bf16 %v3326_v41, %v3320_v38  ;;  %v7688_v44 = vsel %vm499_vm1, %v3315_v39, %v3316_v26  ;;  %v6577_v18 = vld [vmem:[#allocation10 + $0xf0] ss:$8 sps:$4 sm:$0xff]   ;;  %v6580_v12 = vld [vmem:[#allocation12 + $0xc0] sm:$0xff]   ;;  %v6582_v21 = vld [vmem:[#allocation12 + $0xc8] sm:$0xff]  }
 0x600   :  { %3750 = vmatmul.mubr.bf16.vlgmr.msra.gmra.mrb[16].mxu1 %v3313_v40  ;;  %3793 = vmatmul.mubr.bf16.vlgmr.msra.gmra.mrb[24].mxu0 %v3313_v40  ;;  %v7691_v47 = vsel %vm499_vm1, %v3321_v53, %v3322_v43  ;;  %v6581_v16 = vld [vmem:[#allocation12 + $0x80] sm:$0xff]   ;;  %v6583_v25 = vld [vmem:[#allocation12 + $0x88] sm:$0xff]   ;;  %v6584_v27 = vld [vmem:[#allocation12 + $0xd0] sm:$0xff]  }
 0x601   :  { %3996 = vmatpush1.bf16.msra.mxu0 %v6532_v24  ;;  %4027 = vmatprep.mubr.bf16.mxu0 %v3332_v0  ;;  %v3331_v45 = vpack.c.bf16 %v7691_v47, %v7688_v44  ;;  %v6585_v28 = vld [vmem:[#allocation12 + $0x90] sm:$0xff]   ;;  %v6586_v29 = vld [vmem:[#allocation12 + $0xd8] sm:$0xff]   ;;  %v6588_v19 = vld [vmem:[#allocation12 + $0xe0] sm:$0xff]  }
 0x602   :  { %3997 = vmatprep.subr.bf16.mxu0 %v6537_v42  ;;  %6011 = vmatprep.subr.bf16.mxu1 %v6580_v12  ;;  %v6587_v3 = vld [vmem:[#allocation12 + $0x98] sm:$0xff]   ;;  %v6589_v31 = vld [vmem:[#allocation12 + $0xa0] sm:$0xff]   ;;  %v6590_v32 = vld [vmem:[#allocation12 + $0xe8] sm:$0xff]  }
 0x603   :  { %6012 = vmatpush3.bf16.msra.mxu1 %v6581_v16  ;;  %v6591_v33 = vld [vmem:[#allocation12 + $0xa8] sm:$0xff]   ;;  %v6592_v35 = vld [vmem:[#allocation12 + $0xf0] sm:$0xff]   ;;  %v6594_v34 = vld [vmem:[#allocation12 + $0xf8] sm:$0xff]  }
 0x604   :  { %6013 = vmatprep.subr.bf16.mxu1 %v6582_v21  ;;  %v6593_v36 = vld [vmem:[#allocation12 + $0xb0] sm:$0xff]   ;;  %v6595_v23 = vld [vmem:[#allocation12 + $0xb8] sm:$0xff]   ;;  %v6596_v24 = vld [vmem:[#allocation12 + $0x40] sm:$0xff]  }
 0x605   :  { %3998 = vmatpush1.bf16.msra.mxu0 %v6535_v48  ;;  %v4042_v37 = vld [vmem:[%s8195_s14] sm:$0x3] }
 0x606   :  { %3999 = vmatprep.subr.bf16.mxu0 %v6540_v46  ;;  %v7699_v38 = vrot.slane %v4042_v37, %v7139_v10  ;;  %v7702_v39 = vrot.slane %v4042_v37, %v7345_v22 }
 0x607   :  { %6014 = vmatpush3.bf16.msra.mxu1 %v6583_v25 }
 0x608   :  { %6015 = vmatprep.subr.bf16.mxu1 %v6584_v27 }
 0x609   :  { %4000 = vmatpush1.bf16.msra.mxu0 %v6538_v49 }
 0x60a   :  { %4001 = vmatprep.subr.bf16.mxu0 %v6543_v50 }
 0x60b   :  { %6016 = vmatpush3.bf16.msra.mxu1 %v6585_v28 }
 0x60c   :  { %6017 = vmatprep.subr.bf16.mxu1 %v6586_v29 }
 0x60d   :  { %4002 = vmatpush1.bf16.msra.mxu0 %v6541_v51 }
 0x60e   :  { %4003 = vmatprep.subr.bf16.mxu0 %v6546_v52 }
 0x60f   :  { %6018 = vmatpush3.bf16.msra.mxu1 %v6587_v3 }
 0x610   :  { %6019 = vmatprep.subr.bf16.mxu1 %v6588_v19 }
 0x611   :  { %4004 = vmatpush1.bf16.msra.mxu0 %v6544_v54 }
 0x612   :  { %4005 = vmatprep.subr.bf16.mxu0 %v6549_v56 }
 0x613   :  { %6020 = vmatpush3.bf16.msra.mxu1 %v6589_v31 }
 0x614   :  { %6021 = vmatprep.subr.bf16.mxu1 %v6590_v32 }
 0x615   :  { %4006 = vmatpush1.bf16.msra.mxu0 %v6547_v59 }
 0x616   :  { %4007 = vmatprep.subr.bf16.mxu0 %v6552_v57 }
 0x617   :  { %6022 = vmatpush3.bf16.msra.mxu1 %v6591_v33 }
 0x618   :  { %6023 = vmatprep.subr.bf16.mxu1 %v6592_v35 }
 0x619   :  { %4008 = vmatpush1.bf16.msra.mxu0 %v6550_v7 }
 0x61a   :  { %4009 = vmatprep.subr.bf16.mxu0 %v6555_v60 }
 0x61b   :  { %6024 = vmatpush3.bf16.msra.mxu1 %v6593_v36 }
 0x61c   :  { %6025 = vmatprep.subr.bf16.mxu1 %v6594_v34 }
 0x61d   :  { %4010 = vmatpush1.bf16.msra.mxu0 %v6553_v62 }
 0x61e   :  { %4011 = vmatprep.subr.bf16.mxu0 %v6558_v63 }
 0x61f   :  { %6026 = vmatpush3.bf16.msra.mxu1 %v6595_v23 }
 0x620   :  { %6039 = vmatprep.subr.bf16.mxu1 %v6596_v24 }
 0x621   :  { %4012 = vmatpush1.bf16.msra.mxu0 %v6556_v2 }
 0x622   :  { %4013 = vmatprep.subr.bf16.mxu0 %v6561_v61 }
 0x625   :  { %4014 = vmatpush1.bf16.msra.mxu0 %v6559_v1 }
 0x626   :  { %4015 = vmatprep.subr.bf16.mxu0 %v6564_v9 }
 0x629   :  { %4016 = vmatpush1.bf16.msra.mxu0 %v6562_v4 }
 0x62a   :  { %4017 = vmatprep.subr.bf16.mxu0 %v6567_v5 }
 0x62d   :  { %4018 = vmatpush1.bf16.msra.mxu0 %v6565_v6 }
 0x62e   :  { %4019 = vmatprep.subr.bf16.mxu0 %v6570_v11 }
 0x631   :  { %4020 = vmatpush1.bf16.msra.mxu0 %v6568_v13 }
 0x632   :  { %4021 = vmatprep.subr.bf16.mxu0 %v6573_v14 }
 0x635   :  { %4022 = vmatpush1.bf16.msra.mxu0 %v6571_v15 }
 0x636   :  { %4023 = vmatprep.subr.bf16.mxu0 %v6576_v17 }
 0x639   :  { %4024 = vmatpush1.bf16.msra.mxu0 %v6574_v20 }
 0x63a   :  { %4025 = vmatprep.subr.bf16.mxu0 %v6579_v58 }
 0x63d   :  { %4026 = vmatpush1.bf16.msra.mxu0 %v6577_v18 }
 0x640   :  { %4028 = vmatmul.mubr.bf16.vlgmr.msra.gmra.mrb[24].mxu0 %v3331_v45 }
 0x6d3   :  { %v3751_v26 = vpop.f32.mrb[16].mxu1 }
 0x6d4   :  { %v4054_v40 = vadd.f32 %v7699_v38, %v3751_v26  ;;  %v3753_v41 = vpop.f32.mrb[17].mxu1 }
 0x6d5   :  { %v4055_v42 = vadd.f32 %v7702_v39, %v3753_v41  ;;  %v3755_v53 = vpop.f32.mrb[18].mxu1 }
 0x6d6   :  { %v4058_v43 = vmax.f32 %v4054_v40, 0.0  ;;  %v4056_v0 = vadd.f32 %v7699_v38, %v3755_v53  ;;  %v3757_v44 = vpop.f32.mrb[19].mxu1 }
 0x6d7   :  { %v4059_v47 = vmax.f32 %v4055_v42, 0.0  ;;  %v4057_v48 = vadd.f32 %v7702_v39, %v3757_v44 }
 0x6d8   :  { %v4060_v45 = vmax.f32 %v4056_v0, 0.0 }
 0x6d9   :  { %v4074_v46 = vcombine.low %v4058_v43, %v4059_v47  ;;  %v4075_v49 = vcombine.high %v4058_v43, %v4059_v47  ;;  %v4061_v50 = vmax.f32 %v4057_v48, 0.0 }
 0x6db   :  { %v4124_v51 = vcombine.low %v4060_v45, %v4061_v50  ;;  %v4125_v52 = vcombine.high %v4060_v45, %v4061_v50  ;;  %v4082_v54 = vrot.slane %v4074_v46, %v7351_v30  ;;  %v4089_v56 = vrot.slane %v4075_v49, %v7351_v30 }
 0x6dd   :  { %v4090_v59 = vcombine.high %v4082_v54, %v4082_v54  ;;  %v4091_v57 = vcombine.high %v4089_v56, %v4089_v56  ;;  %v7711_v7 = vrot.slane %v4082_v54, %v7351_v30  ;;  %v4132_v60 = vrot.slane %v4124_v51, %v7351_v30 }
 0x6de   :  { %v7715_v62 = vrot.slane %v4089_v56, %v7351_v30  ;;  %v4139_v2 = vrot.slane %v4125_v52, %v7351_v30 }
 0x6df   :  { %v7718_v63 = vrot.slane %v4090_v59, %v7351_v30  ;;  %v7722_v61 = vrot.slane %v4091_v57, %v7351_v30  ;;  %v7726_v1 = vcombine.high %v7711_v7, %v7711_v7  ;;  %v4140_v9 = vcombine.high %v4132_v60, %v4132_v60 }
 0x6e0   :  { %v7730_v4 = vcombine.high %v7715_v62, %v7715_v62  ;;  %v4281_v6 = vrot.slane %v7711_v7, %v7139_v10  ;;  %v4141_v11 = vcombine.high %v4139_v2, %v4139_v2  ;;  %v4285_v13 = vrot.slane %v7711_v7, %v7345_v22 }
 0x6e1   :  { %v7734_v5 = vcombine.high %v7718_v63, %v7718_v63  ;;  %v4313_v14 = vrot.slane %v7715_v62, %v7139_v10  ;;  %v4317_v15 = vrot.slane %v7715_v62, %v7345_v22  ;;  %v7745_v17 = vrot.slane %v4132_v60, %v7351_v30 }
 0x6e2   :  { %v7749_v20 = vcombine.high %v7722_v61, %v7722_v61  ;;  %v4289_v58 = vrot.slane %v7718_v63, %v7139_v10  ;;  %v4293_v18 = vrot.slane %v7718_v63, %v7345_v22  ;;  %v7756_v12 = vrot.slane %v4139_v2, %v7351_v30 }
 0x6e3   :  { %v4297_v16 = vrot.slane %v7726_v1, %v7139_v10  ;;  %v4301_v21 = vrot.slane %v7726_v1, %v7345_v22  ;;  %v4321_v25 = vrot.slane %v7722_v61, %v7139_v10  ;;  %v7765_v27 = vrot.slane %v4140_v9, %v7351_v30 }
 0x6e4   :  { %v4305_v28 = vrot.slane %v7734_v5, %v7139_v10  ;;  %v4309_v29 = vrot.slane %v7734_v5, %v7345_v22  ;;  %v4325_v3 = vrot.slane %v7722_v61, %v7345_v22  ;;  %v7774_v19 = vrot.slane %v4141_v11, %v7351_v30 }
 0x6e5   :  { %v4329_v32 = vrot.slane %v7730_v4, %v7139_v10  ;;  %v4333_v33 = vrot.slane %v7730_v4, %v7345_v22  ;;  %v7782_v35 = vcombine.high %v7745_v17, %v7745_v17  ;;  %v4337_v23 = vrot.slane %v7749_v20, %v7139_v10 }
 0x6e6   :  { %v4341_v24 = vrot.slane %v7749_v20, %v7345_v22  ;;  %v7791_v37 = vcombine.high %v7756_v12, %v7756_v12  ;;  %v7796_v41 = vcombine.high %v7765_v27, %v7765_v27  ;;  %v4345_v42 = vrot.slane %v7745_v17, %v7139_v10 }
 0x6e7   :  { %v7803_v44 = vcombine.high %v7774_v19, %v7774_v19  ;;  %v4349_v47 = vrot.slane %v7745_v17, %v7345_v22  ;;  %v4353_v46 = vrot.slane %v7765_v27, %v7139_v10  ;;  %v4357_v49 = vrot.slane %v7765_v27, %v7345_v22 }
 0x6e8   :  { %v8214_v17 = vrot.slane %v7782_v35, %v7345_v22  ;;  %v8216_v27 = vrot.slane %v7796_v41, %v7345_v22 }
 0x713   :  { %v4029_v31 = vpop.f32.mrb[24].mxu0 }
 0x714   :  { %v4062_v36 = vadd.f32 %v7699_v38, %v4029_v31  ;;  %v4031_v34 = vpop.f32.mrb[25].mxu0 }
 0x715   :  { %v4063_v26 = vadd.f32 %v7702_v39, %v4031_v34  ;;  %v4033_v40 = vpop.f32.mrb[26].mxu0 }
 0x716   :  { %v4066_v53 = vmax.f32 %v4062_v36, 0.0  ;;  %v4064_v43 = vadd.f32 %v7699_v38, %v4033_v40  ;;  %v4035_v0 = vpop.f32.mrb[27].mxu0 }
 0x717   :  { %v4067_v48 = vmax.f32 %v4063_v26, 0.0  ;;  %v4065_v45 = vadd.f32 %v7702_v39, %v4035_v0 }
 0x718   :  { %v4068_v50 = vmax.f32 %v4064_v43, 0.0 }
 0x719   :  { %v4178_v52 = vcombine.low %v4066_v53, %v4067_v48  ;;  %v4179_v54 = vcombine.high %v4066_v53, %v4067_v48  ;;  %v4069_v56 = vmax.f32 %v4065_v45, 0.0 }
 0x71b   :  { %v4186_v2 = vrot.slane %v4178_v52, %v7351_v30  ;;  %v4193_v9 = vrot.slane %v4179_v54, %v7351_v30  ;;  %v4228_v11 = vcombine.low %v4068_v50, %v4069_v56  ;;  %v4229_v31 = vcombine.high %v4068_v50, %v4069_v56 }
 0x71d   :  { %v4194_v53 = vcombine.high %v4186_v2, %v4186_v2  ;;  %v4195_v43 = vcombine.high %v4193_v9, %v4193_v9  ;;  %v4202_v0 = vrot.slane %v4186_v2, %v7351_v30  ;;  %v4209_v48 = vrot.slane %v4193_v9, %v7351_v30 }
 0x71e   :  { %v4236_v52 = vrot.slane %v4228_v11, %v7351_v30  ;;  %v4243_v54 = vrot.slane %v4229_v31, %v7351_v30 }
 0x71f   :  { %v4216_v56 = vrot.slane %v4194_v53, %v7351_v30  ;;  %v4223_v40 = vrot.slane %v4195_v43, %v7351_v30  ;;  %v4224_v26 = vcombine.high %v4202_v0, %v4202_v0  ;;  %v4225_v34 = vcombine.high %v4209_v48, %v4209_v48 }
 0x720   :  { %v4441_v2 = vrot.slane %v4202_v0, %v7139_v10  ;;  %v4445_v9 = vrot.slane %v4202_v0, %v7345_v22  ;;  %v4473_v36 = vrot.slane %v4209_v48, %v7139_v10  ;;  %v4477_v45 = vrot.slane %v4209_v48, %v7345_v22 }
 0x721   :  { %v4226_v60 = vcombine.high %v4216_v56, %v4216_v56  ;;  %v4227_v50 = vcombine.high %v4223_v40, %v4223_v40  ;;  %v4449_v11 = vrot.slane %v4216_v56, %v7139_v10  ;;  %v4453_v31 = vrot.slane %v4216_v56, %v7345_v22 }
 0x722   :  { %v4457_v53 = vrot.slane %v4224_v26, %v7139_v10  ;;  %v4461_v43 = vrot.slane %v4224_v26, %v7345_v22  ;;  %v4481_v57 = vrot.slane %v4223_v40, %v7139_v10  ;;  %v4485_v39 = vrot.slane %v4223_v40, %v7345_v22 }
 0x723   :  { %v4465_v0 = vrot.slane %v4226_v60, %v7139_v10  ;;  %v4469_v59 = vrot.slane %v4226_v60, %v7345_v22  ;;  %v4489_v48 = vrot.slane %v4225_v34, %v7139_v10  ;;  %v4493_v51 = vrot.slane %v4225_v34, %v7345_v22 }
 0x724   :  { %v4497_v38 = vrot.slane %v4227_v50, %v7139_v10  ;;  %v4501_v56 = vrot.slane %v4227_v50, %v7345_v22  ;;  %v4598_v26 = vsel %vm160_vm0, %v4281_v6, %v4441_v2  ;;  %v4599_v40 = vsel %vm160_vm0, %v4285_v13, %v4445_v9 }
 0x725   :  { %v4600_v60 = vsel %vm160_vm0, %v4289_v58, %v4449_v11  ;;  %v4601_v34 = vsel %vm160_vm0, %v4293_v18, %v4453_v31  ;;  %v4602_v6 = vsel %vm160_vm0, %v4297_v16, %v4457_v53  ;;  %v4603_v7 = vsel %vm160_vm0, %v4301_v21, %v4461_v43 }
 0x726   :  { %v4604_v13 = vsel %vm160_vm0, %v4305_v28, %v4465_v0  ;;  %v4605_v63 = vsel %vm160_vm0, %v4309_v29, %v4469_v59  ;;  %v4606_v58 = vsel %vm160_vm0, %v4313_v14, %v4473_v36  ;;  %v4607_v1 = vsel %vm160_vm0, %v4317_v15, %v4477_v45 }
 0x727   :  { %v4608_v18 = vsel %vm160_vm0, %v4321_v25, %v4481_v57  ;;  %v4609_v5 = vsel %vm160_vm0, %v4325_v3, %v4485_v39  ;;  %v7912_v14 = vsel %vm160_vm0, %v4329_v32, %v4489_v48  ;;  %v7918_v62 = vsel %vm160_vm0, %v4333_v33, %v4493_v51 }
 0x728   :  { %v7924_v15 = vsel %vm160_vm0, %v4337_v23, %v4497_v38  ;;  %v7930_v61 = vsel %vm160_vm0, %v4341_v24, %v4501_v56  ;;  %v4662_v16 = vcombine.low %v4598_v26, %v4599_v40  ;;  %v4670_v21 = vcombine.low %v4600_v60, %v4601_v34 }
 0x729   :  { %v4678_v25 = vcombine.low %v4602_v6, %v4603_v7  ;;  %v4686_v28 = vcombine.low %v4604_v13, %v4605_v63  ;;  %v4694_v4 = vcombine.low %v4606_v58, %v4607_v1  ;;  %v4702_v29 = vcombine.low %v4608_v18, %v4609_v5 }
 0x72a   :  { %v7933_v3 = vrot.slane %v4662_v16, %v7119_v55  ;;  %v7936_v32 = vrot.slane %v4670_v21, %v7119_v55  ;;  %v4710_v33 = vcombine.low %v7912_v14, %v7918_v62  ;;  %v4244_v23 = vcombine.high %v4236_v52, %v4236_v52 }
 0x72b   :  { %v7941_v20 = vrot.slane %v4678_v25, %v7119_v55  ;;  %v4245_v24 = vcombine.high %v4243_v54, %v4243_v54  ;;  %v4252_v38 = vrot.slane %v4236_v52, %v7351_v30  ;;  %v4259_v51 = vrot.slane %v4243_v54, %v7351_v30 }
 0x72c   :  { %v4266_v59 = vrot.slane %v4244_v23, %v7351_v30  ;;  %v4693_v39 = vrot.slane %v4686_v28, %v7119_v55  ;;  %v7948_v57 = vrot.slane %v4694_v4, %v7119_v55  ;;  %v7951_v36 = vrot.slane %v4702_v29, %v7119_v55 }
 0x72d   :  { %v4273_v45 = vrot.slane %v4245_v24, %v7351_v30  ;;  %v4274_v50 = vcombine.high %v4252_v38, %v4252_v38  ;;  %v4275_v2 = vcombine.high %v4259_v51, %v4259_v51  ;;  %v4505_v9 = vrot.slane %v4252_v38, %v7139_v10 }
 0x72e   :  { %v4276_v11 = vcombine.high %v4266_v59, %v4266_v59  ;;  %v4509_v52 = vrot.slane %v4252_v38, %v7345_v22  ;;  %v4513_v54 = vrot.slane %v4266_v59, %v7139_v10  ;;  %v4517_v31 = vrot.slane %v4266_v59, %v7345_v22 }
 0x72f   :  { %v4277_v53 = vcombine.high %v4273_v45, %v4273_v45  ;;  %v4521_v43 = vrot.slane %v4274_v50, %v7139_v10  ;;  %v4525_v0 = vrot.slane %v4274_v50, %v7345_v22  ;;  %v4537_v48 = vrot.slane %v4259_v51, %v7139_v10 }
 0x730   :  { %v4529_v30 = vrot.slane %v4276_v11, %v7139_v10  ;;  %v4533_v56 = vrot.slane %v4276_v11, %v7345_v22  ;;  %v4541_v26 = vrot.slane %v4259_v51, %v7345_v22  ;;  %v4545_v40 = vrot.slane %v4273_v45, %v7139_v10 }
 0x731   :  { %v4549_v60 = vrot.slane %v4273_v45, %v7345_v22  ;;  %v4553_v34 = vrot.slane %v4275_v2, %v7139_v10  ;;  %v4557_v6 = vrot.slane %v4275_v2, %v7345_v22  ;;  %v4561_v7 = vrot.slane %v4277_v53, %v7139_v10 }
 0x732   :  { %v4565_v13 = vrot.slane %v4277_v53, %v7345_v22  ;;  %v4614_v63 = vsel %vm160_vm0, %v4345_v42, %v4505_v9  ;;  %v4615_v58 = vsel %vm160_vm0, %v4349_v47, %v4509_v52  ;;  %v4616_v1 = vsel %vm160_vm0, %v4353_v46, %v4513_v54 }
 0x733   :  { %v4617_v18 = vsel %vm160_vm0, %v4357_v49, %v4517_v31  ;;  %v8213_v5 = vrot.slane %v7782_v35, %v7139_v10  ;;  %v4619_v47 = vsel %vm160_vm0, %v8214_v17, %v4525_v0  ;;  %v8215_v16 = vrot.slane %v7796_v41, %v7139_v10 }
 0x734   :  { %v4621_v49 = vsel %vm160_vm0, %v8216_v27, %v4533_v56  ;;  %v8217_v21 = vrot.slane %v7756_v12, %v7139_v10  ;;  %v8218_v35 = vrot.slane %v7756_v12, %v7345_v22  ;;  %v8219_v4 = vrot.slane %v7774_v19, %v7139_v10 }
 0x735   :  { %v4618_v42 = vsel %vm160_vm0, %v8213_v5, %v4521_v43  ;;  %v4620_v46 = vsel %vm160_vm0, %v8215_v16, %v4529_v30  ;;  %v8220_v41 = vrot.slane %v7774_v19, %v7345_v22  ;;  %v8221_v24 = vrot.slane %v7791_v37, %v7139_v10 }
 0x736   :  { %v4622_v25 = vsel %vm160_vm0, %v8217_v21, %v4537_v48  ;;  %v4623_v28 = vsel %vm160_vm0, %v8218_v35, %v4541_v26  ;;  %v4624_v29 = vsel %vm160_vm0, %v8219_v4, %v4545_v40  ;;  %v8222_v12 = vrot.slane %v7791_v37, %v7345_v22 }
 0x737   :  { %v4625_v23 = vsel %vm160_vm0, %v8220_v41, %v4549_v60  ;;  %v4626_v38 = vsel %vm160_vm0, %v8221_v24, %v4553_v34  ;;  %v8223_v59 = vrot.slane %v7803_v44, %v7139_v10  ;;  %v8224_v19 = vrot.slane %v7803_v44, %v7345_v22 }
 0x738   :  { %v4627_v51 = vsel %vm160_vm0, %v8222_v12, %v4557_v6  ;;  %v4726_v2 = vcombine.low %v4614_v63, %v4615_v58  ;;  %v4734_v9 = vcombine.low %v4616_v1, %v4617_v18  ;;  %v4742_v11 = vcombine.low %v4618_v42, %v4619_v47 }
 0x739   :  { %v4628_v45 = vsel %vm160_vm0, %v8223_v59, %v4561_v7  ;;  %v4629_v50 = vsel %vm160_vm0, %v8224_v19, %v4565_v13  ;;  %v4750_v52 = vcombine.low %v4620_v46, %v4621_v49  ;;  %v4758_v54 = vcombine.low %v4622_v25, %v4623_v28 }
 0x73a   :  { %v4766_v31 = vcombine.low %v4624_v29, %v4625_v23  ;;  %v4774_v53 = vcombine.low %v4626_v38, %v4627_v51  ;;  %v4733_v37 = vrot.slane %v4726_v2, %v7119_v55  ;;  %v4741_v43 = vrot.slane %v4734_v9, %v7119_v55 }
 0x73b   :  { %v4718_v10 = vcombine.low %v7924_v15, %v7930_v61  ;;  %v4790_v0 = vcombine.low %v7933_v3, %v7936_v32  ;;  %v4791_v22 = vcombine.low %v7941_v20, %v4693_v39  ;;  %v4808_v44 = vcombine.low %v7948_v57, %v7951_v36 }
 0x73c   :  { %v4749_v48 = vrot.slane %v4742_v11, %v7119_v55  ;;  %v4757_v30 = vrot.slane %v4750_v52, %v7119_v55  ;;  %v4765_v56 = vrot.slane %v4758_v54, %v7119_v55  ;;  %v4773_v26 = vrot.slane %v4766_v31, %v7119_v55 }
 0x73d   :  { %v4717_v15 = vrot.slane %v4710_v33, %v7119_v55  ;;  %v4725_v61 = vrot.slane %v4718_v10, %v7119_v55  ;;  %v4798_v3 = vrot.slane %v4790_v0, %v7119_v55  ;;  %v4805_v32 = vrot.slane %v4791_v22, %v7119_v55  ;;  %v6597_v0 = vld [vmem:[#allocation12] sm:$0xff]  }
 0x73e   :  { %v4782_v20 = vcombine.low %v4628_v45, %v4629_v50  ;;  %v4826_v39 = vcombine.low %v4733_v37, %v4741_v43  ;;  %v4827_v57 = vcombine.low %v4749_v48, %v4757_v30  ;;  %v4844_v36 = vcombine.low %v4765_v56, %v4773_v26  ;;  %v6598_v26 = vld [vmem:[#allocation12 + $0x48] sm:$0xff]  }
 0x73f   :  { %v4807_v40 = vcombine.high %v4798_v3, %v4805_v32  ;;  %v4809_v60 = vcombine.low %v4717_v15, %v4725_v61  ;;  %v4806_v34 = vcombine.low %v4798_v3, %v4805_v32  ;;  %v4781_v6 = vrot.slane %v4774_v53, %v7119_v55 }
 0x740   :  { %v4789_v7 = vrot.slane %v4782_v20, %v7119_v55  ;;  %v4834_v14 = vrot.slane %v4826_v39, %v7119_v55  ;;  %v4841_v62 = vrot.slane %v4827_v57, %v7119_v55  ;;  %v4816_v33 = vrot.slane %v4808_v44, %v7119_v55 }
 0x741   :  { %v4823_v13 = vrot.slane %v4809_v60, %v7119_v55  ;;  %v8060_v63 = vrot.slane %v4807_v40, 7  ;;  %v8062_v58 = vrot.slane %v4806_v34, 7  ;;  %v4852_v49 = vrot.slane %v4844_v36, %v7119_v55  ;;  %v6599_v34 = vld [vmem:[#allocation12 + $0x8] sm:$0xff]  }
 0x742   :  { %v4843_v1 = vcombine.high %v4834_v14, %v4841_v62  ;;  %v4845_v18 = vcombine.low %v4781_v6, %v4789_v7  ;;  %v4842_v5 = vcombine.low %v4834_v14, %v4841_v62  ;;  %v6600_v62 = vld [vmem:[#allocation12 + $0x50] sm:$0xff]  }
 0x743   :  { %v4825_v42 = vcombine.high %v4816_v33, %v4823_v13  ;;  %v8066_v17 = vsel %vm160_vm0, 0.0, %v8060_v63  ;;  %v4824_v47 = vcombine.low %v4816_v33, %v4823_v13  ;;  %v8070_v16 = vsel %vm160_vm0, 0.0, %v8062_v58 }
 0x744   :  { %v4941_v46 = vrot.slane %v8066_v17, 1  ;;  %v4938_v27 = vrot.slane %v8070_v16, 1  ;;  %v4859_v21 = vrot.slane %v4845_v18, %v7119_v55  ;;  %v5293_v28 = vrot.slane %v8070_v16, 2 }
 0x745   :  { %v4866_v25 = vrot.slane %v4825_v42, 7  ;;  %v4864_v35 = vrot.slane %v4824_v47, 7  ;;  %v8077_v4 = vrot.slane %v4843_v1, 7  ;;  %v8079_v23 = vrot.slane %v4842_v5, 7 }
 0x746   :  { %v4861_v29 = vcombine.high %v4852_v49, %v4859_v21  ;;  %v4860_v41 = vcombine.low %v4852_v49, %v4859_v21  ;;  %v5296_v24 = vrot.slane %v8066_v17, 2  ;;  %v6601_v49 = vld [vmem:[#allocation12 + $0x10] sm:$0xff]  }
 0x747   :  { %v8084_v38 = vsel %vm160_vm0, %v8060_v63, %v4866_v25  ;;  %v4891_v12 = vsel %vm160_vm0, %v4866_v25, 0.0  ;;  %v8089_v55 = vsel %vm160_vm0, %v8062_v58, %v4864_v35  ;;  %v4890_v51 = vsel %vm160_vm0, %v4864_v35, 0.0 }
 0x748   :  { %v4942_v59 = vrot.slane %v8084_v38, 1  ;;  %v4946_v45 = vrot.slane %v4891_v12, 1  ;;  %v4939_v19 = vrot.slane %v8089_v55, 1  ;;  %v4944_v50 = vrot.slane %v4890_v51, 1 }
 0x749   :  { %v5299_v2 = vrot.slane %v4890_v51, 2  ;;  %v4872_v9 = vrot.slane %v4861_v29, 7  ;;  %v4889_v11 = vsel %vm160_vm0, 0.0, %v8077_v4  ;;  %v4870_v52 = vrot.slane %v4860_v41, 7  ;;  %v6602_v29 = vld [vmem:[#allocation12 + $0x58] sm:$0xff]  }
 0x74a   :  { %v4943_v54 = vsel %vm199_vm2, %v4941_v46, %v4942_v59  ;;  %v4947_v31 = vsel %vm199_vm2, %v4942_v59, %v4946_v45  ;;  %v4940_v53 = vsel %vm199_vm2, %v4938_v27, %v4939_v19  ;;  %v4945_v37 = vsel %vm199_vm2, %v4939_v19, %v4944_v50  ;;  %v6603_v51 = vld [vmem:[#allocation12 + $0x18] sm:$0xff]   ;;  %v6604_v45 = vld [vmem:[#allocation12 + $0x60] sm:$0xff]   ;;  %v6606_v50 = vld [vmem:[#allocation12 + $0x68] sm:$0xff]  }
 0x74b   :  { %v4967_v43 = vpack.c.bf16 %v4947_v31, %v4943_v54  ;;  %v4966_v10 = vpack.c.bf16 %v4945_v37, %v4940_v53  ;;  %v8102_v22 = vsel %vm160_vm0, %v8077_v4, %v4872_v9  ;;  %v4893_v44 = vsel %vm160_vm0, %v4872_v9, 0.0  ;;  %v6605_v19 = vld [vmem:[#allocation12 + $0x20] sm:$0xff]   ;;  %v6608_v9 = vld [vmem:[#allocation12 + $0x70] sm:$0xff]   ;;  %v6611_v54 = vld [vmem:[#allocation12 + $0x38] sm:$0xff]  }
 0x74c   :  { %v4951_v48 = vrot.slane %v4889_v11, 1  ;;  %v4952_v30 = vrot.slane %v8102_v22, 1  ;;  %v4956_v56 = vrot.slane %v4893_v44, 1  ;;  %v8108_v15 = vsel %vm160_vm0, %v8079_v23, %v4870_v52  ;;  %v6612_v31 = vld [vmem:[#allocation12 + $0x140] sm:$0xff]   ;;  %v6614_v37 = vld [vmem:[#allocation12 + $0x148] sm:$0xff]  }
 0x74d   :  { %5131 = vmatprep.mubr.bf16.mxu1 %v4967_v43  ;;  %v4888_v61 = vsel %vm160_vm0, 0.0, %v8079_v23  ;;  %v4892_v3 = vsel %vm160_vm0, %v4870_v52, 0.0  ;;  %v4949_v32 = vrot.slane %v8108_v15, 1  ;;  %v5936_v20 = vpack.c.bf16 %v8084_v38, %v8060_v63  ;;  %v6610_v52 = vld [vmem:[#allocation12 + $0x78] sm:$0xff]   ;;  %v6613_v53 = vld [vmem:[#allocation12 + $0x100] sm:$0xff]   ;;  %v6615_v43 = vld [vmem:[#allocation12 + $0x108] sm:$0xff]  }
 0x74e   :  { %5132 = vmatmul.mubr.bf16.vlgmr.msra.gmra.mrb[20].mxu1 %v4966_v10  ;;  %v4953_v39 = vsel %vm199_vm2, %v4951_v48, %v4952_v30  ;;  %v4957_v57 = vsel %vm199_vm2, %v4952_v30, %v4956_v56  ;;  %v4948_v36 = vrot.slane %v4888_v61, 1  ;;  %v4954_v40 = vrot.slane %v4892_v3, 1  ;;  %v6616_v10 = vld [vmem:[#allocation12 + $0x150] sm:$0xff]   ;;  %v6620_v48 = vld [vmem:[#allocation12 + $0x160] sm:$0xff]   ;;  %v6622_v56 = vld [vmem:[#allocation12 + $0x168] sm:$0xff]  }
 0x74f   :  { %6040 = vmatpush3.bf16.msra.mxu1 %v6597_v0  ;;  %v4969_v60 = vpack.c.bf16 %v4957_v57, %v4953_v39  ;;  %v5940_v6 = vpack.c.bf16 %v8089_v55, %v8062_v58  ;;  %v5944_v7 = vpack.c.bf16 %v8102_v22, %v8077_v4  ;;  %v5948_v14 = vpack.c.bf16 %v8108_v15, %v8079_v23  ;;  %v6617_v0 = vld [vmem:[#allocation12 + $0x110] sm:$0xff]   ;;  %v6621_v30 = vld [vmem:[#allocation12 + $0x120] sm:$0xff]   ;;  %v6626_v23 = vld [vmem:[#allocation12 + $0x178] sm:$0xff]  }
 0x750   :  { %6041 = vmatprep.subr.bf16.mxu1 %v6598_v26  ;;  %v4950_v33 = vsel %vm199_vm2, %v4948_v36, %v4949_v32  ;;  %v4955_v13 = vsel %vm199_vm2, %v4949_v32, %v4954_v40  ;;  %v5297_v63 = vrot.slane %v8084_v38, 2  ;;  %v5301_v1 = vrot.slane %v4891_v12, 2  ;;  %v6623_v26 = vld [vmem:[#allocation12 + $0x128] sm:$0xff]  }
 0x751   :  { %5139 = vmatprep.mubr.bf16.mxu1 %v4969_v60  ;;  %v4968_v18 = vpack.c.bf16 %v4955_v13, %v4950_v33  ;;  %v5294_v5 = vrot.slane %v8089_v55, 2  ;;  %v5306_v58 = vrot.slane %v4889_v11, 2  ;;  %v5307_v42 = vrot.slane %v8102_v22, 2  ;;  %v6609_v11 = vld [vmem:[#allocation12 + $0x30] sm:$0xff]   ;;  %v6618_v22 = vld [vmem:[#allocation12 + $0x158] sm:$0xff]  }
 0x752   :  { %v5298_v17 = vsel %vm499_vm1, %v5296_v24, %v5297_v63  ;;  %v5302_v47 = vsel %vm499_vm1, %v5297_v63, %v5301_v1  ;;  %v5311_v46 = vrot.slane %v4893_v44, 2  ;;  %v5303_v27 = vrot.slane %v4888_v61, 2  ;;  %v6619_v44 = vld [vmem:[#allocation12 + $0x118] sm:$0xff]   ;;  %v6624_v61 = vld [vmem:[#allocation12 + $0x170] sm:$0xff]  }
 0x753   :  { %6042 = vmatpush3.bf16.msra.mxu1 %v6599_v34  ;;  %v5322_v21 = vpack.c.bf16 %v5302_v47, %v5298_v17  ;;  %v8134_v25 = vsel %vm499_vm1, %v5293_v28, %v5294_v5  ;;  %v8137_v35 = vsel %vm499_vm1, %v5294_v5, %v5299_v2  ;;  %v8140_v4 = vsel %vm499_vm1, %v5306_v58, %v5307_v42  ;;  %v6607_v2 = vld [vmem:[#allocation12 + $0x28] sm:$0xff]  }
 0x754   :  { %6043 = vmatprep.subr.bf16.mxu1 %v6600_v62  ;;  %v5321_v41 = vpack.c.bf16 %v8137_v35, %v8134_v25  ;;  %v8145_v24 = vsel %vm499_vm1, %v5307_v42, %v5311_v46  ;;  %v5304_v38 = vrot.slane %v8108_v15, 2  ;;  %v5309_v16 = vrot.slane %v4892_v3, 2  ;;  %v6625_v3 = vld [vmem:[#allocation12 + $0x130] sm:$0xff]  }
 0x755   :  { %v5324_v28 = vpack.c.bf16 %v8145_v24, %v8140_v4  ;;  %v5966_v24 = vld [vmem:[%s8197_s16] ss:$0 sm:$0xff] }
 0x756   :  { %5140 = vmatmul.mubr.bf16.gmra.mrb[24].mxu1 %v4968_v18  ;;  %v5305_v12 = vsel %vm499_vm1, %v5303_v27, %v5304_v38  ;;  %v5310_v55 = vsel %vm499_vm1, %v5304_v38, %v5309_v16 }
 0x757   :  { %6044 = vmatpush3.bf16.msra.mxu1 %v6601_v49  ;;  %5937 = vmatprep.mubr.msk.bf16.mxu1 %vm7080_vm5, %v5936_v20  ;;  %v5323_v59 = vpack.c.bf16 %v5310_v55, %v5305_v12 }
 0x758   :  { %6045 = vmatprep.subr.bf16.mxu1 %v6602_v29 }
 0x75b   :  { %6046 = vmatpush3.bf16.msra.mxu1 %v6603_v51 }
 0x75c   :  { %6047 = vmatprep.subr.bf16.mxu1 %v6604_v45 }
 0x75f   :  { %6048 = vmatpush3.bf16.msra.mxu1 %v6605_v19 }
 0x760   :  { %6049 = vmatprep.subr.bf16.mxu1 %v6606_v50 }
 0x763   :  { %6050 = vmatpush3.bf16.msra.mxu1 %v6607_v2 }
 0x764   :  { %6051 = vmatprep.subr.bf16.mxu1 %v6608_v9 }
 0x767   :  { %6052 = vmatpush3.bf16.msra.mxu1 %v6609_v11 }
 0x768   :  { %6053 = vmatprep.subr.bf16.mxu1 %v6610_v52 }
 0x76b   :  { %6054 = vmatpush3.bf16.msra.mxu1 %v6611_v54 }
 0x76c   :  { %6067 = vmatprep.subr.bf16.mxu1 %v6612_v31 }
 0x76e   :  { %5941 = vmatmul.mubr.msk.bf16.vlgmr.msra.gmra.mrb[28].mxu1 %vm7080_vm5, %v5940_v6 }
 0x76f   :  { %5945 = vmatprep.mubr.msk.bf16.mxu1 %vm7080_vm5, %v5944_v7  ;;  %6068 = vmatpush3.bf16.msra.mxu1 %v6613_v53 }
 0x770   :  { %6069 = vmatprep.subr.bf16.mxu1 %v6614_v37 }
 0x773   :  { %6070 = vmatpush3.bf16.msra.mxu1 %v6615_v43 }
 0x774   :  { %6071 = vmatprep.subr.bf16.mxu1 %v6616_v10 }
 0x776   :  { %5949 = vmatmul.mubr.msk.bf16.gmra.mrb[32].mxu1 %vm7080_vm5, %v5948_v14 }
 0x777   :  { %6072 = vmatpush3.bf16.msra.mxu1 %v6617_v0  ;;  %5486 = vmatprep.mubr.bf16.mxu1 %v5322_v21 }
 0x778   :  { %6073 = vmatprep.subr.bf16.mxu1 %v6618_v22 }
 0x77b   :  { %6074 = vmatpush3.bf16.msra.mxu1 %v6619_v44 }
 0x77c   :  { %6075 = vmatprep.subr.bf16.mxu1 %v6620_v48 }
 0x77f   :  { %6076 = vmatpush3.bf16.msra.mxu1 %v6621_v30 }
 0x780   :  { %6077 = vmatprep.subr.bf16.mxu1 %v6622_v56 }
 0x783   :  { %6078 = vmatpush3.bf16.msra.mxu1 %v6623_v26 }
 0x784   :  { %6079 = vmatprep.subr.bf16.mxu1 %v6624_v61 }
 0x787   :  { %6080 = vmatpush3.bf16.msra.mxu1 %v6625_v3 }
 0x788   :  { %6081 = vmatprep.subr.bf16.mxu1 %v6626_v23 }
 0x78b   :  { %6082 = vmatpush3.bf16.msra.mxu1 %v6627_v8 }
 0x78e   :  { %5487 = vmatmul.mubr.bf16.vlgmr.msra.gmra.mrb[36].mxu1 %v5321_v41 }
 0x78f   :  { %5494 = vmatprep.mubr.bf16.mxu1 %v5324_v28 }
 0x796   :  { %5495 = vmatmul.mubr.bf16.gmra.mrb[40].mxu1 %v5323_v59 }
 0x821   :  { %v6027_v15 = vpop.f32.mrb[20].mxu1 }
 0x822   :  { %v6028_v32 = vpop.f32.mrb[21].mxu1 }
 0x823   :  { %v6029_v20 = vadd.f32 %v6028_v32, %v6027_v15  ;;  %v6030_v39 = vpop.f32.mrb[22].mxu1 }
 0x824   :  { %v6031_v57 = vpop.f32.mrb[23].mxu1 }
 0x825   :  { %v6032_v36 = vadd.f32 %v6031_v57, %v6030_v39 }
 0x829   :  { %v6033_v40 = vpop.f32.mrb[24].mxu1 }
 0x82a   :  { %v6034_v60 = vpop.f32.mrb[25].mxu1 }
 0x82b   :  { %v6035_v34 = vadd.f32 %v6034_v60, %v6033_v40  ;;  %v6036_v6 = vpop.f32.mrb[26].mxu1 }
 0x82c   :  { %v6037_v7 = vpop.f32.mrb[27].mxu1 }
 0x82d   :  { %v6038_v14 = vadd.f32 %v6037_v7, %v6036_v6 }
 0x841   :  { %v6055_v62 = vpop.f32.mrb[28].mxu1 }
 0x842   :  { %v6056_v33 = vpop.f32.mrb[29].mxu1 }
 0x843   :  { %v6057_v13 = vadd.f32 %v6056_v33, %v6055_v62  ;;  %v6058_v63 = vpop.f32.mrb[30].mxu1 }
 0x844   :  { %v6059_v1 = vpop.f32.mrb[31].mxu1 }
 0x845   :  { %v5279_v18 = vadd.f32 %v6057_v13, %v6029_v20  ;;  %v6060_v5 = vadd.f32 %v6059_v1, %v6058_v63 }
 0x847   :  { %v5282_v58 = vadd.f32 %v6060_v5, %v6032_v36 }
 0x849   :  { %v6061_v42 = vpop.f32.mrb[32].mxu1 }
 0x84a   :  { %v6062_v17 = vpop.f32.mrb[33].mxu1 }
 0x84b   :  { %v6063_v47 = vadd.f32 %v6062_v17, %v6061_v42  ;;  %v6064_v46 = vpop.f32.mrb[34].mxu1 }
 0x84c   :  { %v6065_v27 = vpop.f32.mrb[35].mxu1 }
 0x84d   :  { %v5287_v49 = vadd.f32 %v6063_v47, %v6035_v34  ;;  %v6066_v21 = vadd.f32 %v6065_v27, %v6064_v46 }
 0x84f   :  { %v5290_v25 = vadd.f32 %v6066_v21, %v6038_v14 }
 0x861   :  { %v6083_v35 = vpop.f32.mrb[36].mxu1 }
 0x862   :  { %v6084_v4 = vpop.f32.mrb[37].mxu1 }
 0x863   :  { %v6085_v29 = vadd.f32 %v6084_v4, %v6083_v35  ;;  %v6086_v41 = vpop.f32.mrb[38].mxu1 }
 0x864   :  { %v6087_v38 = vpop.f32.mrb[39].mxu1 }
 0x865   :  { %v5503_v16 = vadd.f32 %v6085_v29, %v5279_v18  ;;  %v6088_v28 = vadd.f32 %v6087_v38, %v6086_v41 }
 0x867   :  { %v5514_v12 = vadd.f32 %v5966_v24, %v5503_v16  ;;  %v5504_v55 = vadd.f32 %v6088_v28, %v5282_v58 }
 0x869   :  { %v5518_v51 = vsub.f32 0.0, %v5514_v12  ;;  %v5515_v59 = vadd.f32 %v5966_v24, %v5504_v55  ;;  %v6089_v45 = vpop.f32.mrb[40].mxu1 }
 0x86a   :  { %v6090_v19 = vpop.f32.mrb[41].mxu1 }
 0x86b   :  { %v5522_v50 = vmul.f32 1.442695, %v5518_v51  ;;  %v5519_v2 = vsub.f32 0.0, %v5515_v59  ;;  %v6091_v9 = vadd.f32 %v6090_v19, %v6089_v45  ;;  %v6092_v11 = vpop.f32.mrb[42].mxu1 }
 0x86c   :  { %v6093_v52 = vpop.f32.mrb[43].mxu1 }
 0x86d   :  { %6628 = vpow2.f32 %v5522_v50  ;;  %v5524_v54 = vmul.f32 1.442695, %v5519_v2  ;;  %v5505_v31 = vadd.f32 %v6091_v9, %v5287_v49  ;;  %v6094_v53 = vadd.f32 %v6093_v52, %v6092_v11 }
 0x86f   :  { %6630 = vpow2.f32 %v5524_v54  ;;  %v5516_v37 = vadd.f32 %v5966_v24, %v5505_v31  ;;  %v5506_v43 = vadd.f32 %v6094_v53, %v5290_v25 }
 0x871   :  { %v5520_v10 = vsub.f32 0.0, %v5516_v37  ;;  %v5517_v0 = vadd.f32 %v5966_v24, %v5506_v43 }
 0x873   :  { %v5526_v22 = vmul.f32 1.442695, %v5520_v10  ;;  %v5521_v44 = vsub.f32 0.0, %v5517_v0 }
 0x875   :  { %6632 = vpow2.f32 %v5526_v22  ;;  %v5528_v48 = vmul.f32 1.442695, %v5521_v44 }
 0x877   :  { %v6629_v30 = vpop.eup %6628  ;;  %6634 = vpow2.f32 %v5528_v48 }
 0x878   :  { %v5530_v56 = vadd.f32 1.0, %v6629_v30 }
 0x879   :  { %v6631_v26 = vpop.eup %6630 }
 0x87a   :  { %6636 = vrcp.f32 %v5530_v56  ;;  %v5531_v61 = vadd.f32 1.0, %v6631_v26 }
 0x87c   :  { %6638 = vrcp.f32 %v5531_v61 }
 0x87f   :  { %v6633_v3 = vpop.eup %6632 }
 0x880   :  { %v5532_v23 = vadd.f32 1.0, %v6633_v3 }
 0x881   :  { %v6635_v8 = vpop.eup %6634 }
 0x882   :  { %6640 = vrcp.f32 %v5532_v23  ;;  %v5533_v15 = vadd.f32 1.0, %v6635_v8 }
 0x884   :  { %v6637_v32 = vpop.eup %6636  ;;  %6642 = vrcp.f32 %v5533_v15 }
 0x885   :  { %5542 = vst [vmem:[%s8225_s5] sm:$0xff] %v6637_v32 }
 0x886   :  { %v6639_v20 = vpop.eup %6638 }
 0x887   :  { %5543 = vst [vmem:[%s8225_s5 + $0x8] sm:$0xff] %v6639_v20 }
 0x88c   :  { %v6641_v39 = vpop.eup %6640 }
 0x88d   :  { %5544 = vst [vmem:[%s8225_s5 + $0x10] sm:$0xff] %v6641_v39 }
 0x88e   :  { %v6643_v57 = vpop.eup %6642 }
 0x88f   :  { %5545 = vst [vmem:[%s8225_s5 + $0x18] sm:$0xff] %v6643_v57 }
 0x890   :  { %5550 = vsyncpa [#allocation3], 1 }
 0x891   :  { %5551 = vsyncpa [#allocation5], 1 }
 0x892   :  { %5552 = vsyncpa [#allocation8], 1 }
 0x893   :  { %5553 = vsyncpa [#allocation11], 1 }

</bundles_post_ra>
